<compile_context>
chip_gen: v5e
topology: v5e:2x2
jax: 0.10.0
libtpu: 0.0.40
codegen_flags: <defaults>
</compile_context>

<pallas_src>
import functools

import numpy as np
import jax
import jax.numpy as jnp
from jax.experimental import pallas as pl
from jax.experimental.pallas import tpu as pltpu


def _round_up(a, m):
    return ((a + m - 1) // m) * m


# --------------------------------------------------------------------------
# Deterministic "parameter" construction (STFT basis, Hann window, mel bank)
# --------------------------------------------------------------------------
def _hann_window(n):
    k = np.arange(n)
    return 0.5 - 0.5 * np.cos(2.0 * np.pi * k / n)


def _windowed_dft_basis(n_fft, n_freq, n_freq_pad):
    """cos / -sin DFT basis with the Hann window folded in, each [n_fft, n_freq_pad]."""
    k = np.arange(n_fft)[:, None]
    f = np.arange(n_freq)[None, :]
    ang = 2.0 * np.pi * k * f / n_fft
    w = _hann_window(n_fft)[:, None]
    cos_b = np.zeros((n_fft, n_freq_pad), dtype=np.float32)
    sin_b = np.zeros((n_fft, n_freq_pad), dtype=np.float32)
    cos_b[:, :n_freq] = (w * np.cos(ang)).astype(np.float32)
    sin_b[:, :n_freq] = (-w * np.sin(ang)).astype(np.float32)
    return cos_b, sin_b


def _mel_filterbank(sr, n_fft, n_mels, n_freq, n_freq_pad, n_mels_pad,
                    fmin=0.0, fmax=None):
    """HTK triangular mel filterbank, [n_freq_pad, n_mels_pad] (zero padded)."""
    fmax = fmax if fmax is not None else sr / 2.0

    def hz2mel(f):
        return 2595.0 * np.log10(1.0 + f / 700.0)

    def mel2hz(m):
        return 700.0 * (10.0 ** (m / 2595.0) - 1.0)

    mel_pts = np.linspace(hz2mel(fmin), hz2mel(fmax), n_mels + 2)
    hz_pts = mel2hz(mel_pts)
    freqs = np.linspace(0.0, sr / 2.0, n_fft // 2 + 1)[:n_freq]

    fb = np.zeros((n_freq_pad, n_mels_pad), dtype=np.float32)
    for m in range(n_mels):
        lo, c, hi = hz_pts[m], hz_pts[m + 1], hz_pts[m + 2]
        up = (freqs - lo) / max(c - lo, 1e-10)
        down = (hi - freqs) / max(hi - c, 1e-10)
        fb[:n_freq, m] = np.maximum(0.0, np.minimum(up, down)).astype(np.float32)
    return fb


def build_mel_params(mel_configs, tf_max=512):
    params = []
    for cfg in mel_configs:
        n_fft, hop, n_mels, sr = cfg["n_fft"], cfg["hop"], cfg["n_mels"], cfg["sr"]
        assert n_fft % hop == 0, "framing decomposition assumes hop | n_fft"
        # Lane-dense window rows: each slab row holds W consecutive samples.
        # W >= 128 keeps every vreg lane busy and every sub-matmul depth K >= 128.
        if hop >= 128:
            assert hop % 128 == 0, "hop >= 128 must be a multiple of 128"
            W = hop
        else:
            assert 128 % hop == 0, "hop < 128 must divide 128"
            W = 128
        assert n_fft % W == 0

        # Drop the Nyquist bin: its mel weight is exactly 0 for fmax = sr/2, so the
        # freq dim becomes n_fft/2 (a 128-multiple) with bit-identical mels.
        n_freq = n_fft // 2
        n_freq_pad = _round_up(n_freq, 128)
        n_mels_pad = _round_up(n_mels, 128)   # lane-dense mel-matmul output

        cos_b, sin_b = _windowed_dft_basis(n_fft, n_freq, n_freq_pad)
        basis = np.concatenate([cos_b, sin_b], axis=1)          # [n_fft, 2*n_freq_pad]
        mel_fb = _mel_filterbank(sr, n_fft, n_mels, n_freq, n_freq_pad, n_mels_pad)

        # Full-precision reference operands (keep the Nyquist bin, no padding).
        n_freq_full = n_fft // 2 + 1
        ref_cos, ref_sin = _windowed_dft_basis(n_fft, n_freq_full, n_freq_full)
        ref_mel = _mel_filterbank(sr, n_fft, n_mels, n_freq_full, n_freq_full, n_mels)

        params.append(dict(
            n_fft=n_fft, hop=hop, n_mels=n_mels, n_mels_pad=n_mels_pad,
            W=W, s=W // hop, r=n_fft // W,
            n_freq_pad=n_freq_pad, tf_max=tf_max,
            basis=jnp.asarray(basis, dtype=jnp.bfloat16),
            mel=jnp.asarray(mel_fb, dtype=jnp.bfloat16),
            ref_cos=jnp.asarray(ref_cos), ref_sin=jnp.asarray(ref_sin),
            ref_mel=jnp.asarray(ref_mel),
        ))
    return params


# --------------------------------------------------------------------------
# Glue: reflect pad + per-tile, lane-dense (W-wide) window slabs in bf16
# --------------------------------------------------------------------------
def _window_slabs(x, n_fft, hop, W, tf, n_tiles, tile_rows):
    """[B, n_tiles, tile_rows, W] bf16.  Row (t, i) = padded_signal[(t*tf+i)*hop : +W].

    Frame g = t*tf + i is the concatenation of rows i, i+s, ..., i+(r-1)*s of slab t,
    but the kernel never materializes that concat (sub-matmul decomposition).
    """
    B, T = x.shape
    pad = n_fft // 2
    xp = jnp.pad(x, ((0, 0), (pad, pad)), mode="reflect")       # center=True framing
    need = ((n_tiles - 1) * tf + tile_rows - 1) * hop + W
    if need > xp.shape[1]:
        xp = jnp.pad(xp, ((0, 0), (0, need - xp.shape[1])))
    rows = np.arange(n_tiles)[:, None] * tf + np.arange(tile_rows)[None, :]
    idx = rows[:, :, None] * hop + np.arange(W)[None, None, :]   # (n_tiles, tile_rows, W)
    slabs = xp[:, jnp.asarray(idx, dtype=jnp.int32)]             # (B, n_tiles, tile_rows, W)
    return slabs.astype(jnp.bfloat16)


# --------------------------------------------------------------------------
# Pallas kernel: per-tile log-mel + loss partial sums (accumulated over tiles)
# --------------------------------------------------------------------------
def _mel_loss_kernel(xw_ref, yw_ref, basis_ref, mel_ref, out_ref,
                     *, eps, tf, s, r, W, NF, NM, n_frames):
    f = pl.program_id(1)

    @pl.when(f == 0)
    def _init():
        out_ref[...] = jnp.zeros_like(out_ref)

    mel_fb = mel_ref[...]                                        # (NF, NM) bf16

    def log_mel(w_ref):
        # STFT of tf frames as r accumulated sub-matmuls: static sublane offsets,
        # lane-dense (W >= 128) bf16 LHS, f32 accumulation.  The (tf, n_fft) frame
        # tensor is never built.
        spec = jnp.zeros((tf, 2 * NF), dtype=jnp.float32)
        for p in range(r):
            lhs = w_ref[0, 0, pl.ds(p * s, tf), :]               # (tf, W) bf16
            rhs = basis_ref[pl.ds(p * W, W), :]                  # (W, 2*NF) bf16
            spec = spec + jnp.dot(lhs, rhs, preferred_element_type=jnp.float32)
        re = spec[:, :NF]
        im = spec[:, NF:]
        mag = jnp.sqrt(re * re + im * im)
        mel = jnp.dot(mag.astype(jnp.bfloat16), mel_fb,
                      preferred_element_type=jnp.float32)
        m = jnp.maximum(mel, eps)            # == exp(log(max(mel, eps)))
        return m, jnp.log(m)

    mx, lx = log_mel(xw_ref)
    my, ly = log_mel(yw_ref)

    # Mask frames past the true frame count: reflect-tail / zero-pad frames must not
    # contribute (v2 correctness bug).
    fidx = jax.lax.broadcasted_iota(jnp.int32, (tf, 1), 0) + f * tf
    valid = (fidx < n_frames).astype(jnp.float32)                # (tf, 1)

    d = mx - my
    sqd = jnp.sum(valid * (d * d), axis=0, keepdims=True)        # (1, NM) lane partials
    sqx = jnp.sum(valid * (mx * mx), axis=0, keepdims=True)
    abd = jnp.sum(valid * jnp.abs(lx - ly), axis=0, keepdims=True)

    # Single resident accumulator slab per batch element (rows 0..2 used).
    upd = jnp.concatenate([sqd, sqx, abd, jnp.zeros((5, NM), jnp.float32)], axis=0)
    out_ref[0] += upd


def _mel_loss_stats(xw, yw, basis, mel_fb, p, tf, n_tiles, n_frames, eps):
    B, _, tile_rows, W = xw.shape
    n_fft, two_nf = basis.shape
    NF = two_nf // 2
    NM = mel_fb.shape[1]

    kernel = functools.partial(
        _mel_loss_kernel, eps=eps, tf=tf, s=p["s"], r=p["r"], W=W,
        NF=NF, NM=NM, n_frames=n_frames)

    # VMEM budget: window slabs (2 inputs x 2 pipeline buffers), the two constant
    # operands, the accumulator, plus per-tile f32 intermediates -- with 2x headroom.
    win_b = tile_rows * W * 2
    inter_b = tf * (2 * NF) * 4 * 2 + tf * NF * 4 * 2 + tf * NM * 4 * 4
    est = (2 * 2 * win_b + 2 * basis.size * 2 + 2 * mel_fb.size * 2
           + 2 * 8 * NM * 4 + inter_b)
    vmem_limit = int(min(max(2 * est, 32 * 1024 * 1024), 64 * 1024 * 1024))

    out = pl.pallas_call(
        kernel,
        out_shape=jax.ShapeDtypeStruct((B, 8, NM), jnp.float32),
        grid_spec=pltpu.PrefetchScalarGridSpec(
            num_scalar_prefetch=0,
            grid=(B, n_tiles),
            in_specs=[
                # per-tile window slabs, streamed over the frame-tile axis
                pl.BlockSpec((1, 1, tile_rows, W), lambda b, f: (b, f, 0, 0)),
                pl.BlockSpec((1, 1, tile_rows, W), lambda b, f: (b, f, 0, 0)),
                # constant operands (resident; index never changes)
                pl.BlockSpec((n_fft, two_nf), lambda b, f: (0, 0)),
                pl.BlockSpec((NF, NM), lambda b, f: (0, 0)),
            ],
            out_specs=pl.BlockSpec((1, 8, NM), lambda b, f: (b, 0, 0)),
        ),
        compiler_params=pltpu.CompilerParams(
            dimension_semantics=("parallel", "arbitrary"),
            vmem_limit_bytes=vmem_limit,
        ),
    )(xw, yw, basis, mel_fb)

    sqd = jnp.sum(out[:, 0, :], axis=-1)
    sqx = jnp.sum(out[:, 1, :], axis=-1)
    abd = jnp.sum(out[:, 2, :], axis=-1)
    return sqd, sqx, abd


def _resolution_stats(x, x_hat, p, eps):
    B, T = x.shape
    n_fft, hop, W, s, r = p["n_fft"], p["hop"], p["W"], p["s"], p["r"]
    n_frames = T // hop + 1
    # Frame-tile size: biggest that fits (sweep tf_max 512..1024 per chip generation).
    tf = min(p["tf_max"], _round_up(n_frames, 8))
    n_tiles = -(-n_frames // tf)
    tile_rows = _round_up(tf + (r - 1) * s, 16)
    xw = _window_slabs(x, n_fft, hop, W, tf, n_tiles, tile_rows)
    yw = _window_slabs(x_hat, n_fft, hop, W, tf, n_tiles, tile_rows)
    sqd, sqx, abd = _mel_loss_stats(xw, yw, p["basis"], p["mel"], p,
                                    tf, n_tiles, n_frames, eps)
    return sqd, sqx, abd, n_frames


# --------------------------------------------------------------------------
# Full multi-resolution loss (one pallas_call per resolution)
# --------------------------------------------------------------------------
def multi_res_mel_loss(x, x_hat, mel_params, eps=1e-7):
    B = x.shape[0]
    total_sc = 0.0
    total_mag = 0.0
    for p in mel_params:
        sqd, sqx, abd, n_frames = _resolution_stats(x, x_hat, p, eps)
        total_sc = total_sc + jnp.mean(jnp.sqrt(sqd) / (jnp.sqrt(sqx) + eps))
        total_mag = total_mag + jnp.sum(abd) / (B * n_frames * p["n_mels"])
    return (total_sc + total_mag) / len(mel_params)


# --------------------------------------------------------------------------
# Pure-JAX f32 reference (full n_freq incl. Nyquist, explicit exp/log as in the
# original module) — used only to validate the kernel.
# --------------------------------------------------------------------------
def _frame_signal(x, n_fft, hop):
    B, T = x.shape
    pad = n_fft // 2
    xp = jnp.pad(x, ((0, 0), (pad, pad)), mode="reflect")
    n_frames = T // hop + 1
    idx = jnp.arange(n_frames)[:, None] * hop + jnp.arange(n_fft)[None, :]
    return xp[:, idx]


def _reference_loss(x, x_hat, mel_params, eps=1e-7):
    total_sc = 0.0
    total_mag = 0.0
    for p in mel_params:
        fx = _frame_signal(x, p["n_fft"], p["hop"])
        fy = _frame_signal(x_hat, p["n_fft"], p["hop"])

        def log_mel(frames):
            re = jnp.einsum("bfk,kq->bfq", frames, p["ref_cos"])
            im = jnp.einsum("bfk,kq->bfq", frames, p["ref_sin"])
            mag = jnp.sqrt(re * re + im * im)
            mel = jnp.einsum("bfq,qm->bfm", mag, p["ref_mel"])
            return jnp.log(jnp.maximum(mel, eps))

        lx, ly = log_mel(fx), log_mel(fy)
        mx, my = jnp.exp(lx), jnp.exp(ly)
        sc = jnp.mean(jnp.sqrt(jnp.sum((mx - my) ** 2, axis=(1, 2)))
                      / (jnp.sqrt(jnp.sum(mx ** 2, axis=(1, 2))) + eps))
        total_sc = total_sc + sc
        total_mag = total_mag + jnp.mean(jnp.abs(lx - ly))
    return (total_sc + total_mag) / len(mel_params)


if __name__ == "__main__":
    # Small, deterministic example.
    B, T = 2, 2048
    mel_configs = [
        dict(n_fft=256, hop=64, n_mels=40, sr=16000),
        dict(n_fft=512, hop=128, n_mels=64, sr=16000),
    ]
    mel_params = build_mel_params(mel_configs)

    key = jax.random.PRNGKey(0)
    k1, k2 = jax.random.split(key)
    x = jax.random.normal(k1, (B, T), dtype=jnp.float32) * 0.1
    x_hat = x + 0.05 * jax.random.normal(k2, (B, T), dtype=jnp.float32)

    loss_fn = jax.jit(lambda a, b: multi_res_mel_loss(a, b, mel_params))
    loss = jax.block_until_ready(loss_fn(x, x_hat))

    ref = jax.block_until_ready(_reference_loss(x, x_hat, mel_params))
    assert np.isfinite(float(loss))
    np.testing.assert_allclose(np.asarray(loss), np.asarray(ref), rtol=5e-2, atol=5e-3)

    print("KERNEL_OK")
</pallas_src>

<mosaic_0001>
module attributes {stable_mosaic.version = 11 : i64} {
  func.func @_mel_loss_kernel(%arg0: i32, %arg1: i32, %arg2: memref<1x1x48x128xbf16, #tpu.memory_space<vmem>>, %arg3: memref<1x1x48x128xbf16, #tpu.memory_space<vmem>>, %arg4: memref<256x256xbf16, #tpu.memory_space<vmem>>, %arg5: memref<128x128xbf16, #tpu.memory_space<vmem>>, %arg6: memref<1x8x128xf32, #tpu.memory_space<vmem>>) attributes {dimension_semantics = [#tpu.dimension_semantics<parallel>, #tpu.dimension_semantics<arbitrary>], iteration_bounds = array<i64: 2, 1>, scalar_prefetch = 0 : i64, scratch_operands = 0 : i64, tpu.core_type = #tpu.core_type<tc>, window_params = [{transform_indices = @transform_0, window_bounds = array<i64: 1, 1, 48, 128>}, {transform_indices = @transform_1, window_bounds = array<i64: 1, 1, 48, 128>}, {pipeline_mode = #tpu.pipeline_mode<synchronous>, transform_indices = @transform_2, window_bounds = array<i64: 256, 256>}, {pipeline_mode = #tpu.pipeline_mode<synchronous>, transform_indices = @transform_3, window_bounds = array<i64: 128, 128>}, {transform_indices = @transform_4, window_bounds = array<i64: 1, 8, 128>}]} {
    %c0_i32 = arith.constant 0 : i32
    %0 = arith.cmpi eq, %arg1, %c0_i32 : i32
    %1 = arith.extui %0 : i1 to i32
    %c0_i32_0 = arith.constant 0 : i32
    %2 = arith.cmpi ne, %1, %c0_i32_0 : i32
    scf.if %2 {
      %cst_43 = arith.constant 0.000000e+00 : f32
      %81 = vector.broadcast %cst_43 : f32 to vector<1x8x128xf32>
      %c0_44 = arith.constant 0 : index
      %c0_45 = arith.constant 0 : index
      %c0_46 = arith.constant 0 : index
      %82 = vector.load %arg6[%c0_44, %c0_45, %c0_46] : memref<1x8x128xf32, #tpu.memory_space<vmem>>, vector<1x8x128xf32>
      tpu.vector_store %arg6[%c0_44, %c0_45, %c0_46], %81 {strides = array<i32>} : memref<1x8x128xf32, #tpu.memory_space<vmem>>, vector<1x8x128xf32>,
    } else {
    }
    %c0 = arith.constant 0 : index
    %c0_1 = arith.constant 0 : index
    %3 = vector.load %arg5[%c0, %c0_1] : memref<128x128xbf16, #tpu.memory_space<vmem>>, vector<128x128xbf16>
    %cst = arith.constant 0.000000e+00 : f32
    %4 = vector.broadcast %cst : f32 to vector<40x256xf32>
    %c0_2 = arith.constant 0 : index
    %c0_3 = arith.constant 0 : index
    %c0_4 = arith.constant 0 : index
    %c0_5 = arith.constant 0 : index
    %5 = vector.load %arg2[%c0_2, %c0_3, %c0_4, %c0_5] : memref<1x1x48x128xbf16, #tpu.memory_space<vmem>>, vector<1x1x40x128xbf16>
    %6 = vector.shape_cast %5 : vector<1x1x40x128xbf16> to vector<40x128xbf16>
    %c0_6 = arith.constant 0 : index
    %c0_7 = arith.constant 0 : index
    %7 = vector.load %arg4[%c0_6, %c0_7] : memref<256x256xbf16, #tpu.memory_space<vmem>>, vector<128x256xbf16>
    %cst_8 = arith.constant dense<0.000000e+00> : vector<40x256xf32>
    %8 = tpu.matmul %6, %7, %cst_8 {dimension_numbers = #tpu.dot_dimension_numbers<[1], [0], [0], [1], [0, 0, 1, 1], [], []>} : vector<40x128xbf16>, vector<128x256xbf16>, vector<40x256xf32> -> vector<40x256xf32>
    %9 = arith.addf %4, %8 : vector<40x256xf32>
    %c0_9 = arith.constant 0 : index
    %c0_10 = arith.constant 0 : index
    %c2 = arith.constant 2 : index
    %c0_11 = arith.constant 0 : index
    %10 = vector.load %arg2[%c0_9, %c0_10, %c2, %c0_11] : memref<1x1x48x128xbf16, #tpu.memory_space<vmem>>, vector<1x1x40x128xbf16>
    %11 = vector.shape_cast %10 : vector<1x1x40x128xbf16> to vector<40x128xbf16>
    %c128 = arith.constant 128 : index
    %c0_12 = arith.constant 0 : index
    %12 = vector.load %arg4[%c128, %c0_12] : memref<256x256xbf16, #tpu.memory_space<vmem>>, vector<128x256xbf16>
    %cst_13 = arith.constant dense<0.000000e+00> : vector<40x256xf32>
    %13 = tpu.matmul %11, %12, %cst_13 {dimension_numbers = #tpu.dot_dimension_numbers<[1], [0], [0], [1], [0, 0, 1, 1], [], []>} : vector<40x128xbf16>, vector<128x256xbf16>, vector<40x256xf32> -> vector<40x256xf32>
    %14 = arith.addf %9, %13 : vector<40x256xf32>
    %15 = vector.extract_strided_slice %14 {offsets = [0, 0], sizes = [40, 128], strides = [1, 1]} : vector<40x256xf32> to vector<40x128xf32>
    %16 = vector.extract_strided_slice %14 {offsets = [0, 128], sizes = [40, 128], strides = [1, 1]} : vector<40x256xf32> to vector<40x128xf32>
    %17 = arith.mulf %15, %15 : vector<40x128xf32>
    %18 = arith.mulf %16, %16 : vector<40x128xf32>
    %19 = arith.addf %17, %18 : vector<40x128xf32>
    %20 = math.sqrt %19 : vector<40x128xf32>
    %21 = arith.truncf %20 : vector<40x128xf32> to vector<40x128xbf16>
    %cst_14 = arith.constant dense<0.000000e+00> : vector<40x128xf32>
    %22 = tpu.matmul %21, %3, %cst_14 {dimension_numbers = #tpu.dot_dimension_numbers<[1], [0], [0], [1], [0, 0, 1, 1], [], []>} : vector<40x128xbf16>, vector<128x128xbf16>, vector<40x128xf32> -> vector<40x128xf32>
    %cst_15 = arith.constant 1.000000e-07 : f32
    %23 = vector.broadcast %cst_15 : f32 to vector<40x128xf32>
    %24 = arith.maximumf %22, %23 : vector<40x128xf32>
    %25 = math.log %24 : vector<40x128xf32>
    %cst_16 = arith.constant 0.000000e+00 : f32
    %26 = vector.broadcast %cst_16 : f32 to vector<40x256xf32>
    %c0_17 = arith.constant 0 : index
    %c0_18 = arith.constant 0 : index
    %c0_19 = arith.constant 0 : index
    %c0_20 = arith.constant 0 : index
    %27 = vector.load %arg3[%c0_17, %c0_18, %c0_19, %c0_20] : memref<1x1x48x128xbf16, #tpu.memory_space<vmem>>, vector<1x1x40x128xbf16>
    %28 = vector.shape_cast %27 : vector<1x1x40x128xbf16> to vector<40x128xbf16>
    %c0_21 = arith.constant 0 : index
    %c0_22 = arith.constant 0 : index
    %29 = vector.load %arg4[%c0_21, %c0_22] : memref<256x256xbf16, #tpu.memory_space<vmem>>, vector<128x256xbf16>
    %cst_23 = arith.constant dense<0.000000e+00> : vector<40x256xf32>
    %30 = tpu.matmul %28, %29, %cst_23 {dimension_numbers = #tpu.dot_dimension_numbers<[1], [0], [0], [1], [0, 0, 1, 1], [], []>} : vector<40x128xbf16>, vector<128x256xbf16>, vector<40x256xf32> -> vector<40x256xf32>
    %31 = arith.addf %26, %30 : vector<40x256xf32>
    %c0_24 = arith.constant 0 : index
    %c0_25 = arith.constant 0 : index
    %c2_26 = arith.constant 2 : index
    %c0_27 = arith.constant 0 : index
    %32 = vector.load %arg3[%c0_24, %c0_25, %c2_26, %c0_27] : memref<1x1x48x128xbf16, #tpu.memory_space<vmem>>, vector<1x1x40x128xbf16>
    %33 = vector.shape_cast %32 : vector<1x1x40x128xbf16> to vector<40x128xbf16>
    %c128_28 = arith.constant 128 : index
    %c0_29 = arith.constant 0 : index
    %34 = vector.load %arg4[%c128_28, %c0_29] : memref<256x256xbf16, #tpu.memory_space<vmem>>, vector<128x256xbf16>
    %cst_30 = arith.constant dense<0.000000e+00> : vector<40x256xf32>
    %35 = tpu.matmul %33, %34, %cst_30 {dimension_numbers = #tpu.dot_dimension_numbers<[1], [0], [0], [1], [0, 0, 1, 1], [], []>} : vector<40x128xbf16>, vector<128x256xbf16>, vector<40x256xf32> -> vector<40x256xf32>
    %36 = arith.addf %31, %35 : vector<40x256xf32>
    %37 = vector.extract_strided_slice %36 {offsets = [0, 0], sizes = [40, 128], strides = [1, 1]} : vector<40x256xf32> to vector<40x128xf32>
    %38 = vector.extract_strided_slice %36 {offsets = [0, 128], sizes = [40, 128], strides = [1, 1]} : vector<40x256xf32> to vector<40x128xf32>
    %39 = arith.mulf %37, %37 : vector<40x128xf32>
    %40 = arith.mulf %38, %38 : vector<40x128xf32>
    %41 = arith.addf %39, %40 : vector<40x128xf32>
    %42 = math.sqrt %41 : vector<40x128xf32>
    %43 = arith.truncf %42 : vector<40x128xf32> to vector<40x128xbf16>
    %cst_31 = arith.constant dense<0.000000e+00> : vector<40x128xf32>
    %44 = tpu.matmul %43, %3, %cst_31 {dimension_numbers = #tpu.dot_dimension_numbers<[1], [0], [0], [1], [0, 0, 1, 1], [], []>} : vector<40x128xbf16>, vector<128x128xbf16>, vector<40x128xf32> -> vector<40x128xf32>
    %cst_32 = arith.constant 1.000000e-07 : f32
    %45 = vector.broadcast %cst_32 : f32 to vector<40x128xf32>
    %46 = arith.maximumf %44, %45 : vector<40x128xf32>
    %47 = math.log %46 : vector<40x128xf32>
    %48 = tpu.iota {dimensions = array<i32: 0>} : vector<40x1xi32>
    %c40_i32 = arith.constant 40 : i32
    %49 = arith.muli %arg1, %c40_i32 : i32
    %50 = vector.broadcast %49 : i32 to vector<40x1xi32>
    %51 = arith.addi %48, %50 : vector<40x1xi32>
    %c33_i32 = arith.constant 33 : i32
    %52 = vector.broadcast %c33_i32 : i32 to vector<40x1xi32>
    %53 = arith.cmpi slt, %51, %52 : vector<40x1xi32>
    %54 = arith.extui %53 : vector<40x1xi1> to vector<40x1xi32>
    %55 = arith.sitofp %54 : vector<40x1xi32> to vector<40x1xf32>
    %56 = arith.subf %24, %46 : vector<40x128xf32>
    %57 = arith.mulf %56, %56 : vector<40x128xf32>
    %58 = vector.broadcast %55 : vector<40x1xf32> to vector<40x128xf32>
    %59 = arith.mulf %58, %57 : vector<40x128xf32>
    %cst_33 = arith.constant dense<0.000000e+00> : vector<128xf32>
    %60 = vector.multi_reduction <add>, %59, %cst_33 [0] : vector<40x128xf32> to vector<128xf32>
    %61 = vector.shape_cast %60 : vector<128xf32> to vector<1x128xf32>
    %62 = arith.mulf %24, %24 : vector<40x128xf32>
    %63 = vector.broadcast %55 : vector<40x1xf32> to vector<40x128xf32>
    %64 = arith.mulf %63, %62 : vector<40x128xf32>
    %cst_34 = arith.constant dense<0.000000e+00> : vector<128xf32>
    %65 = vector.multi_reduction <add>, %64, %cst_34 [0] : vector<40x128xf32> to vector<128xf32>
    %66 = vector.shape_cast %65 : vector<128xf32> to vector<1x128xf32>
    %67 = arith.subf %25, %47 : vector<40x128xf32>
    %68 = math.absf %67 : vector<40x128xf32>
    %69 = vector.broadcast %55 : vector<40x1xf32> to vector<40x128xf32>
    %70 = arith.mulf %69, %68 : vector<40x128xf32>
    %cst_35 = arith.constant dense<0.000000e+00> : vector<128xf32>
    %71 = vector.multi_reduction <add>, %70, %cst_35 [0] : vector<40x128xf32> to vector<128xf32>
    %72 = vector.shape_cast %71 : vector<128xf32> to vector<1x128xf32>
    %cst_36 = arith.constant 0.000000e+00 : f32
    %73 = vector.broadcast %cst_36 : f32 to vector<5x128xf32>
    %74 = tpu.concatenate %61, %66, %72, %73 in 0 : vector<1x128xf32>, vector<1x128xf32>, vector<1x128xf32>, vector<5x128xf32> -> vector<8x128xf32>
    %c0_37 = arith.constant 0 : index
    %c0_38 = arith.constant 0 : index
    %c0_39 = arith.constant 0 : index
    %75 = vector.load %arg6[%c0_37, %c0_38, %c0_39] : memref<1x8x128xf32, #tpu.memory_space<vmem>>, vector<1x8x128xf32>
    %76 = vector.shape_cast %75 : vector<1x8x128xf32> to vector<8x128xf32>
    %77 = arith.addf %76, %74 : vector<8x128xf32>
    %c0_40 = arith.constant 0 : index
    %c0_41 = arith.constant 0 : index
    %c0_42 = arith.constant 0 : index
    %78 = vector.load %arg6[%c0_40, %c0_41, %c0_42] : memref<1x8x128xf32, #tpu.memory_space<vmem>>, vector<1x8x128xf32>
    %79 = vector.shape_cast %78 : vector<1x8x128xf32> to vector<8x128xf32>
    %80 = vector.shape_cast %77 : vector<8x128xf32> to vector<1x8x128xf32>
    tpu.vector_store %arg6[%c0_40, %c0_41, %c0_42], %80 {strides = array<i32>} : memref<1x8x128xf32, #tpu.memory_space<vmem>>, vector<1x8x128xf32>,
    return
  }
  func.func @transform_0(%arg0: i32, %arg1: i32) -> (i32, i32, i32, i32) {
    %c0_i32 = arith.constant 0 : i32
    %c0_i32_0 = arith.constant 0 : i32
    %c0_i32_1 = arith.constant 0 : i32
    return %arg0, %arg1, %c0_i32, %c0_i32_0 : i32, i32, i32, i32
  }
  func.func @transform_1(%arg0: i32, %arg1: i32) -> (i32, i32, i32, i32) {
    %c0_i32 = arith.constant 0 : i32
    %c0_i32_0 = arith.constant 0 : i32
    %c0_i32_1 = arith.constant 0 : i32
    return %arg0, %arg1, %c0_i32, %c0_i32_0 : i32, i32, i32, i32
  }
  func.func @transform_2(%arg0: i32, %arg1: i32) -> (i32, i32) {
    %c0_i32 = arith.constant 0 : i32
    %c0_i32_0 = arith.constant 0 : i32
    %c0_i32_1 = arith.constant 0 : i32
    return %c0_i32, %c0_i32_0 : i32, i32
  }
  func.func @transform_3(%arg0: i32, %arg1: i32) -> (i32, i32) {
    %c0_i32 = arith.constant 0 : i32
    %c0_i32_0 = arith.constant 0 : i32
    %c0_i32_1 = arith.constant 0 : i32
    return %c0_i32, %c0_i32_0 : i32, i32
  }
  func.func @transform_4(%arg0: i32, %arg1: i32) -> (i32, i32, i32) {
    %c0_i32 = arith.constant 0 : i32
    %c0_i32_0 = arith.constant 0 : i32
    %c0_i32_1 = arith.constant 0 : i32
    return %arg0, %c0_i32, %c0_i32_0 : i32, i32, i32
  }
}

module attributes {stable_mosaic.version = 11 : i64} {
  func.func @_mel_loss_kernel(%arg0: i32, %arg1: i32, %arg2: memref<1x1x32x128xbf16, #tpu.memory_space<vmem>>, %arg3: memref<1x1x32x128xbf16, #tpu.memory_space<vmem>>, %arg4: memref<512x512xbf16, #tpu.memory_space<vmem>>, %arg5: memref<256x128xbf16, #tpu.memory_space<vmem>>, %arg6: memref<1x8x128xf32, #tpu.memory_space<vmem>>) attributes {dimension_semantics = [#tpu.dimension_semantics<parallel>, #tpu.dimension_semantics<arbitrary>], iteration_bounds = array<i64: 2, 1>, scalar_prefetch = 0 : i64, scratch_operands = 0 : i64, tpu.core_type = #tpu.core_type<tc>, window_params = [{transform_indices = @transform_0, window_bounds = array<i64: 1, 1, 32, 128>}, {transform_indices = @transform_1, window_bounds = array<i64: 1, 1, 32, 128>}, {pipeline_mode = #tpu.pipeline_mode<synchronous>, transform_indices = @transform_2, window_bounds = array<i64: 512, 512>}, {pipeline_mode = #tpu.pipeline_mode<synchronous>, transform_indices = @transform_3, window_bounds = array<i64: 256, 128>}, {transform_indices = @transform_4, window_bounds = array<i64: 1, 8, 128>}]} {
    %c0_i32 = arith.constant 0 : i32
    %0 = arith.cmpi eq, %arg1, %c0_i32 : i32
    %1 = arith.extui %0 : i1 to i32
    %c0_i32_0 = arith.constant 0 : i32
    %2 = arith.cmpi ne, %1, %c0_i32_0 : i32
    scf.if %2 {
      %cst_67 = arith.constant 0.000000e+00 : f32
      %101 = vector.broadcast %cst_67 : f32 to vector<1x8x128xf32>
      %c0_68 = arith.constant 0 : index
      %c0_69 = arith.constant 0 : index
      %c0_70 = arith.constant 0 : index
      %102 = vector.load %arg6[%c0_68, %c0_69, %c0_70] : memref<1x8x128xf32, #tpu.memory_space<vmem>>, vector<1x8x128xf32>
      tpu.vector_store %arg6[%c0_68, %c0_69, %c0_70], %101 {strides = array<i32>} : memref<1x8x128xf32, #tpu.memory_space<vmem>>, vector<1x8x128xf32>,
    } else {
    }
    %c0 = arith.constant 0 : index
    %c0_1 = arith.constant 0 : index
    %3 = vector.load %arg5[%c0, %c0_1] : memref<256x128xbf16, #tpu.memory_space<vmem>>, vector<256x128xbf16>
    %cst = arith.constant 0.000000e+00 : f32
    %4 = vector.broadcast %cst : f32 to vector<24x512xf32>
    %c0_2 = arith.constant 0 : index
    %c0_3 = arith.constant 0 : index
    %c0_4 = arith.constant 0 : index
    %c0_5 = arith.constant 0 : index
    %5 = vector.load %arg2[%c0_2, %c0_3, %c0_4, %c0_5] : memref<1x1x32x128xbf16, #tpu.memory_space<vmem>>, vector<1x1x24x128xbf16>
    %6 = vector.shape_cast %5 : vector<1x1x24x128xbf16> to vector<24x128xbf16>
    %c0_6 = arith.constant 0 : index
    %c0_7 = arith.constant 0 : index
    %7 = vector.load %arg4[%c0_6, %c0_7] : memref<512x512xbf16, #tpu.memory_space<vmem>>, vector<128x512xbf16>
    %cst_8 = arith.constant dense<0.000000e+00> : vector<24x512xf32>
    %8 = tpu.matmul %6, %7, %cst_8 {dimension_numbers = #tpu.dot_dimension_numbers<[1], [0], [0], [1], [0, 0, 1, 1], [], []>} : vector<24x128xbf16>, vector<128x512xbf16>, vector<24x512xf32> -> vector<24x512xf32>
    %9 = arith.addf %4, %8 : vector<24x512xf32>
    %c0_9 = arith.constant 0 : index
    %c0_10 = arith.constant 0 : index
    %c1 = arith.constant 1 : index
    %c0_11 = arith.constant 0 : index
    %10 = vector.load %arg2[%c0_9, %c0_10, %c1, %c0_11] : memref<1x1x32x128xbf16, #tpu.memory_space<vmem>>, vector<1x1x24x128xbf16>
    %11 = vector.shape_cast %10 : vector<1x1x24x128xbf16> to vector<24x128xbf16>
    %c128 = arith.constant 128 : index
    %c0_12 = arith.constant 0 : index
    %12 = vector.load %arg4[%c128, %c0_12] : memref<512x512xbf16, #tpu.memory_space<vmem>>, vector<128x512xbf16>
    %cst_13 = arith.constant dense<0.000000e+00> : vector<24x512xf32>
    %13 = tpu.matmul %11, %12, %cst_13 {dimension_numbers = #tpu.dot_dimension_numbers<[1], [0], [0], [1], [0, 0, 1, 1], [], []>} : vector<24x128xbf16>, vector<128x512xbf16>, vector<24x512xf32> -> vector<24x512xf32>
    %14 = arith.addf %9, %13 : vector<24x512xf32>
    %c0_14 = arith.constant 0 : index
    %c0_15 = arith.constant 0 : index
    %c2 = arith.constant 2 : index
    %c0_16 = arith.constant 0 : index
    %15 = vector.load %arg2[%c0_14, %c0_15, %c2, %c0_16] : memref<1x1x32x128xbf16, #tpu.memory_space<vmem>>, vector<1x1x24x128xbf16>
    %16 = vector.shape_cast %15 : vector<1x1x24x128xbf16> to vector<24x128xbf16>
    %c256 = arith.constant 256 : index
    %c0_17 = arith.constant 0 : index
    %17 = vector.load %arg4[%c256, %c0_17] : memref<512x512xbf16, #tpu.memory_space<vmem>>, vector<128x512xbf16>
    %cst_18 = arith.constant dense<0.000000e+00> : vector<24x512xf32>
    %18 = tpu.matmul %16, %17, %cst_18 {dimension_numbers = #tpu.dot_dimension_numbers<[1], [0], [0], [1], [0, 0, 1, 1], [], []>} : vector<24x128xbf16>, vector<128x512xbf16>, vector<24x512xf32> -> vector<24x512xf32>
    %19 = arith.addf %14, %18 : vector<24x512xf32>
    %c0_19 = arith.constant 0 : index
    %c0_20 = arith.constant 0 : index
    %c3 = arith.constant 3 : index
    %c0_21 = arith.constant 0 : index
    %20 = vector.load %arg2[%c0_19, %c0_20, %c3, %c0_21] : memref<1x1x32x128xbf16, #tpu.memory_space<vmem>>, vector<1x1x24x128xbf16>
    %21 = vector.shape_cast %20 : vector<1x1x24x128xbf16> to vector<24x128xbf16>
    %c384 = arith.constant 384 : index
    %c0_22 = arith.constant 0 : index
    %22 = vector.load %arg4[%c384, %c0_22] : memref<512x512xbf16, #tpu.memory_space<vmem>>, vector<128x512xbf16>
    %cst_23 = arith.constant dense<0.000000e+00> : vector<24x512xf32>
    %23 = tpu.matmul %21, %22, %cst_23 {dimension_numbers = #tpu.dot_dimension_numbers<[1], [0], [0], [1], [0, 0, 1, 1], [], []>} : vector<24x128xbf16>, vector<128x512xbf16>, vector<24x512xf32> -> vector<24x512xf32>
    %24 = arith.addf %19, %23 : vector<24x512xf32>
    %25 = vector.extract_strided_slice %24 {offsets = [0, 0], sizes = [24, 256], strides = [1, 1]} : vector<24x512xf32> to vector<24x256xf32>
    %26 = vector.extract_strided_slice %24 {offsets = [0, 256], sizes = [24, 256], strides = [1, 1]} : vector<24x512xf32> to vector<24x256xf32>
    %27 = arith.mulf %25, %25 : vector<24x256xf32>
    %28 = arith.mulf %26, %26 : vector<24x256xf32>
    %29 = arith.addf %27, %28 : vector<24x256xf32>
    %30 = math.sqrt %29 : vector<24x256xf32>
    %31 = arith.truncf %30 : vector<24x256xf32> to vector<24x256xbf16>
    %cst_24 = arith.constant dense<0.000000e+00> : vector<24x128xf32>
    %32 = tpu.matmul %31, %3, %cst_24 {dimension_numbers = #tpu.dot_dimension_numbers<[1], [0], [0], [1], [0, 0, 1, 1], [], []>} : vector<24x256xbf16>, vector<256x128xbf16>, vector<24x128xf32> -> vector<24x128xf32>
    %cst_25 = arith.constant 1.000000e-07 : f32
    %33 = vector.broadcast %cst_25 : f32 to vector<24x128xf32>
    %34 = arith.maximumf %32, %33 : vector<24x128xf32>
    %35 = math.log %34 : vector<24x128xf32>
    %cst_26 = arith.constant 0.000000e+00 : f32
    %36 = vector.broadcast %cst_26 : f32 to vector<24x512xf32>
    %c0_27 = arith.constant 0 : index
    %c0_28 = arith.constant 0 : index
    %c0_29 = arith.constant 0 : index
    %c0_30 = arith.constant 0 : index
    %37 = vector.load %arg3[%c0_27, %c0_28, %c0_29, %c0_30] : memref<1x1x32x128xbf16, #tpu.memory_space<vmem>>, vector<1x1x24x128xbf16>
    %38 = vector.shape_cast %37 : vector<1x1x24x128xbf16> to vector<24x128xbf16>
    %c0_31 = arith.constant 0 : index
    %c0_32 = arith.constant 0 : index
    %39 = vector.load %arg4[%c0_31, %c0_32] : memref<512x512xbf16, #tpu.memory_space<vmem>>, vector<128x512xbf16>
    %cst_33 = arith.constant dense<0.000000e+00> : vector<24x512xf32>
    %40 = tpu.matmul %38, %39, %cst_33 {dimension_numbers = #tpu.dot_dimension_numbers<[1], [0], [0], [1], [0, 0, 1, 1], [], []>} : vector<24x128xbf16>, vector<128x512xbf16>, vector<24x512xf32> -> vector<24x512xf32>
    %41 = arith.addf %36, %40 : vector<24x512xf32>
    %c0_34 = arith.constant 0 : index
    %c0_35 = arith.constant 0 : index
    %c1_36 = arith.constant 1 : index
    %c0_37 = arith.constant 0 : index
    %42 = vector.load %arg3[%c0_34, %c0_35, %c1_36, %c0_37] : memref<1x1x32x128xbf16, #tpu.memory_space<vmem>>, vector<1x1x24x128xbf16>
    %43 = vector.shape_cast %42 : vector<1x1x24x128xbf16> to vector<24x128xbf16>
    %c128_38 = arith.constant 128 : index
    %c0_39 = arith.constant 0 : index
    %44 = vector.load %arg4[%c128_38, %c0_39] : memref<512x512xbf16, #tpu.memory_space<vmem>>, vector<128x512xbf16>
    %cst_40 = arith.constant dense<0.000000e+00> : vector<24x512xf32>
    %45 = tpu.matmul %43, %44, %cst_40 {dimension_numbers = #tpu.dot_dimension_numbers<[1], [0], [0], [1], [0, 0, 1, 1], [], []>} : vector<24x128xbf16>, vector<128x512xbf16>, vector<24x512xf32> -> vector<24x512xf32>
    %46 = arith.addf %41, %45 : vector<24x512xf32>
    %c0_41 = arith.constant 0 : index
    %c0_42 = arith.constant 0 : index
    %c2_43 = arith.constant 2 : index
    %c0_44 = arith.constant 0 : index
    %47 = vector.load %arg3[%c0_41, %c0_42, %c2_43, %c0_44] : memref<1x1x32x128xbf16, #tpu.memory_space<vmem>>, vector<1x1x24x128xbf16>
    %48 = vector.shape_cast %47 : vector<1x1x24x128xbf16> to vector<24x128xbf16>
    %c256_45 = arith.constant 256 : index
    %c0_46 = arith.constant 0 : index
    %49 = vector.load %arg4[%c256_45, %c0_46] : memref<512x512xbf16, #tpu.memory_space<vmem>>, vector<128x512xbf16>
    %cst_47 = arith.constant dense<0.000000e+00> : vector<24x512xf32>
    %50 = tpu.matmul %48, %49, %cst_47 {dimension_numbers = #tpu.dot_dimension_numbers<[1], [0], [0], [1], [0, 0, 1, 1], [], []>} : vector<24x128xbf16>, vector<128x512xbf16>, vector<24x512xf32> -> vector<24x512xf32>
    %51 = arith.addf %46, %50 : vector<24x512xf32>
    %c0_48 = arith.constant 0 : index
    %c0_49 = arith.constant 0 : index
    %c3_50 = arith.constant 3 : index
    %c0_51 = arith.constant 0 : index
    %52 = vector.load %arg3[%c0_48, %c0_49, %c3_50, %c0_51] : memref<1x1x32x128xbf16, #tpu.memory_space<vmem>>, vector<1x1x24x128xbf16>
    %53 = vector.shape_cast %52 : vector<1x1x24x128xbf16> to vector<24x128xbf16>
    %c384_52 = arith.constant 384 : index
    %c0_53 = arith.constant 0 : index
    %54 = vector.load %arg4[%c384_52, %c0_53] : memref<512x512xbf16, #tpu.memory_space<vmem>>, vector<128x512xbf16>
    %cst_54 = arith.constant dense<0.000000e+00> : vector<24x512xf32>
    %55 = tpu.matmul %53, %54, %cst_54 {dimension_numbers = #tpu.dot_dimension_numbers<[1], [0], [0], [1], [0, 0, 1, 1], [], []>} : vector<24x128xbf16>, vector<128x512xbf16>, vector<24x512xf32> -> vector<24x512xf32>
    %56 = arith.addf %51, %55 : vector<24x512xf32>
    %57 = vector.extract_strided_slice %56 {offsets = [0, 0], sizes = [24, 256], strides = [1, 1]} : vector<24x512xf32> to vector<24x256xf32>
    %58 = vector.extract_strided_slice %56 {offsets = [0, 256], sizes = [24, 256], strides = [1, 1]} : vector<24x512xf32> to vector<24x256xf32>
    %59 = arith.mulf %57, %57 : vector<24x256xf32>
    %60 = arith.mulf %58, %58 : vector<24x256xf32>
    %61 = arith.addf %59, %60 : vector<24x256xf32>
    %62 = math.sqrt %61 : vector<24x256xf32>
    %63 = arith.truncf %62 : vector<24x256xf32> to vector<24x256xbf16>
    %cst_55 = arith.constant dense<0.000000e+00> : vector<24x128xf32>
    %64 = tpu.matmul %63, %3, %cst_55 {dimension_numbers = #tpu.dot_dimension_numbers<[1], [0], [0], [1], [0, 0, 1, 1], [], []>} : vector<24x256xbf16>, vector<256x128xbf16>, vector<24x128xf32> -> vector<24x128xf32>
    %cst_56 = arith.constant 1.000000e-07 : f32
    %65 = vector.broadcast %cst_56 : f32 to vector<24x128xf32>
    %66 = arith.maximumf %64, %65 : vector<24x128xf32>
    %67 = math.log %66 : vector<24x128xf32>
    %68 = tpu.iota {dimensions = array<i32: 0>} : vector<24x1xi32>
    %c24_i32 = arith.constant 24 : i32
    %69 = arith.muli %arg1, %c24_i32 : i32
    %70 = vector.broadcast %69 : i32 to vector<24x1xi32>
    %71 = arith.addi %68, %70 : vector<24x1xi32>
    %c17_i32 = arith.constant 17 : i32
    %72 = vector.broadcast %c17_i32 : i32 to vector<24x1xi32>
    %73 = arith.cmpi slt, %71, %72 : vector<24x1xi32>
    %74 = arith.extui %73 : vector<24x1xi1> to vector<24x1xi32>
    %75 = arith.sitofp %74 : vector<24x1xi32> to vector<24x1xf32>
    %76 = arith.subf %34, %66 : vector<24x128xf32>
    %77 = arith.mulf %76, %76 : vector<24x128xf32>
    %78 = vector.broadcast %75 : vector<24x1xf32> to vector<24x128xf32>
    %79 = arith.mulf %78, %77 : vector<24x128xf32>
    %cst_57 = arith.constant dense<0.000000e+00> : vector<128xf32>
    %80 = vector.multi_reduction <add>, %79, %cst_57 [0] : vector<24x128xf32> to vector<128xf32>
    %81 = vector.shape_cast %80 : vector<128xf32> to vector<1x128xf32>
    %82 = arith.mulf %34, %34 : vector<24x128xf32>
    %83 = vector.broadcast %75 : vector<24x1xf32> to vector<24x128xf32>
    %84 = arith.mulf %83, %82 : vector<24x128xf32>
    %cst_58 = arith.constant dense<0.000000e+00> : vector<128xf32>
    %85 = vector.multi_reduction <add>, %84, %cst_58 [0] : vector<24x128xf32> to vector<128xf32>
    %86 = vector.shape_cast %85 : vector<128xf32> to vector<1x128xf32>
    %87 = arith.subf %35, %67 : vector<24x128xf32>
    %88 = math.absf %87 : vector<24x128xf32>
    %89 = vector.broadcast %75 : vector<24x1xf32> to vector<24x128xf32>
    %90 = arith.mulf %89, %88 : vector<24x128xf32>
    %cst_59 = arith.constant dense<0.000000e+00> : vector<128xf32>
    %91 = vector.multi_reduction <add>, %90, %cst_59 [0] : vector<24x128xf32> to vector<128xf32>
    %92 = vector.shape_cast %91 : vector<128xf32> to vector<1x128xf32>
    %cst_60 = arith.constant 0.000000e+00 : f32
    %93 = vector.broadcast %cst_60 : f32 to vector<5x128xf32>
    %94 = tpu.concatenate %81, %86, %92, %93 in 0 : vector<1x128xf32>, vector<1x128xf32>, vector<1x128xf32>, vector<5x128xf32> -> vector<8x128xf32>
    %c0_61 = arith.constant 0 : index
    %c0_62 = arith.constant 0 : index
    %c0_63 = arith.constant 0 : index
    %95 = vector.load %arg6[%c0_61, %c0_62, %c0_63] : memref<1x8x128xf32, #tpu.memory_space<vmem>>, vector<1x8x128xf32>
    %96 = vector.shape_cast %95 : vector<1x8x128xf32> to vector<8x128xf32>
    %97 = arith.addf %96, %94 : vector<8x128xf32>
    %c0_64 = arith.constant 0 : index
    %c0_65 = arith.constant 0 : index
    %c0_66 = arith.constant 0 : index
    %98 = vector.load %arg6[%c0_64, %c0_65, %c0_66] : memref<1x8x128xf32, #tpu.memory_space<vmem>>, vector<1x8x128xf32>
    %99 = vector.shape_cast %98 : vector<1x8x128xf32> to vector<8x128xf32>
    %100 = vector.shape_cast %97 : vector<8x128xf32> to vector<1x8x128xf32>
    tpu.vector_store %arg6[%c0_64, %c0_65, %c0_66], %100 {strides = array<i32>} : memref<1x8x128xf32, #tpu.memory_space<vmem>>, vector<1x8x128xf32>,
    return
  }
  func.func @transform_0(%arg0: i32, %arg1: i32) -> (i32, i32, i32, i32) {
    %c0_i32 = arith.constant 0 : i32
    %c0_i32_0 = arith.constant 0 : i32
    %c0_i32_1 = arith.constant 0 : i32
    return %arg0, %arg1, %c0_i32, %c0_i32_0 : i32, i32, i32, i32
  }
  func.func @transform_1(%arg0: i32, %arg1: i32) -> (i32, i32, i32, i32) {
    %c0_i32 = arith.constant 0 : i32
    %c0_i32_0 = arith.constant 0 : i32
    %c0_i32_1 = arith.constant 0 : i32
    return %arg0, %arg1, %c0_i32, %c0_i32_0 : i32, i32, i32, i32
  }
  func.func @transform_2(%arg0: i32, %arg1: i32) -> (i32, i32) {
    %c0_i32 = arith.constant 0 : i32
    %c0_i32_0 = arith.constant 0 : i32
    %c0_i32_1 = arith.constant 0 : i32
    return %c0_i32, %c0_i32_0 : i32, i32
  }
  func.func @transform_3(%arg0: i32, %arg1: i32) -> (i32, i32) {
    %c0_i32 = arith.constant 0 : i32
    %c0_i32_0 = arith.constant 0 : i32
    %c0_i32_1 = arith.constant 0 : i32
    return %c0_i32, %c0_i32_0 : i32, i32
  }
  func.func @transform_4(%arg0: i32, %arg1: i32) -> (i32, i32, i32) {
    %c0_i32 = arith.constant 0 : i32
    %c0_i32_0 = arith.constant 0 : i32
    %c0_i32_1 = arith.constant 0 : i32
    return %arg0, %c0_i32, %c0_i32_0 : i32, i32, i32
  }
}

</mosaic_0001>

<bundles_post_ra>
// kernel: _lambda_.2
= control target key start
LH: loop header
LB: loop body
LE: loop exit
PB: predicated region body
PF: predicated region fallthrough
CT: control target
= control target key end

     0   :  { %s1625_s15 = smov 0   ;;  %s1627_s16 = smov 0   ;;  %s2132_s0 = inlined_call_operand.vmem [shape: bf16[2,1,48,128], index: 0, kind: input, shape index: {}]   ;;  %s2133_s1 = inlined_call_operand.vmem [shape: bf16[2,1,48,128], index: 1, kind: input, shape index: {}]   ;;  %s2134_s2 = inlined_call_operand.vmem [shape: bf16[256,256], index: 2, kind: input, shape index: {}]   ;;  %s2135_s3 = inlined_call_operand.vmem [shape: bf16[128,128], index: 3, kind: input, shape index: {}]   ;;  %s2136_s4 = inlined_call_operand.vmem [shape: f32[2,8,128], index: 4, kind: output, shape index: {}]  }
   0x1   :  { %s1629_s17 = smov 0  }
   0x2 LB: > { %s26_s18 = sadd.s32 1, %s1593_s16  ;;  %p1236_p0 = scmp.ge.s32.totalorder %s1597_s17, 1  ;;  %s1597_s17 = sphi %s1629_s17, %s14_s17   ;;  %s1593_s16 = sphi %s1627_s16, %s2138_s16   ;;  %s1589_s15 = sphi %s1625_s15, %s2137_s15  }
   0x3   : > { %p28_p1 = scmp.ge.s32.totalorder %s26_s18, 2  ;;  %p196_p2 = scmp.lt.s32.totalorder %s1597_s17, 3 }
   0x5   : > { %s2140_s18 = smov (%p28_p1, %s26_s18), 0  ;;  %p197_p3 = pnand %p1236_p0, %p196_p2 }
   0x6   : > { %p234_p4 = scmp.lt.s32.totalorder (!%p197_p3), %s1589_s15, 1 }
   0x7   : > { %200 = sbr.rel (%p197_p3) target bundleno = 651 (0x28b), region = 36 }
   0xc   : > { %v1310_v0 = vld [vmem:[%s2134_s2 + $0xf0] sm:$0xf]  ;;  %v1487_v1 = vld [vmem:[%s2134_s2 + $0xf4] sm:$0xf0]  ;;  %v1486_v2 = vld [vmem:[%s2134_s2 + $0xf4] sm:$0xf] }
   0xd   : > { %v1654_v3 = vor.u32 %v1487_v1, %v1310_v0  ;;  %v1312_v4 = vld [vmem:[%s2134_s2 + $0xf8] sm:$0xf0]  ;;  %v1302_v5 = vld [vmem:[%s2134_s2 + $0xe0] sm:$0xf]  ;;  %v1485_v6 = vld [vmem:[%s2134_s2 + $0xe4] sm:$0xf0] }
   0xe   : > { %v1665_v7 = vor.u32 %v1486_v2, %v1312_v4  ;;  %v1484_v8 = vld [vmem:[%s2134_s2 + $0xe4] sm:$0xf]  ;;  %v1304_v9 = vld [vmem:[%s2134_s2 + $0xe8] sm:$0xf0]  ;;  %v1674_v10 = vor.u32 %v1485_v6, %v1302_v5  ;;  %v1294_v12 = vld [vmem:[%s2134_s2 + $0xd0] sm:$0xf] }
   0xf   : > { %1493 = vmatpush.bf16.msra.mxu2 %v1654_v3  ;;  %424 = vmatpush.bf16.msra.mxu0 %v1654_v3  ;;  %v1678_v11 = vor.u32 %v1484_v8, %v1304_v9  ;;  %v1483_v13 = vld [vmem:[%s2134_s2 + $0xd4] sm:$0xf0]  ;;  %v1482_v14 = vld [vmem:[%s2134_s2 + $0xd4] sm:$0xf]  ;;  %v1296_v15 = vld [vmem:[%s2134_s2 + $0xd8] sm:$0xf0] }
  0x10   : > { %1501 = vmatpush.bf16.msra.mxu3 %v1665_v7  ;;  %447 = vmatpush.bf16.msra.mxu1 %v1665_v7  ;;  %v1694_v16 = vor.u32 %v1483_v13, %v1294_v12  ;;  %v1698_v17 = vor.u32 %v1482_v14, %v1296_v15  ;;  %v1286_v18 = vld [vmem:[%s2134_s2 + $0xc0] sm:$0xf]  ;;  %v1481_v19 = vld [vmem:[%s2134_s2 + $0xc4] sm:$0xf0]  ;;  %v1480_v20 = vld [vmem:[%s2134_s2 + $0xc4] sm:$0xf] }
  0x11   : > { %v1288_v21 = vld [vmem:[%s2134_s2 + $0xc8] sm:$0xf0]  ;;  %v1714_v22 = vor.u32 %v1481_v19, %v1286_v18  ;;  %v1278_v24 = vld [vmem:[%s2134_s2 + $0xb0] sm:$0xf]  ;;  %v1479_v25 = vld [vmem:[%s2134_s2 + $0xb4] sm:$0xf0] }
  0x12   : > { %v1718_v23 = vor.u32 %v1480_v20, %v1288_v21  ;;  %v1478_v26 = vld [vmem:[%s2134_s2 + $0xb4] sm:$0xf]  ;;  %v1280_v27 = vld [vmem:[%s2134_s2 + $0xb8] sm:$0xf0]  ;;  %v1735_v28 = vor.u32 %v1479_v25, %v1278_v24  ;;  %s2142_s15 = smov (!%p234_p4, %s1589_s15), 1  ;;  %vm335_vm0 = vcmask 1046528  }
  0x13   : > { %1494 = vmatpush.bf16.msra.mxu2 %v1674_v10  ;;  %425 = vmatpush.bf16.msra.mxu0 %v1674_v10  ;;  %v1742_v29 = vor.u32 %v1478_v26, %v1280_v27  ;;  %v1270_v30 = vld [vmem:[%s2134_s2 + $0xa0] sm:$0xf]  ;;  %v1477_v31 = vld [vmem:[%s2134_s2 + $0xa4] sm:$0xf0]  ;;  %v1476_v32 = vld [vmem:[%s2134_s2 + $0xa4] sm:$0xf] }
  0x14   : > { %1502 = vmatpush.bf16.msra.mxu3 %v1678_v11  ;;  %448 = vmatpush.bf16.msra.mxu1 %v1678_v11  ;;  %v1272_v33 = vld [vmem:[%s2134_s2 + $0xa8] sm:$0xf0]  ;;  %s1509_s23 = smul.u32 24, %s2142_s15  ;;  %v1759_v34 = vor.u32 %v1477_v31, %v1270_v30  ;;  %v1262_v36 = vld [vmem:[%s2134_s2 + $0x90] sm:$0xf] }
  0x15   : > { %v1763_v35 = vor.u32 %v1476_v32, %v1272_v33  ;;  %v1475_v37 = vld [vmem:[%s2134_s2 + $0x94] sm:$0xf0]  ;;  %v1474_v38 = vld [vmem:[%s2134_s2 + $0x94] sm:$0xf]  ;;  %v1264_v39 = vld [vmem:[%s2134_s2 + $0x98] sm:$0xf0] }
  0x16   : > { %s1776_s30 = scalar_lea.vmem %s2132_s0, %s1509_s23  ;;  %v1254_v40 = vld [vmem:[%s2134_s2 + $0x80] sm:$0xf]  ;;  %v1473_v41 = vld [vmem:[%s2134_s2 + $0x84] sm:$0xf0]  ;;  %v1792_v42 = vor.u32 %v1475_v37, %v1262_v36  ;;  %v1472_v43 = vld [vmem:[%s2134_s2 + $0x84] sm:$0xf]  ;;  %v1801_v46 = vor.u32 %v1474_v38, %v1264_v39  ;;  %s2036_s22 = scalar_lea.vmem %s2133_s1, %s1509_s23 }
  0x17   : > { %1495 = vmatpush.bf16.msra.mxu2 %v1694_v16  ;;  %426 = vmatpush.bf16.msra.mxu0 %v1694_v16  ;;  %v1250_v44 = vld [vmem:[%s1776_s30 + $0x10] sm:$0xf]  ;;  %v1471_v45 = vld [vmem:[%s1776_s30 + $0x10] sm:$0x10]  ;;  %v1256_v47 = vld [vmem:[%s2134_s2 + $0x88] sm:$0xf0]  ;;  %v1825_v57 = vor.u32 %v1473_v41, %v1254_v40 }
  0x18   : > { %1503 = vmatpush.bf16.msra.mxu3 %v1698_v17  ;;  %449 = vmatpush.bf16.msra.mxu1 %v1698_v17  ;;  %v1242_v48 = vld [vmem:[%s1776_s30] sm:$0xe]  ;;  %v1469_v49 = vld [vmem:[%s1776_s30] sm:$0xf0]  ;;  %v1382_v50 = vld [vmem:[%s2134_s2 + $0x70] sm:$0xf]  ;;  %v1251_v56 = vor.u32 %v1471_v45, %v1250_v44  ;;  %v1830_v60 = vor.u32 %v1472_v43, %v1256_v47 }
  0x19   : > { %v1468_v51 = vld [vmem:[%s2134_s2 + $0x74] sm:$0xf0]  ;;  %v1816_v52 = vld [vmem:[%s1776_s30 + $0x8] sm:$0xff]  ;;  %v1243_v53 = vor.u32 %v1469_v49, %v1242_v48  ;;  %v1467_v54 = vld [vmem:[%s2134_s2 + $0x74] sm:$0xf]  ;;  %s1239_s23 = sshll.u32 %s2142_s15, 3 }
  0x1a   : > { %v1384_v55 = vld [vmem:[%s2134_s2 + $0x78] sm:$0xf0]  ;;  %v337_v59 = vrot.slane %v1816_v52, 1  ;;  %v1832_v61 = vor.u32 %v1468_v51, %v1382_v50  ;;  %v1374_v63 = vld [vmem:[%s2134_s2 + $0x60] sm:$0xf]  ;;  %v339_v4 = vrot.slane %v1251_v56, 1  ;;  %s255_s26 = scalar_lea.vmem %s2136_s4, %s1239_s23 }
  0x1b   : > { %1496 = vmatpush.bf16.msra.mxu2 %v1714_v22  ;;  %427 = vmatpush.bf16.msra.mxu0 %v1714_v22  ;;  %v336_v58 = vrot.slane %v1243_v53, 1  ;;  %v1835_v62 = vor.u32 %v1467_v54, %v1384_v55  ;;  %v1466_v0 = vld [vmem:[%s2134_s2 + $0x64] sm:$0xf0]  ;;  %v1465_v1 = vld [vmem:[%s2134_s2 + $0x64] sm:$0xf] }
  0x1c   : > { %1504 = vmatpush.bf16.msra.mxu3 %v1718_v23  ;;  %450 = vmatpush.bf16.msra.mxu1 %v1718_v23  ;;  %v1376_v2 = vld [vmem:[%s2134_s2 + $0x68] sm:$0xf0]  ;;  %v1854_v6 = vor.u32 %v1466_v0, %v1374_v63  ;;  %v1366_v9 = vld [vmem:[%s2134_s2 + $0x50] sm:$0xf]  ;;  %v1464_v12 = vld [vmem:[%s2134_s2 + $0x54] sm:$0xf0]  ;;  %v340_v38 = vsel %vm335_vm0, %v337_v59, %v339_v4 }
  0x1d   : > { %v338_v5 = vsel %vm335_vm0, %v336_v58, %v337_v59  ;;  %v1857_v8 = vor.u32 %v1465_v1, %v1376_v2  ;;  %v1463_v13 = vld [vmem:[%s2134_s2 + $0x54] sm:$0xf]  ;;  %v1368_v14 = vld [vmem:[%s2134_s2 + $0x58] sm:$0xf0]  ;;  %v1874_v15 = vor.u32 %v1464_v12, %v1366_v9  ;;  %v1358_v19 = vld [vmem:[%s2134_s2 + $0x40] sm:$0xf] }
  0x1e   : > { %v1877_v18 = vor.u32 %v1463_v13, %v1368_v14  ;;  %v1462_v20 = vld [vmem:[%s2134_s2 + $0x44] sm:$0xf0]  ;;  %v1360_v21 = vld [vmem:[%s2134_s2 + $0x48] sm:$0xf0]  ;;  %v1350_v26 = vld [vmem:[%s2134_s2 + $0x30] sm:$0xf] }
  0x1f   : > { %1497 = vmatpush.bf16.msra.mxu2 %v1735_v28  ;;  %428 = vmatpush.bf16.msra.mxu0 %v1735_v28  ;;  %v1359_v24 = vor.u32 %v1462_v20, %v1358_v19  ;;  %v1460_v27 = vld [vmem:[%s2134_s2 + $0x34] sm:$0xf0]  ;;  %v1459_v30 = vld [vmem:[%s2134_s2 + $0x34] sm:$0xf]  ;;  %v1342_v33 = vld [vmem:[%s2134_s2 + $0x20] sm:$0xf] }
  0x20   : > { %1505 = vmatpush.bf16.msra.mxu3 %v1742_v29  ;;  %451 = vmatpush.bf16.msra.mxu1 %v1742_v29  ;;  %v1351_v31 = vor.u32 %v1460_v27, %v1350_v26  ;;  %v1458_v36 = vld [vmem:[%s2134_s2 + $0x24] sm:$0xf0]  ;;  %v1457_v37 = vld [vmem:[%s2134_s2 + $0x24] sm:$0xf]  ;;  %v1334_v41 = vld [vmem:[%s2134_s2 + $0x10] sm:$0xf] }
  0x21   : > { %v1343_v39 = vor.u32 %v1458_v36, %v1342_v33  ;;  %v1456_v43 = vld [vmem:[%s2134_s2 + $0x14] sm:$0xf0]  ;;  %v1455_v44 = vld [vmem:[%s2134_s2 + $0x14] sm:$0xf]  ;;  %v1326_v48 = vld [vmem:[%s2134_s2] sm:$0xf] }
  0x22   : > { %v1335_v45 = vor.u32 %v1456_v43, %v1334_v41  ;;  %v1454_v49 = vld [vmem:[%s2134_s2 + $0x4] sm:$0xf0]  ;;  %v1453_v50 = vld [vmem:[%s2134_s2 + $0x4] sm:$0xf]  ;;  %v1445_v59 = vld [vmem:[%s2135_s3 + $0x10] sm:$0xff] }
  0x23   : > { %1498 = vmatpush.bf16.msra.mxu2 %v1759_v34  ;;  %429 = vmatpush.bf16.msra.mxu0 %v1759_v34  ;;  %v1327_v51 = vor.u32 %v1454_v49, %v1326_v48  ;;  %v1451_v53 = vld [vmem:[%s1776_s30] sm:$0xff]  ;;  %v1448_v55 = vld [vmem:[%s2135_s3 + $0x28] sm:$0xff] }
  0x24   : > { %1506 = vmatpush.bf16.msra.mxu3 %v1763_v35  ;;  %452 = vmatpush.bf16.msra.mxu1 %v1763_v35  ;;  %v1447_v56 = vld [vmem:[%s2135_s3 + $0x20] sm:$0xff] }
  0x27   : > { %1499 = vmatpush.bf16.msra.mxu2 %v1792_v42  ;;  %430 = vmatpush.bf16.msra.mxu0 %v1792_v42 }
  0x28   : > { %1507 = vmatpush.bf16.msra.mxu3 %v1801_v46  ;;  %453 = vmatpush.bf16.msra.mxu1 %v1801_v46 }
  0x2b   : > { %1500 = vmatpush.bf16.msra.mxu2 %v1825_v57  ;;  %431 = vmatpush.bf16.msra.mxu0 %v1825_v57 }
  0x2c   : > { %1508 = vmatpush.bf16.msra.mxu3 %v1830_v60  ;;  %454 = vmatpush.bf16.msra.mxu1 %v1830_v60 }
  0x2e   : > { %442 = vmatmul.bf16.vlgmr.msra.gmra.mxu2 %v339_v4  ;;  %432 = vmatmul.bf16.vlgmr.msra.gmra.mxu0 %v338_v5 }
  0x2f   : > { %566 = vmatpush.bf16.msrb.mxu2 %v1832_v61  ;;  %465 = vmatmul.bf16.vlgmr.msra.gmra.mxu3 %v339_v4  ;;  %v1443_v4 = vld [vmem:[%s2135_s3] sm:$0xff] }
  0x30   : > { %589 = vmatpush.bf16.msrb.mxu3 %v1835_v62  ;;  %810 = vmatpush.bf16.msrb.mxu1 %v1654_v3  ;;  %v1461_v3 = vld [vmem:[%s2134_s2 + $0x44] sm:$0xf] }
  0x31   : > { %455 = vmatmul.bf16.vlgmr.msra.gmra.mxu1 %v338_v5  ;;  %v1894_v25 = vor.u32 %v1461_v3, %v1360_v21 }
  0x33   : > { %567 = vmatpush.bf16.msrb.mxu2 %v1854_v6 }
  0x34   : > { %590 = vmatpush.bf16.msrb.mxu3 %v1857_v8  ;;  %811 = vmatpush.bf16.msrb.mxu1 %v1674_v10  ;;  %v1352_v10 = vld [vmem:[%s2134_s2 + $0x38] sm:$0xf0] }
  0x35   : > { %v1910_v32 = vor.u32 %v1459_v30, %v1352_v10 }
  0x37   : > { %568 = vmatpush.bf16.msrb.mxu2 %v1874_v15 }
  0x38   : > { %591 = vmatpush.bf16.msrb.mxu3 %v1877_v18  ;;  %812 = vmatpush.bf16.msrb.mxu1 %v1694_v16  ;;  %v1344_v16 = vld [vmem:[%s2134_s2 + $0x28] sm:$0xf0] }
  0x39   : > { %v1927_v40 = vor.u32 %v1457_v37, %v1344_v16 }
  0x3b   : > { %569 = vmatpush.bf16.msrb.mxu2 %v1359_v24 }
  0x3c   : > { %592 = vmatpush.bf16.msrb.mxu3 %v1894_v25  ;;  %813 = vmatpush.bf16.msrb.mxu1 %v1714_v22  ;;  %v1336_v22 = vld [vmem:[%s2134_s2 + $0x18] sm:$0xf0] }
  0x3d   : > { %v1943_v47 = vor.u32 %v1455_v44, %v1336_v22 }
  0x3e   : > { %437 = vmatmul.bf16.gmra.mxu0 %v340_v38 }
  0x3f   : > { %570 = vmatpush.bf16.msrb.mxu2 %v1351_v31 }
  0x40   : > { %593 = vmatpush.bf16.msrb.mxu3 %v1910_v32  ;;  %814 = vmatpush.bf16.msrb.mxu1 %v1735_v28  ;;  %v1328_v28 = vld [vmem:[%s2134_s2 + $0x8] sm:$0xf0] }
  0x41   : > { %460 = vmatmul.bf16.gmra.mxu1 %v340_v38  ;;  %v1959_v52 = vor.u32 %v1453_v50, %v1328_v28 }
  0x43   : > { %571 = vmatpush.bf16.msrb.mxu2 %v1343_v39 }
  0x44   : > { %594 = vmatpush.bf16.msrb.mxu3 %v1927_v40  ;;  %815 = vmatpush.bf16.msrb.mxu1 %v1759_v34  ;;  %v1452_v34 = vld [vmem:[%s1776_s30 + $0x8] sm:$0xff] }
  0x47   : > { %572 = vmatpush.bf16.msrb.mxu2 %v1335_v45 }
  0x48   : > { %595 = vmatpush.bf16.msrb.mxu3 %v1943_v47  ;;  %816 = vmatpush.bf16.msrb.mxu1 %v1792_v42  ;;  %v1449_v42 = vld [vmem:[%s2135_s3 + $0x30] sm:$0xff] }
  0x4b   : > { %573 = vmatpush.bf16.msrb.mxu2 %v1327_v51 }
  0x4c   : > { %596 = vmatpush.bf16.msrb.mxu3 %v1959_v52  ;;  %817 = vmatpush.bf16.msrb.mxu1 %v1825_v57  ;;  %v1446_v57 = vld [vmem:[%s2135_s3 + $0x18] sm:$0xff] }
  0x4e   : > { %574 = vmatmul.bf16.vlgmr.msrb.gmra.mxu2 %v1451_v53 }
  0x4f   : > { %833 = vmatpush.bf16.msra.mxu2 %v1665_v7  ;;  %597 = vmatmul.bf16.vlgmr.msrb.gmra.mxu3 %v1451_v53  ;;  %v281_v7 = vld [vmem:[%s1776_s30 + $0x10] sm:$0xf] }
  0x50   : > { %872 = vmatpush.bf16.msra.mxu3 %v1832_v61  ;;  %v1444_v61 = vld [vmem:[%s2135_s3 + $0x8] sm:$0xff] }
  0x53   : > { %834 = vmatpush.bf16.msra.mxu2 %v1678_v11  ;;  %v479_v11 = vunpack.c.l.b16 %v281_v7 }
  0x54   : > { %873 = vmatpush.bf16.msra.mxu3 %v1854_v6 }
  0x57   : > { %835 = vmatpush.bf16.msra.mxu2 %v1698_v17  ;;  %v482_v17 = vpack.c.b16 %v479_v11, %v479_v11 }
  0x58   : > { %874 = vmatpush.bf16.msra.mxu3 %v1874_v15 }
  0x5b   : > { %836 = vmatpush.bf16.msra.mxu2 %v1718_v23 }
  0x5c   : > { %875 = vmatpush.bf16.msra.mxu3 %v1359_v24 }
  0x5e   : > { %579 = vmatmul.bf16.gmra.mxu2 %v1452_v34 }
  0x5f   : > { %837 = vmatpush.bf16.msra.mxu2 %v1742_v29  ;;  %602 = vmatmul.bf16.gmra.mxu3 %v1452_v34 }
  0x60   : > { %876 = vmatpush.bf16.msra.mxu3 %v1351_v31 }
  0x63   : > { %838 = vmatpush.bf16.msra.mxu2 %v1763_v35  ;;  %v1450_v35 = vld [vmem:[%s2135_s3 + $0x38] sm:$0xff] }
  0x64   : > { %877 = vmatpush.bf16.msra.mxu3 %v1343_v39  ;;  %738 = vmatpush.bf16.msrb.mxu0 %v1450_v35 }
  0x65   : > { %996 = vmatpush.bf16.msra.mxu1 %v1450_v35 }
  0x67   : > { %839 = vmatpush.bf16.msra.mxu2 %v1801_v46 }
  0x68   : > { %878 = vmatpush.bf16.msra.mxu3 %v1335_v45  ;;  %739 = vmatpush.bf16.msrb.mxu0 %v1449_v42 }
  0x69   : > { %997 = vmatpush.bf16.msra.mxu1 %v1449_v42 }
  0x6b   : > { %840 = vmatpush.bf16.msra.mxu2 %v1830_v60 }
  0x6c   : > { %879 = vmatpush.bf16.msra.mxu3 %v1327_v51  ;;  %740 = vmatpush.bf16.msrb.mxu0 %v1448_v55 }
  0x6d   : > { %998 = vmatpush.bf16.msra.mxu1 %v1448_v55 }
  0x6e   : > { %584 = vmatmul.bf16.gmra.mxu2 %v482_v17 }
  0x6f   : > { %607 = vmatmul.bf16.gmra.mxu3 %v482_v17 }
  0x70   : > { %741 = vmatpush.bf16.msrb.mxu0 %v1447_v56 }
  0x71   : > { %999 = vmatpush.bf16.msra.mxu1 %v1447_v56 }
  0x74   : > { %742 = vmatpush.bf16.msrb.mxu0 %v1446_v57 }
  0x75   : > { %1000 = vmatpush.bf16.msra.mxu1 %v1446_v57 }
  0x78   : > { %743 = vmatpush.bf16.msrb.mxu0 %v1445_v59 }
  0x79   : > { %1001 = vmatpush.bf16.msra.mxu1 %v1445_v59 }
  0x7c   : > { %744 = vmatpush.bf16.msrb.mxu0 %v1444_v61 }
  0x7d   : > { %1002 = vmatpush.bf16.msra.mxu1 %v1444_v61 }
  0x80   : > { %745 = vmatpush.bf16.msrb.mxu0 %v1443_v4 }
  0x81   : > { %1003 = vmatpush.bf16.msra.mxu1 %v1443_v4 }
  0x84   : > { %895 = vmatpush.bf16.msra.mxu0 %v1835_v62 }
  0x88   : > { %896 = vmatpush.bf16.msra.mxu0 %v1857_v8 }
  0x8c   : > { %897 = vmatpush.bf16.msra.mxu0 %v1877_v18 }
  0x90   : > { %898 = vmatpush.bf16.msra.mxu0 %v1894_v25 }
  0x94   : > { %899 = vmatpush.bf16.msra.mxu0 %v1910_v32 }
  0x98   : > { %900 = vmatpush.bf16.msra.mxu0 %v1927_v40 }
  0x9c   : > { %901 = vmatpush.bf16.msra.mxu0 %v1943_v47 }
  0xa0   : > { %902 = vmatpush.bf16.msra.mxu0 %v1959_v52 }
  0xab   : > { %v433_v58 = vpop.f32.mrf.mxu0 }
  0xae   : > { %v456_v60 = vpop.f32.mrf.mxu1 }
  0xb1   : > { %v1978_v23 = vpop.f32.mrf.mxu2 }
  0xb2   : > { %v1980_v29 = vpop.f32.mrf.mxu3 }
  0xb3   : > { %v435_v6 = vpop.f32.mrf.mxu0 }
  0xb6   : > { %v458_v12 = vpop.f32.mrf.mxu1 }
  0xb9   : > { %v445_v46 = vpop.f32.mrf.mxu2 }
  0xba   : > { %v468_v54 = vpop.f32.mrf.mxu3 }
  0xbb   : > { %v438_v26 = vpop.f32.mrf.mxu0 }
  0xbe   : > { %v461_v30 = vpop.f32.mrf.mxu1 }
  0xc3   : > { %v440_v44 = vpop.f32.mrf.mxu0 }
  0xc6   : > { %v463_v45 = vpop.f32.mrf.mxu1 }
  0xd1   : > { %v575_v63 = vpop.f32.mrf.mxu2 }
  0xd2   : > { %v576_v0 = vadd.f32 %v575_v63, %v433_v58  ;;  %v598_v1 = vpop.f32.mrf.mxu3  ;;  %v1422_v63 = vld [vmem:[%s2036_s22] sm:$0xe] }
  0xd3   : > { %v599_v2 = vadd.f32 %v598_v1, %v456_v60 }
  0xd4   : > { %v612_v5 = vmul.f32 %v576_v0, %v576_v0  ;;  %v1490_v0 = vld [vmem:[%s2036_s22] sm:$0xf0] }
  0xd5   : > { %v617_v9 = vmul.f32 %v599_v2, %v599_v2  ;;  %v1491_v2 = vld [vmem:[%s2036_s22 + $0x8] sm:$0xff]  ;;  %v1423_v4 = vor.u32 %v1490_v0, %v1422_v63 }
  0xd7   : > { %v2007_v13 = vadd.f32 %v617_v9, %v612_v5 }
  0xd9   : > { %1535 = vrsqrt.f32 %v2007_v13  ;;  %v577_v14 = vpop.f32.mrf.mxu2  ;;  %vm634_vm1 = vcmp.eq.f32.partialorder %v2007_v13, inf  ;;  %vm636_vm2 = vcmp.eq.f32.partialorder %v2007_v13, 0.0  ;;  %v637_v58 = vand.u32 2147483648, %v2007_v13 }
  0xda   : > { %v578_v15 = vadd.f32 %v577_v14, %v435_v6  ;;  %v600_v19 = vpop.f32.mrf.mxu3  ;;  %v802_v14 = vrot.slane %v1423_v4, 1 }
  0xdb   : > { %v601_v20 = vadd.f32 %v600_v19, %v458_v12 }
  0xdc   : > { %v613_v3 = vmul.f32 %v578_v15, %v578_v15  ;;  %v803_v15 = vrot.slane %v1491_v2, 1 }
  0xdd   : > { %v618_v21 = vmul.f32 %v601_v20, %v601_v20  ;;  %v1488_v20 = vld [vmem:[%s2036_s22] sm:$0xff] }
  0xde   : > { %880 = vmatmul.bf16.vlgmr.msra.gmra.mxu3 %v1488_v20 }
  0xdf   : > { %v1536_v24 = vpop.eup %1535  ;;  %v2012_v27 = vadd.f32 %v618_v21, %v613_v3 }
  0xe0   : > { %v628_v62 = vmul.f32 %v1536_v24, %v2007_v13 }
  0xe1   : > { %1537 = vrsqrt.f32 %v2012_v27  ;;  %v580_v10 = vpop.f32.mrf.mxu2  ;;  %vm646_vm3 = vcmp.eq.f32.partialorder %v2012_v27, inf  ;;  %v649_v59 = vand.u32 2147483648, %v2012_v27  ;;  %vm648_vm4 = vcmp.eq.f32.partialorder %v2012_v27, 0.0 }
  0xe2   : > { %v581_v31 = vadd.f32 %v580_v10, %v438_v26  ;;  %v603_v33 = vpop.f32.mrf.mxu3  ;;  %v629_v36 = vmul.f32 %v1536_v24, %v628_v62 }
  0xe3   : > { %v604_v8 = vadd.f32 %v603_v33, %v461_v30 }
  0xe4   : > { %v614_v37 = vmul.f32 %v581_v31, %v581_v31  ;;  %v630_v16 = vmul.f32 0.5, %v629_v36 }
  0xe5   : > { %v619_v38 = vmul.f32 %v604_v8, %v604_v8 }
  0xe6   : > { %v631_v18 = vsub.f32 1.5, %v630_v16 }
  0xe7   : > { %v1538_v39 = vpop.eup %1537  ;;  %v2018_v41 = vadd.f32 %v619_v38, %v614_v37 }
  0xe8   : > { %v640_v43 = vmul.f32 %v1538_v39, %v2012_v27  ;;  %v632_v25 = vmul.f32 %v1536_v24, %v631_v18 }
  0xe9   : > { %v582_v22 = vpop.f32.mrf.mxu2  ;;  %1539 = vrsqrt.f32 %v2018_v41  ;;  %vm658_vm5 = vcmp.eq.f32.partialorder %v2018_v41, inf  ;;  %vm660_vm6 = vcmp.eq.f32.partialorder %v2018_v41, 0.0  ;;  %v661_v16 = vand.u32 2147483648, %v2018_v41 }
  0xea   : > { %v583_v48 = vadd.f32 %v582_v22, %v440_v44  ;;  %v605_v49 = vpop.f32.mrf.mxu3  ;;  %v641_v50 = vmul.f32 %v1538_v39, %v640_v43  ;;  %v633_v34 = vmul.f32 %v632_v25, %v2007_v13  ;;  %v1430_v43 = vld [vmem:[%s2036_s22 + $0x10] sm:$0xf]  ;;  %v1492_v44 = vld [vmem:[%s2036_s22 + $0x10] sm:$0x10] }
  0xeb   : > { %v606_v28 = vadd.f32 %v605_v49, %v463_v45 }
  0xec   : > { %v615_v51 = vmul.f32 %v583_v48, %v583_v48  ;;  %v642_v32 = vmul.f32 0.5, %v641_v50  ;;  %v635_v54 = vsel %vm634_vm1, %v2007_v13, %v633_v34  ;;  %v804_v13 = vsel %vm335_vm0, %v802_v14, %v803_v15 }
  0xed   : > { %v620_v53 = vmul.f32 %v606_v28, %v606_v28  ;;  %v638_v52 = vsel %vm636_vm2, %v637_v58, %v635_v54  ;;  %841 = vmatmul.bf16.vlgmr.msra.gmra.mxu2 %v804_v13  ;;  %818 = vmatmul.bf16.vlgmr.msrb.gmra.mxu1 %v804_v13  ;;  %v1431_v48 = vor.u32 %v1492_v44, %v1430_v43  ;;  %v1489_v28 = vld [vmem:[%s2036_s22 + $0x8] sm:$0xff] }
  0xee   : > { %v643_v7 = vsub.f32 1.5, %v642_v32  ;;  %885 = vmatmul.bf16.gmra.mxu3 %v1489_v28 }
  0xef   : > { %v1540_v11 = vpop.eup %1539  ;;  %v2025_v17 = vadd.f32 %v620_v53, %v615_v51  ;;  %v805_v50 = vrot.slane %v1431_v48, 1 }
  0xf0   : > { %v644_v35 = vmul.f32 %v1538_v39, %v643_v7  ;;  %v652_v42 = vmul.f32 %v1540_v11, %v2018_v41 }
  0xf1   : > { %v585_v46 = vpop.f32.mrf.mxu2  ;;  %1541 = vrsqrt.f32 %v2025_v17  ;;  %vm670_vm7 = vcmp.eq.f32.partialorder %v2025_v17, inf  ;;  %v673_v38 = vand.u32 2147483648, %v2025_v17  ;;  %vm672_vm8 = vcmp.eq.f32.partialorder %v2025_v17, 0.0 }
  0xf2   : > { %v586_v40 = vadd.f32 %v585_v46, %v1978_v23  ;;  %v608_v47 = vpop.f32.mrf.mxu3  ;;  %v645_v55 = vmul.f32 %v644_v35, %v2012_v27  ;;  %v653_v56 = vmul.f32 %v1540_v11, %v652_v42  ;;  %v806_v51 = vsel %vm335_vm0, %v803_v15, %v805_v50 }
  0xf3   : > { %v609_v57 = vadd.f32 %v608_v47, %v1980_v29 }
  0xf4   : > { %v616_v60 = vmul.f32 %v586_v40, %v586_v40  ;;  %v647_v23 = vsel %vm646_vm3, %v2012_v27, %v645_v55  ;;  %v654_v61 = vmul.f32 0.5, %v653_v56 }
  0xf5   : > { %v621_v1 = vmul.f32 %v609_v57, %v609_v57  ;;  %v650_v29 = vsel %vm648_vm4, %v649_v59, %v647_v23 }
  0xf6   : > { %v687_v5 = vpack.c.bf16 %v650_v29, %v638_v52  ;;  %v655_v6 = vsub.f32 1.5, %v654_v61  ;;  %v1034_v29 = vlaneseq }
  0xf7   : > { %v1542_v9 = vpop.eup %1541  ;;  %v626_v12 = vadd.f32 %v621_v1, %v616_v60 }
  0xf8   : > { %746 = vmatmul.bf16.vlgmr.msrb.gmra.mxu0 %v687_v5  ;;  %v664_v19 = vmul.f32 %v1542_v9, %v2025_v17  ;;  %v656_v24 = vmul.f32 %v1540_v11, %v655_v6  ;;  %v1035_v4 = vshrl.u32 %v1034_v29, 7 }
  0xf9   : > { %v587_v3 = vpop.f32.mrf.mxu2  ;;  %1543 = vrsqrt.f32 %v626_v12  ;;  %vm682_vm9 = vcmp.eq.f32.partialorder %v626_v12, inf  ;;  %v685_v34 = vand.u32 2147483648, %v626_v12  ;;  %vm684_vm10 = vcmp.eq.f32.partialorder %v626_v12, 0.0 }
  0xfa   : > { %v610_v21 = vpop.f32.mrf.mxu3  ;;  %v665_v26 = vmul.f32 %v1542_v9, %v664_v19  ;;  %v657_v30 = vmul.f32 %v656_v24, %v2018_v41  ;;  %v1599_v24 = vmov 0.0  }
  0xfc   : > { %v666_v27 = vmul.f32 0.5, %v665_v26  ;;  %v659_v36 = vsel %vm658_vm5, %v2018_v41, %v657_v30 }
  0xfd   : > { %v662_v22 = vsel %vm660_vm6, %v661_v16, %v659_v36  ;;  %846 = vmatmul.bf16.gmra.mxu2 %v806_v51  ;;  %823 = vmatmul.bf16.gmra.mxu1 %v806_v51  ;;  %vm1132_vm6 = vcmask 1040384  }
  0xfe   : > { %v667_v62 = vsub.f32 1.5, %v666_v27 }
  0xff   : > { %v1544_v10 = vpop.eup %1543 }
 0x100   : > { %v668_v31 = vmul.f32 %v1542_v9, %v667_v62  ;;  %v676_v33 = vmul.f32 %v1544_v10, %v626_v12 }
 0x102   : > { %v669_v8 = vmul.f32 %v668_v31, %v2025_v17  ;;  %v677_v37 = vmul.f32 %v1544_v10, %v676_v33 }
 0x104   : > { %v671_v18 = vsel %vm670_vm7, %v2025_v17, %v669_v8  ;;  %v678_v39 = vmul.f32 0.5, %v677_v37  ;;  %v780_v17 = vld [vmem:[%s2036_s22 + $0x10] sm:$0xf]  ;;  %vm1134_vm7 = vcmask 1041408  }
 0x105   : > { %v674_v45 = vsel %vm672_vm8, %v673_v38, %v671_v18  ;;  %v865_v35 = vunpack.c.l.b16 %v780_v17  ;;  %vm1136_vm8 = vcmask 1042432  }
 0x106   : > { %v688_v49 = vpack.c.bf16 %v674_v45, %v662_v22  ;;  %v679_v25 = vsub.f32 1.5, %v678_v39 }
 0x107   : > { %v868_v42 = vpack.c.b16 %v865_v35, %v865_v35 }
 0x108   : > { %751 = vmatmul.bf16.gmra.mxu0 %v688_v49  ;;  %v680_v41 = vmul.f32 %v1544_v10, %v679_v25 }
 0x109   : > { %890 = vmatmul.bf16.gmra.mxu3 %v868_v42 }
 0x10a   : > { %v681_v32 = vmul.f32 %v680_v41, %v626_v12 }
 0x10c   : > { %v683_v53 = vsel %vm682_vm9, %v626_v12, %v681_v32  ;;  %v1039_v12 = vadd.s32 32, %v1035_v4 }
 0x10d   : > { %v686_v7 = vsel %vm684_vm10, %v685_v34, %v683_v53  ;;  %851 = vmatmul.bf16.gmra.mxu2 %v805_v50  ;;  %828 = vmatmul.bf16.gmra.mxu1 %v805_v50 }
 0x10e   : > { %v689_v11 = vpack.c.bf16 %v686_v7, %v686_v7  ;;  %vm1051_vm11 = vcmp.lt.s32.totalorder %v1039_v12, 33 }
 0x10f   : > { %v2089_v26 = vsel %vm1051_vm11, 1.0, %v1599_v24 }
 0x118   : > { %756 = vmatmul.bf16.gmra.mxu0 %v689_v11 }
 0x128   : > { %903 = vmatmul.bf16.vlgmr.msra.gmra.mxu0 %v1488_v20 }
 0x138   : > { %908 = vmatmul.bf16.gmra.mxu0 %v1489_v28 }
 0x148   : > { %913 = vmatmul.bf16.gmra.mxu0 %v868_v42 }
 0x161   : > { %v881_v57 = vpop.f32.mrf.mxu3 }
 0x169   : > { %v883_v1 = vpop.f32.mrf.mxu3 }
 0x16a   : > { %v819_v54 = vpop.f32.mrf.mxu1 }
 0x16b   : > { %v882_v36 = vadd.f32 %v881_v57, %v819_v54 }
 0x16d   : > { %v918_v18 = vmul.f32 %v882_v36, %v882_v36 }
 0x170   : > { %v842_v56 = vpop.f32.mrf.mxu2 }
 0x171   : > { %v886_v19 = vpop.f32.mrf.mxu3 }
 0x172   : > { %v821_v63 = vpop.f32.mrf.mxu1 }
 0x173   : > { %v884_v49 = vadd.f32 %v883_v1, %v821_v63 }
 0x175   : > { %v747_v46 = vpop.f32.mrf.mxu0  ;;  %v919_v41 = vmul.f32 %v884_v49, %v884_v49 }
 0x176   : > { %v2071_v40 = vmax.f32 %v747_v46, 1e-07 }
 0x178   : > { %v1087_v58 = vmul.f32 %v2071_v40, %v2071_v40  ;;  %v844_v0 = vpop.f32.mrf.mxu2 }
 0x179   : > { %v888_v10 = vpop.f32.mrf.mxu3 }
 0x17a   : > { %v824_v14 = vpop.f32.mrf.mxu1 }
 0x17b   : > { %v887_v32 = vadd.f32 %v886_v19, %v824_v14 }
 0x17d   : > { %v749_v47 = vpop.f32.mrf.mxu0  ;;  %v920_v17 = vmul.f32 %v887_v32, %v887_v32 }
 0x17e   : > { %v2073_v55 = vmax.f32 %v749_v47, 1e-07 }
 0x180   : > { %v1088_v59 = vmul.f32 %v2073_v55, %v2073_v55  ;;  %v847_v15 = vpop.f32.mrf.mxu2 }
 0x182   : > { %v1097_v60 = vadd.f32 %v1088_v59, %v1087_v58  ;;  %v826_v30 = vpop.f32.mrf.mxu1 }
 0x183   : > { %v889_v58 = vadd.f32 %v888_v10, %v826_v30 }
 0x185   : > { %v752_v23 = vpop.f32.mrf.mxu0  ;;  %v921_v1 = vmul.f32 %v889_v58, %v889_v58 }
 0x186   : > { %v2079_v61 = vmax.f32 %v752_v23, 1e-07 }
 0x188   : > { %v1089_v52 = vmul.f32 %v2079_v61, %v2079_v61  ;;  %v849_v62 = vpop.f32.mrf.mxu2 }
 0x18a   : > { %v1098_v2 = vadd.f32 %v1097_v60, %v1089_v52  ;;  %v829_v8 = vpop.f32.mrf.mxu1 }
 0x18c   : > { %v891_v16 = vpop.f32.mrf.mxu3 }
 0x18d   : > { %v754_v5 = vpop.f32.mrf.mxu0  ;;  %v892_v29 = vadd.f32 %v891_v16, %v829_v8 }
 0x18e   : > { %v2083_v6 = vmax.f32 %v754_v5, 1e-07 }
 0x190   : > { %v1090_v9 = vmul.f32 %v2083_v6, %v2083_v6  ;;  %v852_v37 = vpop.f32.mrf.mxu2 }
 0x192   : > { %v1099_v20 = vadd.f32 %v1098_v2, %v1090_v9  ;;  %v831_v22 = vpop.f32.mrf.mxu1 }
 0x194   : > { %v893_v48 = vpop.f32.mrf.mxu3 }
 0x195   : > { %v757_v3 = vpop.f32.mrf.mxu0 }
 0x196   : > { %v2087_v21 = vmax.f32 %v757_v3, 1e-07 }
 0x198   : > { %v1091_v13 = vmul.f32 %v2087_v21, %v2087_v21  ;;  %v854_v45 = vpop.f32.mrf.mxu2 }
 0x19a   : > { %v1096_v27 = vmul.f32 %v2089_v26, %v1091_v13 }
 0x19c   : > { %v2094_v31 = vadd.f32 %v1099_v20, %v1096_v27 }
 0x19d   : > { %v759_v33 = vpop.f32.mrf.mxu0 }
 0x1a5   : > { %v904_v38 = vpop.f32.mrf.mxu0 }
 0x1a6   : > { %v905_v39 = vadd.f32 %v904_v38, %v842_v56 }
 0x1a8   : > { %v923_v43 = vmul.f32 %v905_v39, %v905_v39 }
 0x1aa   : > { %v928_v44 = vadd.f32 %v923_v43, %v918_v18 }
 0x1ac   : > { %1545 = vrsqrt.f32 %v928_v44  ;;  %vm940_vm12 = vcmp.eq.f32.partialorder %v928_v44, inf  ;;  %v943_v27 = vand.u32 2147483648, %v928_v44  ;;  %vm942_vm14 = vcmp.eq.f32.partialorder %v928_v44, 0.0 }
 0x1ad   : > { %v906_v25 = vpop.f32.mrf.mxu0 }
 0x1ae   : > { %v907_v50 = vadd.f32 %v906_v25, %v844_v0 }
 0x1b0   : > { %v924_v28 = vmul.f32 %v907_v50, %v907_v50 }
 0x1b2   : > { %v1546_v51 = vpop.eup %1545  ;;  %v929_v53 = vadd.f32 %v924_v28, %v919_v41 }
 0x1b3   : > { %v934_v34 = vmul.f32 %v1546_v51, %v928_v44 }
 0x1b4   : > { %1547 = vrsqrt.f32 %v929_v53  ;;  %vm952_vm13 = vcmp.eq.f32.partialorder %v929_v53, inf  ;;  %v955_v30 = vand.u32 2147483648, %v929_v53  ;;  %vm954_vm15 = vcmp.eq.f32.partialorder %v929_v53, 0.0 }
 0x1b5   : > { %v909_v7 = vpop.f32.mrf.mxu0  ;;  %v935_v11 = vmul.f32 %v1546_v51, %v934_v34 }
 0x1b6   : > { %v910_v35 = vadd.f32 %v909_v7, %v847_v15  ;;  %v922_v15 = vmul.f32 %v892_v29, %v892_v29 }
 0x1b7   : > { %v936_v42 = vmul.f32 0.5, %v935_v11 }
 0x1b8   : > { %v925_v46 = vmul.f32 %v910_v35, %v910_v35 }
 0x1b9   : > { %v937_v47 = vsub.f32 1.5, %v936_v42 }
 0x1ba   : > { %v1548_v54 = vpop.eup %1547  ;;  %v2096_v56 = vadd.f32 %v925_v46, %v920_v17 }
 0x1bb   : > { %v946_v57 = vmul.f32 %v1548_v54, %v929_v53  ;;  %v938_v60 = vmul.f32 %v1546_v51, %v937_v47 }
 0x1bc   : > { %1549 = vrsqrt.f32 %v2096_v56  ;;  %vm964_vm0 = vcmp.eq.f32.partialorder %v2096_v56, inf  ;;  %vm966_vm2 = vcmp.eq.f32.partialorder %v2096_v56, 0.0 }
 0x1bd   : > { %v911_v59 = vpop.f32.mrf.mxu0  ;;  %v947_v23 = vmul.f32 %v1548_v54, %v946_v57  ;;  %v939_v2 = vmul.f32 %v938_v60, %v928_v44 }
 0x1be   : > { %v912_v63 = vadd.f32 %v911_v59, %v849_v62 }
 0x1bf   : > { %v948_v0 = vmul.f32 0.5, %v947_v23  ;;  %v941_v20 = vsel %vm940_vm12, %v928_v44, %v939_v2 }
 0x1c0   : > { %v926_v52 = vmul.f32 %v912_v63, %v912_v63  ;;  %v944_v36 = vsel %vm942_vm14, %v943_v27, %v941_v20 }
 0x1c1   : > { %v949_v4 = vsub.f32 1.5, %v948_v0 }
 0x1c2   : > { %v1550_v5 = vpop.eup %1549  ;;  %v931_v9 = vadd.f32 %v926_v52, %v921_v1 }
 0x1c3   : > { %v950_v12 = vmul.f32 %v1548_v54, %v949_v4  ;;  %v958_v14 = vmul.f32 %v1550_v5, %v2096_v56 }
 0x1c4   : > { %1551 = vrsqrt.f32 %v931_v9  ;;  %vm976_vm1 = vcmp.eq.f32.partialorder %v931_v9, inf  ;;  %v979_v34 = vand.u32 2147483648, %v931_v9  ;;  %vm978_vm3 = vcmp.eq.f32.partialorder %v931_v9, 0.0 }
 0x1c5   : > { %v914_v19 = vpop.f32.mrf.mxu0  ;;  %v951_v3 = vmul.f32 %v950_v12, %v929_v53  ;;  %v959_v24 = vmul.f32 %v1550_v5, %v958_v14 }
 0x1c6   : > { %v915_v13 = vadd.f32 %v914_v19, %v852_v37 }
 0x1c7   : > { %v953_v62 = vsel %vm952_vm13, %v929_v53, %v951_v3  ;;  %v960_v10 = vmul.f32 0.5, %v959_v24  ;;  %v967_v53 = vand.u32 2147483648, %v2096_v56 }
 0x1c8   : > { %v927_v33 = vmul.f32 %v915_v13, %v915_v13  ;;  %v956_v8 = vsel %vm954_vm15, %v955_v30, %v953_v62 }
 0x1c9   : > { %v993_v16 = vpack.c.bf16 %v956_v8, %v944_v36  ;;  %v961_v38 = vsub.f32 1.5, %v960_v10 }
 0x1ca   : > { %v1552_v18 = vpop.eup %1551  ;;  %v932_v39 = vadd.f32 %v927_v33, %v922_v15 }
 0x1cb   : > { %1004 = vmatmul.bf16.vlgmr.msra.gmra.mxu1 %v993_v16  ;;  %v970_v43 = vmul.f32 %v1552_v18, %v931_v9  ;;  %v962_v45 = vmul.f32 %v1550_v5, %v961_v38 }
 0x1cc   : > { %1553 = vrsqrt.f32 %v932_v39  ;;  %vm988_vm4 = vcmp.eq.f32.partialorder %v932_v39, inf  ;;  %v991_v58 = vand.u32 2147483648, %v932_v39  ;;  %vm990_vm5 = vcmp.eq.f32.partialorder %v932_v39, 0.0 }
 0x1cd   : > { %v916_v22 = vpop.f32.mrf.mxu0  ;;  %v971_v37 = vmul.f32 %v1552_v18, %v970_v43  ;;  %v963_v49 = vmul.f32 %v962_v45, %v2096_v56 }
 0x1cf   : > { %v972_v48 = vmul.f32 0.5, %v971_v37  ;;  %v965_v28 = vsel %vm964_vm0, %v2096_v56, %v963_v49 }
 0x1d0   : > { %v968_v17 = vsel %vm966_vm2, %v967_v53, %v965_v28 }
 0x1d1   : > { %v973_v44 = vsub.f32 1.5, %v972_v48 }
 0x1d2   : > { %v1554_v25 = vpop.eup %1553 }
 0x1d3   : > { %v974_v50 = vmul.f32 %v1552_v18, %v973_v44  ;;  %v982_v41 = vmul.f32 %v1554_v25, %v932_v39 }
 0x1d5   : > { %v975_v51 = vmul.f32 %v974_v50, %v931_v9  ;;  %v983_v32 = vmul.f32 %v1554_v25, %v982_v41  ;;  %v1101_v41 = vrot.slane %v2094_v31, 4 }
 0x1d7   : > { %v977_v7 = vsel %vm976_vm1, %v931_v9, %v975_v51  ;;  %v984_v11 = vmul.f32 0.5, %v983_v32 }
 0x1d8   : > { %v980_v35 = vsel %vm978_vm3, %v979_v34, %v977_v7 }
 0x1d9   : > { %v994_v42 = vpack.c.bf16 %v980_v35, %v968_v17  ;;  %v985_v46 = vsub.f32 1.5, %v984_v11 }
 0x1db   : > { %1009 = vmatmul.bf16.gmra.mxu1 %v994_v42  ;;  %v986_v47 = vmul.f32 %v1554_v25, %v985_v46 }
 0x1dd   : > { %v987_v54 = vmul.f32 %v986_v47, %v932_v39 }
 0x1df   : > { %v989_v57 = vsel %vm988_vm4, %v932_v39, %v987_v54 }
 0x1e0   : > { %v992_v59 = vsel %vm990_vm5, %v991_v58, %v989_v57 }
 0x1e1   : > { %v995_v60 = vpack.c.bf16 %v992_v59, %v992_v59 }
 0x1eb   : > { %1014 = vmatmul.bf16.gmra.mxu1 %v995_v60 }
 0x248   : > { %v1005_v23 = vpop.f32.mrf.mxu1 }
 0x249   : > { %v1019_v63 = vmax.f32 %v1005_v23, 1e-07 }
 0x24b   : > { %1555 = vlog2.f32 %v1019_v63  ;;  %v1062_v0 = vsub.f32 %v2071_v40, %v1019_v63 }
 0x24c   : > { %1557 = vlog2.f32 %v2071_v40 }
 0x24d   : > { %1559 = vlog2.f32 %v2073_v55  ;;  %v1067_v4 = vmul.f32 %v1062_v0, %v1062_v0 }
 0x250   : > { %v1007_v56 = vpop.f32.mrf.mxu1 }
 0x251   : > { %v1020_v1 = vmax.f32 %v1007_v56, 1e-07  ;;  %v1556_v52 = vpop.eup %1555 }
 0x252   : > { %v1558_v2 = vpop.eup %1557  ;;  %v1025_v9 = vmul.f32 0.6931472, %v1556_v52 }
 0x253   : > { %1561 = vlog2.f32 %v1020_v1  ;;  %v1063_v29 = vsub.f32 %v2073_v55, %v1020_v1  ;;  %v1560_v12 = vpop.eup %1559  ;;  %v767_v15 = vmul.f32 0.6931472, %v1558_v2 }
 0x254   : > { %1563 = vlog2.f32 %v2079_v61  ;;  %v769_v24 = vmul.f32 0.6931472, %v1560_v12 }
 0x255   : > { %v1068_v5 = vmul.f32 %v1063_v29, %v1063_v29  ;;  %v1107_v13 = vsub.f32 %v767_v15, %v1025_v9 }
 0x257   : > { %v1077_v14 = vadd.f32 %v1068_v5, %v1067_v4  ;;  %v1112_v62 = vand.u32 2147483647, %v1107_v13 }
 0x258   : > { %v1010_v19 = vpop.f32.mrf.mxu1 }
 0x259   : > { %v1562_v20 = vpop.eup %1561  ;;  %v1021_v3 = vmax.f32 %v1010_v19, 1e-07 }
 0x25a   : > { %v1027_v40 = vmul.f32 0.6931472, %v1562_v20  ;;  %v1564_v33 = vpop.eup %1563 }
 0x25b   : > { %1565 = vlog2.f32 %v1021_v3  ;;  %v1064_v27 = vsub.f32 %v2079_v61, %v1021_v3  ;;  %v771_v39 = vmul.f32 0.6931472, %v1564_v33 }
 0x25c   : > { %v1108_v30 = vsub.f32 %v769_v24, %v1027_v40  ;;  %1567 = vlog2.f32 %v2083_v6 }
 0x25d   : > { %v1069_v55 = vmul.f32 %v1064_v27, %v1064_v27 }
 0x25e   : > { %v1113_v10 = vand.u32 2147483647, %v1108_v30 }
 0x25f   : > { %v1078_v36 = vadd.f32 %v1077_v14, %v1069_v55 }
 0x260   : > { %v1122_v8 = vadd.f32 %v1113_v10, %v1112_v62  ;;  %v1012_v16 = vpop.f32.mrf.mxu1 }
 0x261   : > { %v1566_v38 = vpop.eup %1565  ;;  %v1022_v18 = vmax.f32 %v1012_v16, 1e-07 }
 0x262   : > { %v1029_v43 = vmul.f32 0.6931472, %v1566_v38  ;;  %v1568_v48 = vpop.eup %1567 }
 0x263   : > { %1569 = vlog2.f32 %v1022_v18  ;;  %v1065_v22 = vsub.f32 %v2083_v6, %v1022_v18  ;;  %v773_v51 = vmul.f32 0.6931472, %v1568_v48  ;;  %v1102_v6 = vadd.f32 %v1101_v41, %v2094_v31 }
 0x264   : > { %v1109_v45 = vsub.f32 %v771_v39, %v1029_v43  ;;  %1571 = vlog2.f32 %v2087_v21 }
 0x265   : > { %v1070_v37 = vmul.f32 %v1065_v22, %v1065_v22  ;;  %v1103_v54 = vrot.slane %v1102_v6, 2 }
 0x266   : > { %v1114_v61 = vand.u32 2147483647, %v1109_v45 }
 0x267   : > { %v1079_v49 = vadd.f32 %v1078_v36, %v1070_v37  ;;  %v1104_v63 = vadd.f32 %v1103_v54, %v1102_v6 }
 0x268   : > { %v1123_v44 = vadd.f32 %v1122_v8, %v1114_v61  ;;  %v1015_v25 = vpop.f32.mrf.mxu1 }
 0x269   : > { %v1570_v50 = vpop.eup %1569  ;;  %v1023_v28 = vmax.f32 %v1015_v25, 1e-07  ;;  %v1105_v1 = vrot.slane %v1104_v63, 1 }
 0x26a   : > { %v1031_v32 = vmul.f32 0.6931472, %v1570_v50  ;;  %v1572_v17 = vpop.eup %1571 }
 0x26b   : > { %1573 = vlog2.f32 %v1023_v28  ;;  %v1066_v53 = vsub.f32 %v2087_v21, %v1023_v28  ;;  %v775_v58 = vmul.f32 0.6931472, %v1572_v17  ;;  %v1106_v5 = vadd.f32 %v1105_v1, %v1104_v63 }
 0x26c   : > { %v1110_v34 = vsub.f32 %v773_v51, %v1031_v32 }
 0x26d   : > { %v1071_v7 = vmul.f32 %v1066_v53, %v1066_v53 }
 0x26e   : > { %v1115_v11 = vand.u32 2147483647, %v1110_v34 }
 0x26f   : > { %v1076_v35 = vmul.f32 %v2089_v26, %v1071_v7 }
 0x270   : > { %v1124_v42 = vadd.f32 %v1123_v44, %v1115_v11  ;;  %v1017_v46 = vpop.f32.mrf.mxu1 }
 0x271   : > { %v1574_v47 = vpop.eup %1573  ;;  %v1080_v57 = vadd.f32 %v1079_v49, %v1076_v35 }
 0x272   : > { %v1033_v59 = vmul.f32 0.6931472, %v1574_v47 }
 0x273   : > { %v1081_v60 = vrot.slane %v1080_v57, 4 }
 0x274   : > { %v1111_v23 = vsub.f32 %v775_v58, %v1033_v59 }
 0x275   : > { %v1082_v56 = vadd.f32 %v1081_v60, %v1080_v57 }
 0x276   : > { %v1116_v21 = vand.u32 2147483647, %v1111_v23 }
 0x277   : > { %v1083_v0 = vrot.slane %v1082_v56, 2 }
 0x278   : > { %v1121_v31 = vmul.f32 %v2089_v26, %v1116_v21 }
 0x279   : > { %v1084_v52 = vadd.f32 %v1083_v0, %v1082_v56 }
 0x27a   : > { %v1125_v29 = vadd.f32 %v1124_v42, %v1121_v31 }
 0x27b   : > { %v1085_v2 = vrot.slane %v1084_v52, 1 }
 0x27c   : > { %v1126_v4 = vrot.slane %v1125_v29, 4 }
 0x27d   : > { %v1086_v9 = vadd.f32 %v1085_v2, %v1084_v52 }
 0x27e   : > { %v1127_v12 = vadd.f32 %v1126_v4, %v1125_v29 }
 0x27f   : > { %v1133_v14 = vsel %vm1132_vm6, %v1086_v9, %v1106_v5 }
 0x280   : > { %v1128_v15 = vrot.slane %v1127_v12, 2 }
 0x282   : > { %v1129_v19 = vadd.f32 %v1128_v15, %v1127_v12 }
 0x284   : > { %v1130_v20 = vrot.slane %v1129_v19, 1 }
 0x286   : > { %v1131_v3 = vadd.f32 %v1130_v20, %v1129_v19 }
 0x288   : > { %v1135_v24 = vsel %vm1134_vm7, %v1133_v14, %v1131_v3 }
 0x289   : > { %v1137_v26 = vsel %vm1136_vm8, %v1135_v24, 0.0 }
 0x28a   : > { %1140 = vst [vmem:[%s255_s26] sm:$0xff] %v1137_v26 }
 0x28b PF: > { %s14_s17 = sadd.s32 1, %s1597_s17   ;;  %s2137_s15 = smov %s1593_s16 }
 0x28c   : > { %p11_p5 = scmp.ge.s32.totalorder %s14_s17, 4   ;;  %s2138_s16 = smov %s2140_s18 }
 0x28e   :  { %13 = sbr.rel (!%p11_p5) target bundleno = 2 (0x2), region = 73 }

// kernel: _lambda_.3
= control target key start
LH: loop header
LB: loop body
LE: loop exit
PB: predicated region body
PF: predicated region fallthrough
CT: control target
= control target key end

     0   :  { %s3250_s15 = smov 0   ;;  %s3252_s16 = smov 0   ;;  %s5082_s0 = inlined_call_operand.vmem [shape: bf16[2,1,32,128], index: 0, kind: input, shape index: {}]   ;;  %s5083_s1 = inlined_call_operand.vmem [shape: bf16[2,1,32,128], index: 1, kind: input, shape index: {}]   ;;  %s5084_s2 = inlined_call_operand.vmem [shape: bf16[512,512], index: 2, kind: input, shape index: {}]   ;;  %s5085_s3 = inlined_call_operand.vmem [shape: bf16[256,128], index: 3, kind: input, shape index: {}]   ;;  %s5086_s4 = inlined_call_operand.vmem [shape: f32[2,8,128], index: 4, kind: output, shape index: {}]  }
   0x1   :  { %s3254_s17 = smov 0  }
   0x2 LB: > { %s26_s18 = sadd.s32 1, %s3218_s16  ;;  %p2384_p0 = scmp.ge.s32.totalorder %s3222_s17, 1  ;;  %s3222_s17 = sphi %s3254_s17, %s14_s17   ;;  %s3218_s16 = sphi %s3252_s16, %s5312_s16   ;;  %s3214_s15 = sphi %s3250_s15, %s5311_s15  }
   0x3   : > { %p28_p1 = scmp.ge.s32.totalorder %s26_s18, 2  ;;  %p196_p2 = scmp.lt.s32.totalorder %s3222_s17, 3 }
   0x5   : > { %s5314_s18 = smov (%p28_p1, %s26_s18), 0  ;;  %p197_p3 = pnand %p2384_p0, %p196_p2 }
   0x7   : > { %200 = sbr.rel (%p197_p3) target bundleno = 793 (0x319), region = 36 }
   0xc   : > { %v2504_v0 = vld [vmem:[%s5084_s2 + $0x1e0] sm:$0xf]  ;;  %v3058_v1 = vld [vmem:[%s5084_s2 + $0x1ec] sm:$0xf0]  ;;  %v3056_v2 = vld [vmem:[%s5084_s2 + $0x1e4] sm:$0xf] }
   0xd   : > { %v3279_v3 = vor.u32 %v3058_v1, %v2504_v0  ;;  %v2506_v4 = vld [vmem:[%s5084_s2 + $0x1f0] sm:$0xf0]  ;;  %v2512_v5 = vld [vmem:[%s5084_s2 + $0x1e8] sm:$0xf]  ;;  %v3059_v6 = vld [vmem:[%s5084_s2 + $0x1f4] sm:$0xf0] }
   0xe   : > { %v3290_v7 = vor.u32 %v3056_v2, %v2506_v4  ;;  %v3292_v8 = vor.u32 %v3059_v6, %v2512_v5  ;;  %v3057_v9 = vld [vmem:[%s5084_s2 + $0x1ec] sm:$0xf]  ;;  %v2514_v10 = vld [vmem:[%s5084_s2 + $0x1f8] sm:$0xf0]  ;;  %v2488_v11 = vld [vmem:[%s5084_s2 + $0x1c0] sm:$0xf] }
   0xf   : > { %552 = vmatpush.bf16.msra.mxu0 %v3279_v3  ;;  %v3304_v12 = vor.u32 %v3057_v9, %v2514_v10  ;;  %v3054_v13 = vld [vmem:[%s5084_s2 + $0x1cc] sm:$0xf0]  ;;  %v3052_v14 = vld [vmem:[%s5084_s2 + $0x1c4] sm:$0xf]  ;;  %v2490_v15 = vld [vmem:[%s5084_s2 + $0x1d0] sm:$0xf0] }
  0x10   : > { %5162 = vst [vmem:[#allocation2_spill] sm:$0xff] %v3292_v8  ;;  %570 = vmatpush.bf16.msra.mxu1 %v3290_v7  ;;  %588 = vmatpush.bf16.msra.mxu2 %v3292_v8  ;;  %v3317_v16 = vor.u32 %v3054_v13, %v2488_v11  ;;  %v3319_v17 = vor.u32 %v3052_v14, %v2490_v15  ;;  %v2496_v18 = vld [vmem:[%s5084_s2 + $0x1c8] sm:$0xf]  ;;  %v3055_v19 = vld [vmem:[%s5084_s2 + $0x1d4] sm:$0xf0]  ;;  %p234_p4 = scmp.lt.s32.totalorder %s3214_s15, 1 }
  0x11   : > { %5163 = vst [vmem:[#allocation3_spill] sm:$0xff] %v3304_v12  ;;  %v3053_v20 = vld [vmem:[%s5084_s2 + $0x1cc] sm:$0xf]  ;;  %606 = vmatpush.bf16.msra.mxu3 %v3304_v12  ;;  %v3331_v21 = vor.u32 %v3055_v19, %v2496_v18  ;;  %v2498_v22 = vld [vmem:[%s5084_s2 + $0x1d8] sm:$0xf0]  ;;  %vm902_vm1 = vcmask 1046528  }
  0x12   : > { %v2472_v23 = vld [vmem:[%s5084_s2 + $0x1a0] sm:$0xf]  ;;  %v3050_v24 = vld [vmem:[%s5084_s2 + $0x1ac] sm:$0xf0]  ;;  %v3342_v25 = vor.u32 %v3053_v20, %v2498_v22  ;;  %v3048_v26 = vld [vmem:[%s5084_s2 + $0x1a4] sm:$0xf] }
  0x13   : > { %5164 = vst [vmem:[#allocation4_spill] sm:$0xff] %v3331_v21  ;;  %v2474_v27 = vld [vmem:[%s5084_s2 + $0x1b0] sm:$0xf0]  ;;  %v2480_v28 = vld [vmem:[%s5084_s2 + $0x1a8] sm:$0xf]  ;;  %553 = vmatpush.bf16.msra.mxu0 %v3317_v16  ;;  %v3354_v29 = vor.u32 %v3050_v24, %v2472_v23  ;;  %s5316_s15 = smov (!%p234_p4, %s3214_s15), 1 }
  0x14   : > { %5165 = vst [vmem:[#allocation5_spill] sm:$0xff] %v3342_v25  ;;  %v3051_v30 = vld [vmem:[%s5084_s2 + $0x1b4] sm:$0xf0]  ;;  %v3049_v31 = vld [vmem:[%s5084_s2 + $0x1ac] sm:$0xf]  ;;  %571 = vmatpush.bf16.msra.mxu1 %v3319_v17  ;;  %589 = vmatpush.bf16.msra.mxu2 %v3331_v21  ;;  %v3367_v33 = vor.u32 %v3048_v26, %v2474_v27  ;;  %s2977_s19 = sshll.u32 %s5316_s15, 4 }
  0x15   : > { %v2482_v32 = vld [vmem:[%s5084_s2 + $0x1b8] sm:$0xf0]  ;;  %v3369_v34 = vor.u32 %v3051_v30, %v2480_v28  ;;  %v2456_v35 = vld [vmem:[%s5084_s2 + $0x180] sm:$0xf]  ;;  %v3046_v36 = vld [vmem:[%s5084_s2 + $0x18c] sm:$0xf0]  ;;  %607 = vmatpush.bf16.msra.mxu3 %v3342_v25  ;;  %s3564_s26 = scalar_lea.vmem %s5082_s0, %s2977_s19  ;;  %s4530_s9 = scalar_lea.vmem %s5083_s1, %s2977_s19 }
  0x16   : > { %v3044_v37 = vld [vmem:[%s5084_s2 + $0x184] sm:$0xf]  ;;  %v3381_v38 = vor.u32 %v3049_v31, %v2482_v32  ;;  %v2458_v39 = vld [vmem:[%s5084_s2 + $0x190] sm:$0xf0]  ;;  %v2464_v40 = vld [vmem:[%s5084_s2 + $0x188] sm:$0xf]  ;;  %v3399_v44 = vor.u32 %v3046_v36, %v2456_v35 }
  0x17   : > { %5166 = vst [vmem:[#allocation6_spill] sm:$0xff] %v3369_v34  ;;  %v3047_v41 = vld [vmem:[%s5084_s2 + $0x194] sm:$0xf0]  ;;  %v3045_v42 = vld [vmem:[%s5084_s2 + $0x18c] sm:$0xf]  ;;  %554 = vmatpush.bf16.msra.mxu0 %v3354_v29  ;;  %v3403_v45 = vor.u32 %v3044_v37, %v2458_v39 }
  0x18   : > { %5167 = vst [vmem:[#allocation7_spill] sm:$0xff] %v3381_v38  ;;  %v2466_v43 = vld [vmem:[%s5084_s2 + $0x198] sm:$0xf0]  ;;  %572 = vmatpush.bf16.msra.mxu1 %v3367_v33  ;;  %590 = vmatpush.bf16.msra.mxu2 %v3369_v34  ;;  %v3405_v46 = vor.u32 %v3047_v41, %v2464_v40  ;;  %v2440_v47 = vld [vmem:[%s5084_s2 + $0x160] sm:$0xf] }
  0x19   : > { %v3042_v48 = vld [vmem:[%s5084_s2 + $0x16c] sm:$0xf0]  ;;  %v3040_v49 = vld [vmem:[%s5084_s2 + $0x164] sm:$0xf]  ;;  %608 = vmatpush.bf16.msra.mxu3 %v3381_v38  ;;  %v3417_v50 = vor.u32 %v3045_v42, %v2466_v43  ;;  %v2442_v51 = vld [vmem:[%s5084_s2 + $0x170] sm:$0xf0] }
  0x1a   : > { %5168 = vst [vmem:[#allocation8_spill] sm:$0xff] %v3405_v46  ;;  %v2448_v52 = vld [vmem:[%s5084_s2 + $0x168] sm:$0xf]  ;;  %v3043_v53 = vld [vmem:[%s5084_s2 + $0x174] sm:$0xf0]  ;;  %v3435_v56 = vor.u32 %v3042_v48, %v2440_v47  ;;  %v3439_v57 = vor.u32 %v3040_v49, %v2442_v51 }
  0x1b   : > { %5169 = vst [vmem:[#allocation9_spill] sm:$0xff] %v3417_v50  ;;  %v3041_v54 = vld [vmem:[%s5084_s2 + $0x16c] sm:$0xf]  ;;  %v2450_v55 = vld [vmem:[%s5084_s2 + $0x178] sm:$0xf0]  ;;  %555 = vmatpush.bf16.msra.mxu0 %v3399_v44  ;;  %v3441_v58 = vor.u32 %v3043_v53, %v2448_v52 }
  0x1c   : > { %573 = vmatpush.bf16.msra.mxu1 %v3403_v45  ;;  %591 = vmatpush.bf16.msra.mxu2 %v3405_v46  ;;  %v2424_v59 = vld [vmem:[%s5084_s2 + $0x140] sm:$0xf]  ;;  %v3038_v60 = vld [vmem:[%s5084_s2 + $0x14c] sm:$0xf0]  ;;  %v3036_v61 = vld [vmem:[%s5084_s2 + $0x144] sm:$0xf]  ;;  %v3453_v62 = vor.u32 %v3041_v54, %v2450_v55 }
  0x1d   : > { %5170 = vst [vmem:[#allocation10_spill] sm:$0xff] %v3441_v58  ;;  %609 = vmatpush.bf16.msra.mxu3 %v3417_v50  ;;  %v2426_v63 = vld [vmem:[%s5084_s2 + $0x150] sm:$0xf0]  ;;  %v2432_v0 = vld [vmem:[%s5084_s2 + $0x148] sm:$0xf]  ;;  %v3471_v5 = vor.u32 %v3038_v60, %v2424_v59  ;;  %v3126_v54 = vld [vmem:[%s3564_s26] sm:$0xff]  }
  0x1e   : > { %5171 = vst [vmem:[#allocation11_spill] sm:$0xff] %v3453_v62  ;;  %v3039_v1 = vld [vmem:[%s5084_s2 + $0x154] sm:$0xf0]  ;;  %v3037_v2 = vld [vmem:[%s5084_s2 + $0x14c] sm:$0xf]  ;;  %v3484_v11 = vor.u32 %v3036_v61, %v2426_v63  ;;  %v376_v63 = vshrl.u32 %v3126_v54, 16 }
  0x1f   : > { %v2434_v4 = vld [vmem:[%s5084_s2 + $0x158] sm:$0xf0]  ;;  %556 = vmatpush.bf16.msra.mxu0 %v3435_v56  ;;  %v2408_v6 = vld [vmem:[%s5084_s2 + $0x120] sm:$0xf]  ;;  %v3034_v9 = vld [vmem:[%s5084_s2 + $0x12c] sm:$0xf0]  ;;  %v3486_v13 = vor.u32 %v3039_v1, %v2432_v0 }
  0x20   : > { %v3032_v10 = vld [vmem:[%s5084_s2 + $0x124] sm:$0xf]  ;;  %574 = vmatpush.bf16.msra.mxu1 %v3439_v57  ;;  %592 = vmatpush.bf16.msra.mxu2 %v3441_v58  ;;  %v2410_v14 = vld [vmem:[%s5084_s2 + $0x130] sm:$0xf0]  ;;  %v2416_v15 = vld [vmem:[%s5084_s2 + $0x128] sm:$0xf]  ;;  %v3498_v19 = vor.u32 %v3037_v2, %v2434_v4  ;;  %v3520_v28 = vor.u32 %v3034_v9, %v2408_v6 }
  0x21   : > { %5172 = vst [vmem:[#allocation12_spill] sm:$0xff] %v3486_v13  ;;  %v3035_v18 = vld [vmem:[%s5084_s2 + $0x134] sm:$0xf0]  ;;  %610 = vmatpush.bf16.msra.mxu3 %v3453_v62  ;;  %v3033_v20 = vld [vmem:[%s5084_s2 + $0x12c] sm:$0xf]  ;;  %v3533_v32 = vor.u32 %v3032_v10, %v2410_v14  ;;  %v378_v0 = vshll.u32 %v3126_v54, 16 }
  0x22   : > { %5173 = vst [vmem:[#allocation13_spill] sm:$0xff] %v3498_v19  ;;  %v2418_v22 = vld [vmem:[%s5084_s2 + $0x138] sm:$0xf0]  ;;  %v2392_v23 = vld [vmem:[%s5084_s2 + $0x100] sm:$0xf]  ;;  %v3535_v35 = vor.u32 %v3035_v18, %v2416_v15 }
  0x23   : > { %v3030_v24 = vld [vmem:[%s5084_s2 + $0x10c] sm:$0xf0]  ;;  %v3028_v26 = vld [vmem:[%s5084_s2 + $0x104] sm:$0xf]  ;;  %v2394_v27 = vld [vmem:[%s5084_s2 + $0x110] sm:$0xf0]  ;;  %557 = vmatpush.bf16.msra.mxu0 %v3471_v5  ;;  %v3550_v41 = vor.u32 %v3033_v20, %v2418_v22 }
  0x24   : > { %v2400_v30 = vld [vmem:[%s5084_s2 + $0x108] sm:$0xf]  ;;  %v3031_v31 = vld [vmem:[%s5084_s2 + $0x114] sm:$0xf0]  ;;  %575 = vmatpush.bf16.msra.mxu1 %v3484_v11  ;;  %593 = vmatpush.bf16.msra.mxu2 %v3486_v13  ;;  %5174 = vst [vmem:[#allocation14_spill] sm:$0xff] %v3535_v35  ;;  %v3576_v51 = vor.u32 %v3030_v24, %v2392_v23  ;;  %v3578_v52 = vor.u32 %v3028_v26, %v2394_v27  ;;  %v380_v14 = vrot.slane %v378_v0, 1 }
  0x25   : > { %v3029_v36 = vld [vmem:[%s5084_s2 + $0x10c] sm:$0xf]  ;;  %v2402_v37 = vld [vmem:[%s5084_s2 + $0x118] sm:$0xf0]  ;;  %v2644_v39 = vld [vmem:[%s5084_s2 + $0xe8] sm:$0xf]  ;;  %611 = vmatpush.bf16.msra.mxu3 %v3498_v19  ;;  %v3580_v53 = vor.u32 %v3031_v31, %v2400_v30 }
  0x26   : > { %v3027_v40 = vld [vmem:[%s5084_s2 + $0xf4] sm:$0xf0]  ;;  %5175 = vst [vmem:[#allocation15_spill] sm:$0xff] %v3550_v41  ;;  %v3025_v42 = vld [vmem:[%s5084_s2 + $0xec] sm:$0xf]  ;;  %v3592_v4 = vor.u32 %v3029_v36, %v2402_v37  ;;  %v381_v27 = vor.u32 %v380_v14, %v376_v63  ;;  %v2995_v19 = vld [vmem:[%s3564_s26] sm:$0xff] }
  0x27   : > { %v2646_v43 = vld [vmem:[%s5084_s2 + $0xf8] sm:$0xf0]  ;;  %v2636_v47 = vld [vmem:[%s5084_s2 + $0xe0] sm:$0xf]  ;;  %v3026_v48 = vld [vmem:[%s5084_s2 + $0xec] sm:$0xf0]  ;;  %558 = vmatpush.bf16.msra.mxu0 %v3520_v28  ;;  %v3594_v9 = vor.u32 %v3027_v40, %v2644_v39 }
  0x28   : > { %v3024_v49 = vld [vmem:[%s5084_s2 + $0xe4] sm:$0xf]  ;;  %5176 = vst [vmem:[#allocation16_spill] sm:$0xff] %v3580_v53  ;;  %v330_v55 = vld [vmem:[%s3564_s26 + $0x8] sm:$0xf]  ;;  %576 = vmatpush.bf16.msra.mxu1 %v3533_v32  ;;  %594 = vmatpush.bf16.msra.mxu2 %v3535_v35  ;;  %v3598_v15 = vor.u32 %v3025_v42, %v2646_v43  ;;  %v3600_v18 = vor.u32 %v3026_v48, %v2636_v47 }
  0x29   : > { %v331_v59 = vld [vmem:[%s3564_s26 + $0xc] sm:$0x1]  ;;  %v370_v60 = vunpack.c.l.b16 %v330_v55  ;;  %v2638_v2 = vld [vmem:[%s5084_s2 + $0xf0] sm:$0xf0]  ;;  %612 = vmatpush.bf16.msra.mxu3 %v3550_v41  ;;  %5177 = vst [vmem:[#allocation17_spill] sm:$0xff] %v3592_v4 }
  0x2a   : > { %v371_v61 = vunpack.c.l.b16 %v331_v59  ;;  %v1152_v1 = vld [vmem:[%s3564_s26 + $0xc] sm:$0x3]  ;;  %vm374_vm0 = vsmask.f32 7424  ;;  %5178 = vst [vmem:[#allocation18_spill] sm:$0xff] %v3594_v9  ;;  %v3605_v22 = vor.u32 %v3024_v49, %v2638_v2 }
  0x2b   : > { %v1186_v6 = vunpack.c.l.b16 %v1152_v1  ;;  %5179 = vst [vmem:[#allocation19_spill] sm:$0xff] %v3598_v15  ;;  %559 = vmatpush.bf16.msra.mxu0 %v3576_v51  ;;  %v2628_v23 = vld [vmem:[%s5084_s2 + $0xc8] sm:$0xf]  ;;  %v3023_v24 = vld [vmem:[%s5084_s2 + $0xd4] sm:$0xf0] }
  0x2c   : > { %v3596_v10 = vpack.c.b16 %v371_v61, %v370_v60  ;;  %v3021_v26 = vld [vmem:[%s5084_s2 + $0xcc] sm:$0xf]  ;;  %577 = vmatpush.bf16.msra.mxu1 %v3578_v52  ;;  %595 = vmatpush.bf16.msra.mxu2 %v3580_v53  ;;  %v2630_v31 = vld [vmem:[%s5084_s2 + $0xd8] sm:$0xf0]  ;;  %v2620_v36 = vld [vmem:[%s5084_s2 + $0xc0] sm:$0xf]  ;;  %v3641_v43 = vor.u32 %v3023_v24, %v2628_v23 }
  0x2d   : > { %v3603_v20 = vpack.c.b16 %v1186_v6, %v370_v60  ;;  %613 = vmatpush.bf16.msra.mxu3 %v3592_v4  ;;  %v3022_v37 = vld [vmem:[%s5084_s2 + $0xcc] sm:$0xf0]  ;;  %v3020_v39 = vld [vmem:[%s5084_s2 + $0xc4] sm:$0xf]  ;;  %v2622_v40 = vld [vmem:[%s5084_s2 + $0xd0] sm:$0xf0]  ;;  %v3643_v47 = vor.u32 %v3021_v26, %v2630_v31 }
  0x2e   : > { %v383_v30 = vshll.u32 %v3596_v10, 16  ;;  %5180 = vst [vmem:[#allocation20_spill] sm:$0xff] %v3641_v43  ;;  %v2612_v48 = vld [vmem:[%s5084_s2 + $0xa8] sm:$0xf]  ;;  %v3019_v49 = vld [vmem:[%s5084_s2 + $0xb4] sm:$0xf0]  ;;  %v3653_v55 = vor.u32 %v3022_v37, %v2620_v36  ;;  %v3655_v59 = vor.u32 %v3020_v39, %v2622_v40 }
  0x2f   : > { %794 = vmatpush.bf16.msrb.mxu0 %v3600_v18  ;;  %5181 = vst [vmem:[#allocation21_spill] sm:$0xff] %v3643_v47  ;;  %v3017_v60 = vld [vmem:[%s5084_s2 + $0xac] sm:$0xf]  ;;  %v2614_v61 = vld [vmem:[%s5084_s2 + $0xb8] sm:$0xf0]  ;;  %v3677_v6 = vor.u32 %v3019_v49, %v2612_v48 }
  0x30   : > { %830 = vmatpush.bf16.msrb.mxu2 %v3594_v9  ;;  %v3636_v42 = vrot.slane %v383_v30, 1  ;;  %812 = vmatpush.bf16.msrb.mxu1 %v3605_v22  ;;  %v2604_v63 = vld [vmem:[%s5084_s2 + $0xa0] sm:$0xf]  ;;  %v3018_v0 = vld [vmem:[%s5084_s2 + $0xac] sm:$0xf0]  ;;  %v3679_v14 = vor.u32 %v3017_v60, %v2614_v61 }
  0x31   : > { %848 = vmatpush.bf16.msrb.mxu3 %v3598_v15  ;;  %v3016_v1 = vld [vmem:[%s5084_s2 + $0xa4] sm:$0xf]  ;;  %v2606_v2 = vld [vmem:[%s5084_s2 + $0xb0] sm:$0xf0]  ;;  %5182 = vst [vmem:[#allocation22_spill] sm:$0xff] %v3677_v6  ;;  %v3689_v26 = vor.u32 %v3018_v0, %v2604_v63 }
  0x32   : > { %v386_v54 = vsel %vm374_vm0, %v381_v27, %v3636_v42  ;;  %5183 = vst [vmem:[#allocation23_spill] sm:$0xff] %v3679_v14  ;;  %v2596_v23 = vld [vmem:[%s5084_s2 + $0x88] sm:$0xf]  ;;  %v3015_v24 = vld [vmem:[%s5084_s2 + $0x94] sm:$0xf0]  ;;  %v3691_v27 = vor.u32 %v3016_v1, %v2606_v2 }
  0x33   : > { %560 = vmatmul.bf16.vlgmr.msra.gmra.mxu0 %v386_v54  ;;  %578 = vmatmul.bf16.vlgmr.msra.gmra.mxu1 %v386_v54  ;;  %v3013_v30 = vld [vmem:[%s5084_s2 + $0x8c] sm:$0xf]  ;;  %v2598_v31 = vld [vmem:[%s5084_s2 + $0x98] sm:$0xf0]  ;;  %v2588_v36 = vld [vmem:[%s5084_s2 + $0x80] sm:$0xf]  ;;  %v3713_v48 = vor.u32 %v3015_v24, %v2596_v23 }
  0x34   : > { %596 = vmatmul.bf16.vlgmr.msra.gmra.mxu2 %v386_v54  ;;  %614 = vmatmul.bf16.vlgmr.msra.gmra.mxu3 %v386_v54  ;;  %v3014_v37 = vld [vmem:[%s5084_s2 + $0x8c] sm:$0xf0]  ;;  %v3012_v39 = vld [vmem:[%s5084_s2 + $0x84] sm:$0xf]  ;;  %v2590_v40 = vld [vmem:[%s5084_s2 + $0x90] sm:$0xf0]  ;;  %v3715_v49 = vor.u32 %v3013_v30, %v2598_v31 }
  0x35   : > { %831 = vmatpush.bf16.msrb.mxu2 %v3641_v43  ;;  %849 = vmatpush.bf16.msrb.mxu3 %v3643_v47  ;;  %5184 = vst [vmem:[#allocation24_spill] sm:$0xff] %v3713_v48  ;;  %v387_v54 = vshrl.u32 %v3596_v10, 16  ;;  %v2580_v60 = vld [vmem:[%s5084_s2 + $0x68] sm:$0xf]  ;;  %v3011_v61 = vld [vmem:[%s5084_s2 + $0x74] sm:$0xf0]  ;;  %v3726_v63 = vor.u32 %v3014_v37, %v2588_v36  ;;  %v3728_v0 = vor.u32 %v3012_v39, %v2590_v40 }
  0x36   : > { %795 = vmatpush.bf16.msrb.mxu0 %v3653_v55  ;;  %813 = vmatpush.bf16.msrb.mxu1 %v3655_v59  ;;  %5185 = vst [vmem:[#allocation25_spill] sm:$0xff] %v3715_v49  ;;  %v3009_v1 = vld [vmem:[%s5084_s2 + $0x6c] sm:$0xf]  ;;  %v2582_v2 = vld [vmem:[%s5084_s2 + $0x78] sm:$0xf0]  ;;  %v3750_v36 = vor.u32 %v3011_v61, %v2580_v60 }
  0x37   : > { %v2572_v23 = vld [vmem:[%s5084_s2 + $0x60] sm:$0xf]  ;;  %v3010_v24 = vld [vmem:[%s5084_s2 + $0x6c] sm:$0xf0]  ;;  %v3008_v30 = vld [vmem:[%s5084_s2 + $0x64] sm:$0xf]  ;;  %v3752_v37 = vor.u32 %v3009_v1, %v2582_v2  ;;  %v389_v2 = vor.u32 %v387_v54, %v3636_v42 }
  0x38   : > { %v2574_v31 = vld [vmem:[%s5084_s2 + $0x70] sm:$0xf0]  ;;  %5186 = vst [vmem:[#allocation26_spill] sm:$0xff] %v3750_v36  ;;  %v2564_v39 = vld [vmem:[%s5084_s2 + $0x48] sm:$0xf] }
  0x39   : > { %832 = vmatpush.bf16.msrb.mxu2 %v3677_v6  ;;  %850 = vmatpush.bf16.msrb.mxu3 %v3679_v14  ;;  %5187 = vst [vmem:[#allocation27_spill] sm:$0xff] %v3752_v37  ;;  %v3007_v40 = vld [vmem:[%s5084_s2 + $0x54] sm:$0xf0]  ;;  %v3762_v14 = vor.u32 %v3010_v24, %v2572_v23  ;;  %v3005_v60 = vld [vmem:[%s5084_s2 + $0x4c] sm:$0xf] }
  0x3a   : > { %796 = vmatpush.bf16.msrb.mxu0 %v3689_v26  ;;  %814 = vmatpush.bf16.msrb.mxu1 %v3691_v27  ;;  %v2566_v61 = vld [vmem:[%s5084_s2 + $0x58] sm:$0xf0]  ;;  %v2556_v1 = vld [vmem:[%s5084_s2 + $0x40] sm:$0xf]  ;;  %v3006_v23 = vld [vmem:[%s5084_s2 + $0x4c] sm:$0xf0] }
  0x3b   : > { %v3004_v24 = vld [vmem:[%s5084_s2 + $0x44] sm:$0xf]  ;;  %v2548_v42 = vld [vmem:[%s5084_s2 + $0x28] sm:$0xf]  ;;  %v3003_v54 = vld [vmem:[%s5084_s2 + $0x34] sm:$0xf0]  ;;  %v3799_v6 = vor.u32 %v3006_v23, %v2556_v1 }
  0x3c   : > { %v3000_v1 = vld [vmem:[%s5084_s2 + $0x24] sm:$0xf]  ;;  %v2542_v23 = vld [vmem:[%s5084_s2 + $0x30] sm:$0xf0]  ;;  %v2999_v47 = vld [vmem:[%s5084_s2 + $0x14] sm:$0xf0] }
  0x3d   : > { %833 = vmatpush.bf16.msrb.mxu2 %v3713_v48  ;;  %851 = vmatpush.bf16.msrb.mxu3 %v3715_v49  ;;  %v3764_v48 = vor.u32 %v3008_v30, %v2574_v31  ;;  %v2558_v30 = vld [vmem:[%s5084_s2 + $0x50] sm:$0xf0]  ;;  %v3787_v31 = vor.u32 %v3007_v40, %v2564_v39  ;;  %v3789_v49 = vor.u32 %v3005_v60, %v2566_v61  ;;  %v3001_v39 = vld [vmem:[%s5084_s2 + $0x2c] sm:$0xf]  ;;  %v2550_v40 = vld [vmem:[%s5084_s2 + $0x38] sm:$0xf0] }
  0x3e   : > { %797 = vmatpush.bf16.msrb.mxu0 %v3726_v63  ;;  %815 = vmatpush.bf16.msrb.mxu1 %v3728_v0  ;;  %v2540_v60 = vld [vmem:[%s5084_s2 + $0x20] sm:$0xf]  ;;  %v3002_v61 = vld [vmem:[%s5084_s2 + $0x2c] sm:$0xf0]  ;;  %v2534_v43 = vld [vmem:[%s5084_s2 + $0x18] sm:$0xf0] }
  0x3f   : > { %5188 = vst [vmem:[#allocation28_spill] sm:$0xff] %v3787_v31  ;;  %v2764_v15 = vld [vmem:[%s5084_s2 + $0x2e0] sm:$0xf]  ;;  %v3090_v53 = vld [vmem:[%s5084_s2 + $0x2ec] sm:$0xf0] }
  0x40   : > { %5189 = vst [vmem:[#allocation29_spill] sm:$0xff] %v3789_v49  ;;  %v3088_v41 = vld [vmem:[%s5084_s2 + $0x2e4] sm:$0xf]  ;;  %v2766_v35 = vld [vmem:[%s5084_s2 + $0x2f0] sm:$0xf0] }
  0x41   : > { %834 = vmatpush.bf16.msrb.mxu2 %v3750_v36  ;;  %852 = vmatpush.bf16.msrb.mxu3 %v3752_v37  ;;  %v3801_v36 = vor.u32 %v3004_v24, %v2558_v30  ;;  %v2532_v24 = vld [vmem:[%s5084_s2 + $0x8] sm:$0xf]  ;;  %v3826_v30 = vor.u32 %v3003_v54, %v2548_v42  ;;  %v3828_v37 = vor.u32 %v3001_v39, %v2550_v40  ;;  %v2524_v39 = vld [vmem:[%s5084_s2] sm:$0xf]  ;;  %v2998_v40 = vld [vmem:[%s5084_s2 + $0xc] sm:$0xf0] }
  0x42   : > { %798 = vmatpush.bf16.msrb.mxu0 %v3762_v14  ;;  %816 = vmatpush.bf16.msrb.mxu1 %v3764_v48  ;;  %v3841_v42 = vor.u32 %v3002_v61, %v2540_v60  ;;  %v3843_v54 = vor.u32 %v3000_v1, %v2542_v23  ;;  %v2772_v60 = vld [vmem:[%s5084_s2 + $0x2e8] sm:$0xf]  ;;  %v3091_v61 = vld [vmem:[%s5084_s2 + $0x2f4] sm:$0xf0]  ;;  %v3089_v1 = vld [vmem:[%s5084_s2 + $0x2ec] sm:$0xf]  ;;  %v3874_v9 = vor.u32 %v2999_v47, %v2532_v24 }
  0x43   : > { %565 = vmatmul.bf16.gmra.mxu0 %v389_v2  ;;  %583 = vmatmul.bf16.gmra.mxu1 %v389_v2  ;;  %5190 = vst [vmem:[#allocation30_spill] sm:$0xff] %v3826_v30  ;;  %v2774_v23 = vld [vmem:[%s5084_s2 + $0x2f8] sm:$0xf0]  ;;  %v3889_v47 = vor.u32 %v2998_v40, %v2524_v39  ;;  %v3893_v24 = vor.u32 %v3091_v61, %v2772_v60  ;;  %v2756_v39 = vld [vmem:[%s5084_s2 + $0x2c8] sm:$0xf] }
  0x44   : > { %601 = vmatmul.bf16.gmra.mxu2 %v389_v2  ;;  %619 = vmatmul.bf16.gmra.mxu3 %v389_v2  ;;  %5191 = vst [vmem:[#allocation31_spill] sm:$0xff] %v3828_v37  ;;  %v2997_v2 = vld [vmem:[%s5084_s2 + $0xc] sm:$0xf]  ;;  %v2750_v40 = vld [vmem:[%s5084_s2 + $0x2d0] sm:$0xf0] }
  0x45   : > { %835 = vmatpush.bf16.msrb.mxu2 %v3787_v31  ;;  %853 = vmatpush.bf16.msrb.mxu3 %v3789_v49  ;;  %v2996_v49 = vld [vmem:[%s5084_s2 + $0x4] sm:$0xf]  ;;  %v2526_v31 = vld [vmem:[%s5084_s2 + $0x10] sm:$0xf0]  ;;  %5192 = vst [vmem:[#allocation32_spill] sm:$0xff] %v3874_v9  ;;  %v3876_v4 = vor.u32 %v2997_v2, %v2534_v43  ;;  %v3895_v2 = vor.u32 %v3089_v1, %v2774_v23 }
  0x46   : > { %799 = vmatpush.bf16.msrb.mxu0 %v3799_v6  ;;  %817 = vmatpush.bf16.msrb.mxu1 %v3801_v36  ;;  %v3891_v43 = vor.u32 %v2996_v49, %v2526_v31  ;;  %5194 = vst [vmem:[#allocation34_spill] sm:$0xff] %v3893_v24  ;;  %v3087_v49 = vld [vmem:[%s5084_s2 + $0x2d4] sm:$0xf0]  ;;  %v3084_v31 = vld [vmem:[%s5084_s2 + $0x2c4] sm:$0xf] }
  0x47   : > { %5193 = vst [vmem:[#allocation33_spill] sm:$0xff] %v3876_v4  ;;  %v2740_v60 = vld [vmem:[%s5084_s2 + $0x2a8] sm:$0xf]  ;;  %v3083_v61 = vld [vmem:[%s5084_s2 + $0x2b4] sm:$0xf0]  ;;  %v3940_v1 = vor.u32 %v3087_v49, %v2756_v39  ;;  %v3955_v13 = vor.u32 %v3084_v31, %v2750_v40 }
  0x48   : > { %5195 = vst [vmem:[#allocation35_spill] sm:$0xff] %v3895_v2  ;;  %v3082_v39 = vld [vmem:[%s5084_s2 + $0x2ac] sm:$0xf0]  ;;  %v3133_v49 = vld [vmem:[%s3564_s26] sm:$0xf0]  ;;  %v3975_v31 = vor.u32 %v3083_v61, %v2740_v60 }
  0x49   : > { %836 = vmatpush.bf16.msrb.mxu2 %v3826_v30  ;;  %854 = vmatpush.bf16.msrb.mxu3 %v3828_v37  ;;  %v3897_v37 = vor.u32 %v3090_v53, %v2764_v15  ;;  %v3899_v30 = vor.u32 %v3088_v41, %v2766_v35  ;;  %v3085_v35 = vld [vmem:[%s5084_s2 + $0x2cc] sm:$0xf]  ;;  %v2758_v41 = vld [vmem:[%s5084_s2 + $0x2d8] sm:$0xf0]  ;;  %v2748_v53 = vld [vmem:[%s5084_s2 + $0x2c0] sm:$0xf] }
  0x4a   : > { %800 = vmatpush.bf16.msrb.mxu0 %v3841_v42  ;;  %818 = vmatpush.bf16.msrb.mxu1 %v3843_v54  ;;  %v3086_v15 = vld [vmem:[%s5084_s2 + $0x2cc] sm:$0xf0]  ;;  %5196 = vst [vmem:[#allocation36_spill] sm:$0xff] %v3940_v1  ;;  %v3942_v23 = vor.u32 %v3085_v35, %v2758_v41  ;;  %v3134_v35 = vld [vmem:[%s3564_s26] sm:$0xe] }
  0x4b   : > { %v3080_v41 = vld [vmem:[%s5084_s2 + $0x2a4] sm:$0xf]  ;;  %v2734_v62 = vld [vmem:[%s5084_s2 + $0x2b0] sm:$0xf0]  ;;  %5198 = vst [vmem:[#allocation38_spill] sm:$0xff] %v3975_v31 }
  0x4c   : > { %5197 = vst [vmem:[#allocation37_spill] sm:$0xff] %v3942_v23  ;;  %v3990_v60 = vor.u32 %v3080_v41, %v2734_v62  ;;  %v2716_v61 = vld [vmem:[%s5084_s2 + $0x280] sm:$0xf]  ;;  %v3076_v62 = vld [vmem:[%s5084_s2 + $0x284] sm:$0xf] }
  0x4d   : > { %837 = vmatpush.bf16.msrb.mxu2 %v3874_v9  ;;  %855 = vmatpush.bf16.msrb.mxu3 %v3876_v4  ;;  %v2732_v4 = vld [vmem:[%s5084_s2 + $0x2a0] sm:$0xf]  ;;  %v3953_v9 = vor.u32 %v3086_v15, %v2748_v53  ;;  %v3968_v53 = vor.u32 %v3134_v35, %v3133_v49  ;;  %v3971_v15 = vrot.slane %v3596_v10, 1  ;;  %v2724_v49 = vld [vmem:[%s5084_s2 + $0x288] sm:$0xf] }
  0x4e   : > { %801 = vmatpush.bf16.msrb.mxu0 %v3889_v47  ;;  %819 = vmatpush.bf16.msrb.mxu1 %v3891_v43  ;;  %v3079_v10 = vld [vmem:[%s5084_s2 + $0x294] sm:$0xf0]  ;;  %v3988_v35 = vor.u32 %v3082_v39, %v2732_v4  ;;  %v2718_v4 = vld [vmem:[%s5084_s2 + $0x290] sm:$0xf0]  ;;  %v295_v41 = vld [vmem:[%s3564_s26 + $0x8] sm:$0xf] }
  0x4f   : > { %v2708_v50 = vld [vmem:[%s5084_s2 + $0x268] sm:$0xf]  ;;  %v3075_v46 = vld [vmem:[%s5084_s2 + $0x274] sm:$0xf0]  ;;  %v2662_v8 = vld [vmem:[%s5084_s2 + $0x218] sm:$0xf0] }
  0x50   : > { %v3071_v38 = vld [vmem:[%s5084_s2 + $0x254] sm:$0xf0]  ;;  %vm1188_vm2 = vsmask.f32 6400 }
  0x51   : > { %1104 = vmatpush.bf16.msra.mxu2 %v3893_v24  ;;  %1122 = vmatpush.bf16.msra.mxu3 %v3895_v2  ;;  %v3081_v2 = vld [vmem:[%s5084_s2 + $0x2ac] sm:$0xf]  ;;  %v2742_v24 = vld [vmem:[%s5084_s2 + $0x2b8] sm:$0xf0]  ;;  %v3067_v25 = vld [vmem:[%s5084_s2 + $0x234] sm:$0xf0] }
  0x52   : > { %1068 = vmatpush.bf16.msra.mxu0 %v3897_v37  ;;  %1086 = vmatpush.bf16.msra.mxu1 %v3899_v30  ;;  %v3977_v40 = vor.u32 %v3081_v2, %v2742_v24  ;;  %v3077_v24 = vld [vmem:[%s5084_s2 + $0x28c] sm:$0xf]  ;;  %v2726_v2 = vld [vmem:[%s5084_s2 + $0x298] sm:$0xf0]  ;;  %v3063_v12 = vld [vmem:[%s5084_s2 + $0x214] sm:$0xf0] }
  0x53   : > { %802 = vmatmul.bf16.vlgmr.msrb.gmra.mxu0 %v2995_v19  ;;  %820 = vmatmul.bf16.vlgmr.msrb.gmra.mxu1 %v2995_v19  ;;  %v4019_v58 = vor.u32 %v3077_v24, %v2726_v2  ;;  %v2700_v24 = vld [vmem:[%s5084_s2 + $0x260] sm:$0xf]  ;;  %v629_v2 = vunpack.c.l.b16 %v295_v41  ;;  %v2692_v41 = vld [vmem:[%s5084_s2 + $0x248] sm:$0xf] }
  0x54   : > { %838 = vmatmul.bf16.vlgmr.msrb.gmra.mxu2 %v2995_v19  ;;  %856 = vmatmul.bf16.vlgmr.msrb.gmra.mxu3 %v2995_v19  ;;  %5199 = vst [vmem:[#allocation39_spill] sm:$0xff] %v3977_v40  ;;  %v903_v19 = vrot.slane %v3968_v53, 1 }
  0x55   : > { %1105 = vmatpush.bf16.msra.mxu2 %v3940_v1  ;;  %1123 = vmatpush.bf16.msra.mxu3 %v3942_v23  ;;  %v3078_v23 = vld [vmem:[%s5084_s2 + $0x28c] sm:$0xf0]  ;;  %v4017_v1 = vor.u32 %v3079_v10, %v2724_v49  ;;  %5201 = vst [vmem:[#allocation41_spill] sm:$0xff] %v4019_v58  ;;  %v3073_v49 = vld [vmem:[%s5084_s2 + $0x26c] sm:$0xf] }
  0x56   : > { %1069 = vmatpush.bf16.msra.mxu0 %v3953_v9  ;;  %1087 = vmatpush.bf16.msra.mxu1 %v3955_v13  ;;  %v4012_v39 = vsel %vm902_vm1, %v903_v19, %v3971_v15  ;;  %v4029_v19 = vor.u32 %v3078_v23, %v2716_v61  ;;  %v2710_v10 = vld [vmem:[%s5084_s2 + $0x278] sm:$0xf0]  ;;  %v3074_v23 = vld [vmem:[%s5084_s2 + $0x26c] sm:$0xf0]  ;;  %v3072_v61 = vld [vmem:[%s5084_s2 + $0x264] sm:$0xf] }
  0x57   : > { %5200 = vst [vmem:[#allocation40_spill] sm:$0xff] %v4017_v1  ;;  %v4065_v34 = vor.u32 %v3074_v23, %v2700_v24  ;;  %v3070_v24 = vld [vmem:[%s5084_s2 + $0x24c] sm:$0xf0]  ;;  %v3068_v23 = vld [vmem:[%s5084_s2 + $0x244] sm:$0xf] }
  0x58   : > { %5202 = vst [vmem:[#allocation42_spill] sm:$0xff] %v4029_v19 }
  0x59   : > { %1106 = vmatpush.bf16.msra.mxu2 %v3975_v31  ;;  %1124 = vmatpush.bf16.msra.mxu3 %v3977_v40  ;;  %v4031_v31 = vor.u32 %v3076_v62, %v2718_v4  ;;  %v2702_v62 = vld [vmem:[%s5084_s2 + $0x270] sm:$0xf0]  ;;  %v4053_v4 = vor.u32 %v3075_v46, %v2708_v50  ;;  %v4055_v40 = vor.u32 %v3073_v49, %v2710_v10  ;;  %v3069_v46 = vld [vmem:[%s5084_s2 + $0x24c] sm:$0xf]  ;;  %v2694_v50 = vld [vmem:[%s5084_s2 + $0x258] sm:$0xf0] }
  0x5a   : > { %1070 = vmatpush.bf16.msra.mxu0 %v3988_v35  ;;  %1088 = vmatpush.bf16.msra.mxu1 %v3990_v60  ;;  %5206 = vst [vmem:[#allocation46_spill] sm:$0xff] %v4065_v34  ;;  %v2684_v49 = vld [vmem:[%s5084_s2 + $0x240] sm:$0xf]  ;;  %v631_v10 = vpack.c.b16 %v629_v2, %v629_v2  ;;  %v2676_v2 = vld [vmem:[%s5084_s2 + $0x228] sm:$0xf] }
  0x5b   : > { %5203 = vst [vmem:[#allocation43_spill] sm:$0xff] %v4031_v31  ;;  %v4101_v21 = vor.u32 %v3070_v24, %v2684_v49  ;;  %v3064_v49 = vld [vmem:[%s5084_s2 + $0x224] sm:$0xf]  ;;  %v2670_v24 = vld [vmem:[%s5084_s2 + $0x230] sm:$0xf0] }
  0x5c   : > { %5204 = vst [vmem:[#allocation44_spill] sm:$0xff] %v4053_v4 }
  0x5d   : > { %1107 = vmatpush.bf16.msra.mxu2 %v4017_v1  ;;  %1125 = vmatpush.bf16.msra.mxu3 %v4019_v58  ;;  %5205 = vst [vmem:[#allocation45_spill] sm:$0xff] %v4055_v40  ;;  %v4067_v1 = vor.u32 %v3072_v61, %v2702_v62  ;;  %v2686_v61 = vld [vmem:[%s5084_s2 + $0x250] sm:$0xf0]  ;;  %v4089_v62 = vor.u32 %v3071_v38, %v2692_v41  ;;  %v3065_v38 = vld [vmem:[%s5084_s2 + $0x22c] sm:$0xf] }
  0x5e   : > { %1071 = vmatpush.bf16.msra.mxu0 %v4029_v19  ;;  %1089 = vmatpush.bf16.msra.mxu1 %v4031_v31  ;;  %v4091_v58 = vor.u32 %v3069_v46, %v2694_v50  ;;  %5210 = vst [vmem:[#allocation50_spill] sm:$0xff] %v4101_v21  ;;  %v2678_v41 = vld [vmem:[%s5084_s2 + $0x238] sm:$0xf0]  ;;  %v2668_v46 = vld [vmem:[%s5084_s2 + $0x220] sm:$0xf] }
  0x5f   : > { %5207 = vst [vmem:[#allocation47_spill] sm:$0xff] %v4067_v1  ;;  %v3066_v50 = vld [vmem:[%s5084_s2 + $0x22c] sm:$0xf0]  ;;  %v3120_v31 = vld [vmem:[%s5084_s2 + $0x3e4] sm:$0xf] }
  0x60   : > { %5208 = vst [vmem:[#allocation48_spill] sm:$0xff] %v4089_v62  ;;  %v2894_v19 = vld [vmem:[%s5084_s2 + $0x3f0] sm:$0xf0] }
  0x61   : > { %1108 = vmatpush.bf16.msra.mxu2 %v4053_v4  ;;  %1126 = vmatpush.bf16.msra.mxu3 %v4055_v40  ;;  %5209 = vst [vmem:[#allocation49_spill] sm:$0xff] %v4091_v58  ;;  %v4103_v4 = vor.u32 %v3068_v23, %v2686_v61  ;;  %v2660_v23 = vld [vmem:[%s5084_s2 + $0x208] sm:$0xf]  ;;  %v4128_v61 = vor.u32 %v3067_v25, %v2676_v2 }
  0x62   : > { %1072 = vmatpush.bf16.msra.mxu0 %v4065_v34  ;;  %1090 = vmatpush.bf16.msra.mxu1 %v4067_v1  ;;  %v4130_v40 = vor.u32 %v3065_v38, %v2678_v41  ;;  %v4143_v25 = vor.u32 %v3066_v50, %v2668_v46  ;;  %v4145_v2 = vor.u32 %v3064_v49, %v2670_v24  ;;  %v2652_v38 = vld [vmem:[%s5084_s2 + $0x200] sm:$0xf]  ;;  %v3062_v41 = vld [vmem:[%s5084_s2 + $0x20c] sm:$0xf0]  ;;  %v2900_v46 = vld [vmem:[%s5084_s2 + $0x3e8] sm:$0xf] }
  0x63   : > { %5211 = vst [vmem:[#allocation51_spill] sm:$0xff] %v4103_v4  ;;  %807 = vmatmul.bf16.gmra.mxu0 %v631_v10  ;;  %825 = vmatmul.bf16.gmra.mxu1 %v631_v10  ;;  %v3123_v50 = vld [vmem:[%s5084_s2 + $0x3f4] sm:$0xf0]  ;;  %v3121_v49 = vld [vmem:[%s5084_s2 + $0x3ec] sm:$0xf] }
  0x64   : > { %843 = vmatmul.bf16.gmra.mxu2 %v631_v10  ;;  %861 = vmatmul.bf16.gmra.mxu3 %v631_v10  ;;  %5212 = vst [vmem:[#allocation52_spill] sm:$0xff] %v4128_v61  ;;  %v3061_v10 = vld [vmem:[%s5084_s2 + $0x20c] sm:$0xf]  ;;  %v2902_v24 = vld [vmem:[%s5084_s2 + $0x3f8] sm:$0xf0] }
  0x65   : > { %1109 = vmatpush.bf16.msra.mxu2 %v4089_v62  ;;  %1127 = vmatpush.bf16.msra.mxu3 %v4091_v58  ;;  %5213 = vst [vmem:[#allocation53_spill] sm:$0xff] %v4130_v40  ;;  %v3060_v58 = vld [vmem:[%s5084_s2 + $0x204] sm:$0xf]  ;;  %v2654_v62 = vld [vmem:[%s5084_s2 + $0x210] sm:$0xf0]  ;;  %v4178_v1 = vor.u32 %v3061_v10, %v2662_v8  ;;  %v4197_v10 = vor.u32 %v3121_v49, %v2902_v24  ;;  %v1193_v24 = vshll.u32 %v3968_v53, 16 }
  0x66   : > { %1073 = vmatpush.bf16.msra.mxu0 %v4101_v21  ;;  %1091 = vmatpush.bf16.msra.mxu1 %v4103_v4  ;;  %5214 = vst [vmem:[#allocation54_spill] sm:$0xff] %v4145_v2  ;;  %v2892_v4 = vld [vmem:[%s5084_s2 + $0x3e0] sm:$0xf]  ;;  %v4176_v21 = vor.u32 %v3063_v12, %v2660_v23  ;;  %v3122_v34 = vld [vmem:[%s5084_s2 + $0x3ec] sm:$0xf0]  ;;  %v4191_v12 = vor.u32 %v3062_v41, %v2652_v38  ;;  %v1190_v41 = vshrl.u32 %v3968_v53, 16 }
  0x67   : > { %5216 = vst [vmem:[#allocation56_spill] sm:$0xff] %v4178_v1  ;;  %v4193_v8 = vor.u32 %v3060_v58, %v2654_v62  ;;  %v4195_v23 = vor.u32 %v3123_v50, %v2900_v46  ;;  %v3119_v58 = vld [vmem:[%s5084_s2 + $0x3d4] sm:$0xf0]  ;;  %v3117_v62 = vld [vmem:[%s5084_s2 + $0x3cc] sm:$0xf] }
  0x68   : > { %5215 = vst [vmem:[#allocation55_spill] sm:$0xff] %v4176_v21  ;;  %v2878_v38 = vld [vmem:[%s5084_s2 + $0x3d0] sm:$0xf0]  ;;  %v2868_v46 = vld [vmem:[%s5084_s2 + $0x3a8] sm:$0xf] }
  0x69   : > { %1110 = vmatpush.bf16.msra.mxu2 %v4128_v61  ;;  %1128 = vmatpush.bf16.msra.mxu3 %v4130_v40  ;;  %5217 = vst [vmem:[#allocation57_spill] sm:$0xff] %v4191_v12  ;;  %v4199_v40 = vor.u32 %v3122_v34, %v2892_v4  ;;  %v4201_v61 = vor.u32 %v3120_v31, %v2894_v19  ;;  %v2886_v34 = vld [vmem:[%s5084_s2 + $0x3d8] sm:$0xf0]  ;;  %v2876_v31 = vld [vmem:[%s5084_s2 + $0x3c0] sm:$0xf] }
  0x6a   : > { %1074 = vmatpush.bf16.msra.mxu0 %v4143_v25  ;;  %1092 = vmatpush.bf16.msra.mxu1 %v4145_v2  ;;  %5218 = vst [vmem:[#allocation58_spill] sm:$0xff] %v4193_v8  ;;  %v2884_v2 = vld [vmem:[%s5084_s2 + $0x3c8] sm:$0xf]  ;;  %v3118_v19 = vld [vmem:[%s5084_s2 + $0x3cc] sm:$0xf0] }
  0x6b   : > { %5219 = vst [vmem:[#allocation59_spill] sm:$0xff] %v4195_v23  ;;  %v3116_v4 = vld [vmem:[%s5084_s2 + $0x3c4] sm:$0xf]  ;;  %v3115_v50 = vld [vmem:[%s5084_s2 + $0x3b4] sm:$0xf0] }
  0x6c   : > { %5220 = vst [vmem:[#allocation60_spill] sm:$0xff] %v4197_v10  ;;  %v3113_v49 = vld [vmem:[%s5084_s2 + $0x3ac] sm:$0xf]  ;;  %v4260_v53 = vor.u32 %v3116_v4, %v2878_v38  ;;  %v2852_v38 = vld [vmem:[%s5084_s2 + $0x388] sm:$0xf] }
  0x6d   : > { %5221 = vst [vmem:[#allocation61_spill] sm:$0xff] %v4199_v40  ;;  %1111 = vmatpush.bf16.msra.mxu2 %v4176_v21  ;;  %1129 = vmatpush.bf16.msra.mxu3 %v4178_v1  ;;  %v4248_v1 = vor.u32 %v3119_v58, %v2884_v2  ;;  %v4250_v21 = vor.u32 %v3117_v62, %v2886_v34  ;;  %v1195_v2 = vrot.slane %v1193_v24, 2  ;;  %v3112_v34 = vld [vmem:[%s5084_s2 + $0x3a4] sm:$0xf] }
  0x6e   : > { %5222 = vst [vmem:[#allocation62_spill] sm:$0xff] %v4201_v61  ;;  %1075 = vmatpush.bf16.msra.mxu0 %v4191_v12  ;;  %1093 = vmatpush.bf16.msra.mxu1 %v4193_v8  ;;  %v2860_v8 = vld [vmem:[%s5084_s2 + $0x3a0] sm:$0xf]  ;;  %v1192_v12 = vrot.slane %v1190_v41, 1  ;;  %v3111_v41 = vld [vmem:[%s5084_s2 + $0x394] sm:$0xf0] }
  0x6f   : > { %5223 = vst [vmem:[#allocation63_spill] sm:$0xff] %v4248_v1  ;;  %v3108_v24 = vld [vmem:[%s5084_s2 + $0x384] sm:$0xf] }
  0x70   : > { %5224 = vst [vmem:[#allocation64_spill] sm:$0xff] %v4250_v21 }
  0x71   : > { %1404 = vmatpush.bf16.msrb.mxu2 %v4195_v23  ;;  %1422 = vmatpush.bf16.msrb.mxu3 %v4197_v10  ;;  %v1198_v10 = vshrl.u32 %v3603_v20, 16  ;;  %v1201_v23 = vshll.u32 %v3603_v20, 16  ;;  %v3114_v20 = vld [vmem:[%s5084_s2 + $0x3ac] sm:$0xf0] }
  0x72   : > { %1368 = vmatpush.bf16.msrb.mxu0 %v4199_v40  ;;  %1386 = vmatpush.bf16.msrb.mxu1 %v4201_v61  ;;  %v4252_v61 = vor.u32 %v3118_v19, %v2876_v31  ;;  %v2870_v40 = vld [vmem:[%s5084_s2 + $0x3b8] sm:$0xf0]  ;;  %v2862_v31 = vld [vmem:[%s5084_s2 + $0x3b0] sm:$0xf0]  ;;  %v1196_v19 = vor.u32 %v1195_v2, %v1192_v12  ;;  %v4319_v2 = vor.u32 %v3111_v41, %v2852_v38  ;;  %v3105_v38 = vld [vmem:[%s5084_s2 + $0x36c] sm:$0xf] }
  0x73   : > { %v1200_v58 = vrot.slane %v1198_v10, 1  ;;  %v1203_v62 = vrot.slane %v1201_v23, 2  ;;  %1076 = vmatmul.bf16.vlgmr.msra.gmra.mxu0 %v4012_v39  ;;  %1094 = vmatmul.bf16.vlgmr.msra.gmra.mxu1 %v4012_v39  ;;  %v4279_v23 = vor.u32 %v3115_v50, %v2868_v46  ;;  %v4281_v4 = vor.u32 %v3113_v49, %v2870_v40  ;;  %v3109_v40 = vld [vmem:[%s5084_s2 + $0x38c] sm:$0xf]  ;;  %v2854_v46 = vld [vmem:[%s5084_s2 + $0x398] sm:$0xf0] }
  0x74   : > { %1112 = vmatmul.bf16.vlgmr.msra.gmra.mxu2 %v4012_v39  ;;  %1130 = vmatmul.bf16.vlgmr.msra.gmra.mxu3 %v4012_v39  ;;  %v4291_v39 = vor.u32 %v3114_v20, %v2860_v8  ;;  %v4293_v12 = vor.u32 %v3112_v34, %v2862_v31  ;;  %v2844_v50 = vld [vmem:[%s5084_s2 + $0x380] sm:$0xf]  ;;  %v3110_v8 = vld [vmem:[%s5084_s2 + $0x38c] sm:$0xf0]  ;;  %v2846_v20 = vld [vmem:[%s5084_s2 + $0x390] sm:$0xf0] }
  0x75   : > { %v4275_v10 = vor.u32 %v1203_v62, %v1200_v58  ;;  %1405 = vmatpush.bf16.msrb.mxu2 %v4248_v1  ;;  %1423 = vmatpush.bf16.msrb.mxu3 %v4250_v21  ;;  %5225 = vst [vmem:[#allocation65_spill] sm:$0xff] %v4279_v23  ;;  %v4321_v58 = vor.u32 %v3109_v40, %v2854_v46  ;;  %v2836_v62 = vld [vmem:[%s5084_s2 + $0x368] sm:$0xf]  ;;  %v3107_v34 = vld [vmem:[%s5084_s2 + $0x374] sm:$0xf0] }
  0x76   : > { %5226 = vst [vmem:[#allocation66_spill] sm:$0xff] %v4281_v4  ;;  %1369 = vmatpush.bf16.msrb.mxu0 %v4252_v61  ;;  %1387 = vmatpush.bf16.msrb.mxu1 %v4260_v53  ;;  %v4331_v31 = vor.u32 %v3110_v8, %v2844_v50  ;;  %v2838_v41 = vld [vmem:[%s5084_s2 + $0x378] sm:$0xf0]  ;;  %v2828_v40 = vld [vmem:[%s5084_s2 + $0x360] sm:$0xf] }
  0x77   : > { %v4306_v49 = vsel %vm1188_vm2, %v1196_v19, %v4275_v10  ;;  %5227 = vst [vmem:[#allocation67_spill] sm:$0xff] %v4319_v2  ;;  %v4333_v19 = vor.u32 %v3108_v24, %v2846_v20  ;;  %v3106_v46 = vld [vmem:[%s5084_s2 + $0x36c] sm:$0xf0]  ;;  %v3104_v50 = vld [vmem:[%s5084_s2 + $0x364] sm:$0xf]  ;;  %v4355_v24 = vor.u32 %v3107_v34, %v2836_v62  ;;  %v4357_v20 = vor.u32 %v3105_v38, %v2838_v41 }
  0x78   : > { %5228 = vst [vmem:[#allocation68_spill] sm:$0xff] %v4321_v58  ;;  %v2830_v8 = vld [vmem:[%s5084_s2 + $0x370] sm:$0xf0]  ;;  %v4367_v21 = vor.u32 %v3106_v46, %v2828_v40  ;;  %v3101_v62 = vld [vmem:[%s5084_s2 + $0x34c] sm:$0xf] }
  0x79   : > { %1406 = vmatpush.bf16.msrb.mxu2 %v4279_v23  ;;  %1424 = vmatpush.bf16.msrb.mxu3 %v4281_v4  ;;  %5229 = vst [vmem:[#allocation69_spill] sm:$0xff] %v4333_v19  ;;  %v2820_v4 = vld [vmem:[%s5084_s2 + $0x348] sm:$0xf]  ;;  %v3103_v23 = vld [vmem:[%s5084_s2 + $0x354] sm:$0xf0] }
  0x7a   : > { %1370 = vmatpush.bf16.msrb.mxu0 %v4291_v39  ;;  %1388 = vmatpush.bf16.msrb.mxu1 %v4293_v12  ;;  %5230 = vst [vmem:[#allocation70_spill] sm:$0xff] %v4355_v24  ;;  %v2822_v34 = vld [vmem:[%s5084_s2 + $0x358] sm:$0xf0]  ;;  %v2812_v38 = vld [vmem:[%s5084_s2 + $0x340] sm:$0xf] }
  0x7b   : > { %5231 = vst [vmem:[#allocation71_spill] sm:$0xff] %v4357_v20  ;;  %v3102_v41 = vld [vmem:[%s5084_s2 + $0x34c] sm:$0xf0]  ;;  %v3100_v40 = vld [vmem:[%s5084_s2 + $0x344] sm:$0xf] }
  0x7c   : > { %v2814_v46 = vld [vmem:[%s5084_s2 + $0x350] sm:$0xf0]  ;;  %v3099_v1 = vld [vmem:[%s5084_s2 + $0x334] sm:$0xf0] }
  0x7d   : > { %1407 = vmatpush.bf16.msrb.mxu2 %v4319_v2  ;;  %1425 = vmatpush.bf16.msrb.mxu3 %v4321_v58  ;;  %v4369_v2 = vor.u32 %v3104_v50, %v2830_v8  ;;  %v4391_v50 = vor.u32 %v3103_v23, %v2820_v4  ;;  %v4393_v8 = vor.u32 %v3101_v62, %v2822_v34  ;;  %v2804_v58 = vld [vmem:[%s5084_s2 + $0x328] sm:$0xf]  ;;  %v3097_v23 = vld [vmem:[%s5084_s2 + $0x32c] sm:$0xf]  ;;  %v2806_v4 = vld [vmem:[%s5084_s2 + $0x338] sm:$0xf0] }
  0x7e   : > { %1371 = vmatpush.bf16.msrb.mxu0 %v4331_v31  ;;  %1389 = vmatpush.bf16.msrb.mxu1 %v4333_v19  ;;  %v4403_v19 = vor.u32 %v3102_v41, %v2812_v38  ;;  %v2796_v62 = vld [vmem:[%s5084_s2 + $0x320] sm:$0xf]  ;;  %v3098_v34 = vld [vmem:[%s5084_s2 + $0x32c] sm:$0xf0]  ;;  %v3096_v38 = vld [vmem:[%s5084_s2 + $0x324] sm:$0xf] }
  0x7f   : > { %5232 = vst [vmem:[#allocation72_spill] sm:$0xff] %v4369_v2  ;;  %v2798_v41 = vld [vmem:[%s5084_s2 + $0x330] sm:$0xf0] }
  0x80   : > { %5233 = vst [vmem:[#allocation73_spill] sm:$0xff] %v4391_v50 }
  0x81   : > { %1408 = vmatpush.bf16.msrb.mxu2 %v4355_v24  ;;  %1426 = vmatpush.bf16.msrb.mxu3 %v4357_v20  ;;  %5234 = vst [vmem:[#allocation74_spill] sm:$0xff] %v4393_v8  ;;  %v4405_v24 = vor.u32 %v3100_v40, %v2814_v46  ;;  %v4431_v40 = vor.u32 %v3099_v1, %v2804_v58  ;;  %v2788_v20 = vld [vmem:[%s5084_s2 + $0x308] sm:$0xf]  ;;  %v3093_v1 = vld [vmem:[%s5084_s2 + $0x30c] sm:$0xf] }
  0x82   : > { %1372 = vmatpush.bf16.msrb.mxu0 %v4367_v21  ;;  %1390 = vmatpush.bf16.msrb.mxu1 %v4369_v2  ;;  %v4433_v46 = vor.u32 %v3097_v23, %v2806_v4  ;;  %v3095_v2 = vld [vmem:[%s5084_s2 + $0x314] sm:$0xf0]  ;;  %v2790_v58 = vld [vmem:[%s5084_s2 + $0x318] sm:$0xf0]  ;;  %v2780_v23 = vld [vmem:[%s5084_s2 + $0x300] sm:$0xf] }
  0x83   : > { %5235 = vst [vmem:[#allocation75_spill] sm:$0xff] %v4405_v24  ;;  %1081 = vmatmul.bf16.gmra.mxu0 %v3971_v15  ;;  %1099 = vmatmul.bf16.gmra.mxu1 %v3971_v15  ;;  %v3094_v4 = vld [vmem:[%s5084_s2 + $0x30c] sm:$0xf0] }
  0x84   : > { %1117 = vmatmul.bf16.gmra.mxu2 %v3971_v15  ;;  %1135 = vmatmul.bf16.gmra.mxu3 %v3971_v15  ;;  %v4443_v15 = vor.u32 %v3098_v34, %v2796_v62  ;;  %v3092_v62 = vld [vmem:[%s5084_s2 + $0x304] sm:$0xf]  ;;  %v2782_v34 = vld [vmem:[%s5084_s2 + $0x310] sm:$0xf0] }
  0x85   : > { %1409 = vmatpush.bf16.msrb.mxu2 %v4391_v50  ;;  %1427 = vmatpush.bf16.msrb.mxu3 %v4393_v8  ;;  %v4445_v50 = vor.u32 %v3096_v38, %v2798_v41  ;;  %v4467_v38 = vor.u32 %v3095_v2, %v2788_v20  ;;  %v4469_v41 = vor.u32 %v3093_v1, %v2790_v58 }
  0x86   : > { %1373 = vmatpush.bf16.msrb.mxu0 %v4403_v19  ;;  %1391 = vmatpush.bf16.msrb.mxu1 %v4405_v24  ;;  %v4473_v8 = vor.u32 %v3094_v4, %v2780_v23  ;;  %v4475_v24 = vor.u32 %v3092_v62, %v2782_v34 }
  0x89   : > { %1410 = vmatpush.bf16.msrb.mxu2 %v4431_v40  ;;  %1428 = vmatpush.bf16.msrb.mxu3 %v4433_v46 }
  0x8a   : > { %1374 = vmatpush.bf16.msrb.mxu0 %v4443_v15  ;;  %1392 = vmatpush.bf16.msrb.mxu1 %v4445_v50 }
  0x8d   : > { %1411 = vmatpush.bf16.msrb.mxu2 %v4467_v38  ;;  %1429 = vmatpush.bf16.msrb.mxu3 %v4469_v41 }
  0x8e   : > { %1375 = vmatpush.bf16.msrb.mxu0 %v4473_v8  ;;  %1393 = vmatpush.bf16.msrb.mxu1 %v4475_v24 }
  0x91   : > { %1721 = vmatpush.bf16.msra.mxu2 %v3279_v3  ;;  %1739 = vmatpush.bf16.msra.mxu3 %v3290_v7 }
  0x93   : > { %1376 = vmatmul.bf16.vlgmr.msrb.gmra.mxu0 %v4306_v49  ;;  %1394 = vmatmul.bf16.vlgmr.msrb.gmra.mxu1 %v4306_v49 }
  0x94   : > { %1412 = vmatmul.bf16.vlgmr.msrb.gmra.mxu2 %v4306_v49  ;;  %1430 = vmatmul.bf16.vlgmr.msrb.gmra.mxu3 %v4306_v49 }
  0x95   : > { %1722 = vmatpush.bf16.msra.mxu2 %v3317_v16  ;;  %1740 = vmatpush.bf16.msra.mxu3 %v3319_v17 }
  0x99   : > { %1723 = vmatpush.bf16.msra.mxu2 %v3354_v29  ;;  %1741 = vmatpush.bf16.msra.mxu3 %v3367_v33 }
  0x9d   : > { %1724 = vmatpush.bf16.msra.mxu2 %v3399_v44  ;;  %1742 = vmatpush.bf16.msra.mxu3 %v3403_v45 }
  0xa1   : > { %1725 = vmatpush.bf16.msra.mxu2 %v3435_v56  ;;  %1743 = vmatpush.bf16.msra.mxu3 %v3439_v57 }
  0xa3   : > { %1381 = vmatmul.bf16.gmra.mxu0 %v4275_v10  ;;  %1399 = vmatmul.bf16.gmra.mxu1 %v4275_v10 }
  0xa4   : > { %1417 = vmatmul.bf16.gmra.mxu2 %v4275_v10  ;;  %1435 = vmatmul.bf16.gmra.mxu3 %v4275_v10 }
  0xa5   : > { %1726 = vmatpush.bf16.msra.mxu2 %v3471_v5  ;;  %1744 = vmatpush.bf16.msra.mxu3 %v3484_v11 }
  0xa9   : > { %1727 = vmatpush.bf16.msra.mxu2 %v3520_v28  ;;  %1745 = vmatpush.bf16.msra.mxu3 %v3533_v32 }
  0xad   : > { %1728 = vmatpush.bf16.msra.mxu2 %v3576_v51  ;;  %1746 = vmatpush.bf16.msra.mxu3 %v3578_v52  ;;  %v4535_v51 = vld [vmem:[%s4530_s9 + $0x8] sm:$0xf]  ;;  %v1693_v52 = vld [vmem:[%s4530_s9 + $0xc] sm:$0x1] }
  0xb0   : > { %v561_v3 = vpop.f32.mrf.mxu0  ;;  %v579_v7 = vpop.f32.mrf.mxu1 }
  0xb1   : > { %1803 = vmatpush.bf16.msrb.mxu2 %v3600_v18  ;;  %1821 = vmatpush.bf16.msrb.mxu3 %v3605_v22  ;;  %v5161_v18 = vunpack.c.l.b16 %v4535_v51  ;;  %v1701_v22 = vunpack.c.l.b16 %v1693_v52 }
  0xb5   : > { %1804 = vmatpush.bf16.msrb.mxu2 %v3653_v55  ;;  %1822 = vmatpush.bf16.msrb.mxu3 %v3655_v59  ;;  %v3130_v55 = vld [vmem:[%s4530_s9] sm:$0xff]   ;;  %v4544_v59 = vpack.c.b16 %v1701_v22, %v5161_v18 }
  0xb6   : > { %v5240_v22 = vld [vmem:[#allocation50_spill] sm:$0xff] }
  0xb7   : > { %v597_v16 = vpop.f32.mrf.mxu2  ;;  %v615_v17 = vpop.f32.mrf.mxu3  ;;  %v1716_v4 = vshrl.u32 %v4544_v59, 16 }
  0xb8   : > { %v4511_v29 = vpop.f32.mrf.mxu0  ;;  %v4513_v33 = vpop.f32.mrf.mxu1 }
  0xb9   : > { %1805 = vmatpush.bf16.msrb.mxu2 %v3689_v26  ;;  %1823 = vmatpush.bf16.msrb.mxu3 %v3691_v27  ;;  %v1712_v27 = vshll.u32 %v4544_v59, 16 }
  0xbd   : > { %1806 = vmatpush.bf16.msrb.mxu2 %v3726_v63  ;;  %1824 = vmatpush.bf16.msrb.mxu3 %v3728_v0 }
  0xbf   : > { %v4519_v44 = vpop.f32.mrf.mxu2  ;;  %v4521_v45 = vpop.f32.mrf.mxu3 }
  0xc0   : > { %v566_v56 = vpop.f32.mrf.mxu0  ;;  %v584_v57 = vpop.f32.mrf.mxu1 }
  0xc1   : > { %1807 = vmatpush.bf16.msrb.mxu2 %v3762_v14  ;;  %1825 = vmatpush.bf16.msrb.mxu3 %v3764_v48  ;;  %v1705_v14 = vshrl.u32 %v3130_v55, 16 }
  0xc5   : > { %1808 = vmatpush.bf16.msrb.mxu2 %v3799_v6  ;;  %1826 = vmatpush.bf16.msrb.mxu3 %v3801_v36  ;;  %v1707_v6 = vshll.u32 %v3130_v55, 16  ;;  %v5241_v55 = vld [vmem:[#allocation51_spill] sm:$0xff] }
  0xc7   : > { %v602_v5 = vpop.f32.mrf.mxu2  ;;  %v620_v11 = vpop.f32.mrf.mxu3  ;;  %v1709_v26 = vrot.slane %v1707_v6, 1  ;;  %v5242_v6 = vld [vmem:[#allocation54_spill] sm:$0xff] }
  0xc8   : > { %v568_v28 = vpop.f32.mrf.mxu0  ;;  %v586_v32 = vpop.f32.mrf.mxu1 }
  0xc9   : > { %1809 = vmatpush.bf16.msrb.mxu2 %v3841_v42  ;;  %1827 = vmatpush.bf16.msrb.mxu3 %v3843_v54  ;;  %v1710_v42 = vor.u32 %v1709_v26, %v1705_v14  ;;  %v1714_v54 = vrot.slane %v1712_v27, 1 }
  0xcd   : > { %1810 = vmatpush.bf16.msrb.mxu2 %v3889_v47  ;;  %1828 = vmatpush.bf16.msrb.mxu3 %v3891_v43  ;;  %v4552_v43 = vsel %vm374_vm0, %v1710_v42, %v1714_v54 }
  0xce   : > { %1729 = vmatmul.bf16.vlgmr.msra.gmra.mxu2 %v4552_v43  ;;  %1747 = vmatmul.bf16.vlgmr.msra.gmra.mxu3 %v4552_v43 }
  0xcf   : > { %v604_v48 = vpop.f32.mrf.mxu2  ;;  %v622_v63 = vpop.f32.mrf.mxu3 }
  0xd0   : > { %v803_v0 = vpop.f32.mrf.mxu0  ;;  %v821_v36 = vpop.f32.mrf.mxu1  ;;  %v4602_v63 = vld [vmem:[%s4530_s9] sm:$0xff] }
  0xd1   : > { %v4547_v10 = vadd.f32 %v803_v0, %v561_v3  ;;  %v4549_v47 = vadd.f32 %v821_v36, %v579_v7  ;;  %1884 = vmatpush.bf16.msra.mxu2 %v3897_v37  ;;  %1902 = vmatpush.bf16.msra.mxu3 %v3899_v30  ;;  %v5236_v3 = vld [vmem:[#allocation42_spill] sm:$0xff]  ;;  %v5237_v7 = vld [vmem:[#allocation43_spill] sm:$0xff]  ;;  %v5245_v0 = vld [vmem:[#allocation61_spill] sm:$0xff] }
  0xd5   : > { %1885 = vmatpush.bf16.msra.mxu2 %v3953_v9  ;;  %1903 = vmatpush.bf16.msra.mxu3 %v3955_v13  ;;  %v4581_v13 = vor.u32 %v1716_v4, %v1714_v54  ;;  %v2994_v4 = vld [vmem:[%s5085_s3 + $0x78] sm:$0xff] }
  0xd6   : > { %1660 = vmatpush.bf16.msra.mxu1 %v2994_v4 }
  0xd7   : > { %v839_v49 = vpop.f32.mrf.mxu2  ;;  %v857_v2 = vpop.f32.mrf.mxu3 }
  0xd8   : > { %v4558_v20 = vadd.f32 %v839_v49, %v597_v16  ;;  %v4560_v1 = vadd.f32 %v857_v2, %v615_v17  ;;  %v4562_v58 = vpop.f32.mrf.mxu0  ;;  %v4564_v23 = vpop.f32.mrf.mxu1  ;;  %v2986_v2 = vld [vmem:[%s5085_s3 + $0x38] sm:$0xff] }
  0xd9   : > { %1886 = vmatpush.bf16.msra.mxu2 %v3988_v35  ;;  %1904 = vmatpush.bf16.msra.mxu3 %v3990_v60  ;;  %v5238_v35 = vld [vmem:[#allocation46_spill] sm:$0xff]  ;;  %v5239_v60 = vld [vmem:[#allocation47_spill] sm:$0xff] }
  0xda   : > { %1642 = vmatpush.bf16.msra.mxu0 %v2986_v2 }
  0xdd   : > { %1887 = vmatpush.bf16.msra.mxu2 %v5236_v3  ;;  %1905 = vmatpush.bf16.msra.mxu3 %v5237_v7  ;;  %v5247_v3 = vld [vmem:[#allocation69_spill] sm:$0xff]  ;;  %v4640_v7 = vld [vmem:[%s5085_s3 + $0x30] sm:$0xff] }
  0xde   : > { %1734 = vmatmul.bf16.gmra.mxu2 %v4581_v13  ;;  %1752 = vmatmul.bf16.gmra.mxu3 %v4581_v13 }
  0xdf   : > { %v4570_v37 = vpop.f32.mrf.mxu2  ;;  %v4572_v30 = vpop.f32.mrf.mxu3  ;;  %1643 = vmatpush.bf16.msra.mxu0 %v4640_v7 }
  0xe0   : > { %v808_v62 = vpop.f32.mrf.mxu0  ;;  %v826_v34 = vpop.f32.mrf.mxu1 }
  0xe1   : > { %v4577_v16 = vadd.f32 %v808_v62, %v566_v56  ;;  %v4579_v9 = vadd.f32 %v826_v34, %v584_v57  ;;  %1888 = vmatpush.bf16.msra.mxu2 %v5238_v35  ;;  %1906 = vmatpush.bf16.msra.mxu3 %v5239_v60  ;;  %v4645_v35 = vld [vmem:[%s5085_s3 + $0x70] sm:$0xff] }
  0xe2   : > { %1661 = vmatpush.bf16.msra.mxu1 %v4645_v35 }
  0xe5   : > { %1889 = vmatpush.bf16.msra.mxu2 %v5240_v22  ;;  %1907 = vmatpush.bf16.msra.mxu3 %v5241_v55 }
  0xe7   : > { %v844_v17 = vpop.f32.mrf.mxu2  ;;  %v862_v28 = vpop.f32.mrf.mxu3 }
  0xe8   : > { %v4587_v32 = vadd.f32 %v844_v17, %v602_v5  ;;  %v4589_v52 = vadd.f32 %v862_v28, %v620_v11  ;;  %v810_v56 = vpop.f32.mrf.mxu0  ;;  %v828_v57 = vpop.f32.mrf.mxu1  ;;  %v5243_v5 = vld [vmem:[#allocation57_spill] sm:$0xff]  ;;  %v5244_v11 = vld [vmem:[#allocation58_spill] sm:$0xff]  ;;  %v4661_v17 = vld [vmem:[%s5085_s3 + $0x68] sm:$0xff] }
  0xe9   : > { %1890 = vmatpush.bf16.msra.mxu2 %v4143_v25  ;;  %1908 = vmatpush.bf16.msra.mxu3 %v5242_v6  ;;  %v5246_v25 = vld [vmem:[#allocation62_spill] sm:$0xff]  ;;  %v5248_v28 = vld [vmem:[#allocation72_spill] sm:$0xff] }
  0xea   : > { %1662 = vmatpush.bf16.msra.mxu1 %v4661_v17  ;;  %v4674_v6 = vld [vmem:[%s5085_s3 + $0x20] sm:$0xff] }
  0xed   : > { %1891 = vmatpush.bf16.msra.mxu2 %v5243_v5  ;;  %1909 = vmatpush.bf16.msra.mxu3 %v5244_v11  ;;  %v4693_v5 = vld [vmem:[%s5085_s3 + $0x58] sm:$0xff]  ;;  %v3137_v11 = vld [vmem:[%s4530_s9] sm:$0xe] }
  0xee   : > { %1811 = vmatmul.bf16.vlgmr.msrb.gmra.mxu2 %v4602_v63  ;;  %1829 = vmatmul.bf16.vlgmr.msrb.gmra.mxu3 %v4602_v63 }
  0xef   : > { %v846_v14 = vpop.f32.mrf.mxu2  ;;  %v864_v26 = vpop.f32.mrf.mxu3 }
  0xf0   : > { %v4595_v27 = vpop.f32.mrf.mxu0  ;;  %v4597_v48 = vpop.f32.mrf.mxu1  ;;  %v5249_v14 = vld [vmem:[#allocation75_spill] sm:$0xff]  ;;  %v4688_v26 = vld [vmem:[%s5085_s3 + $0x18] sm:$0xff] }
  0xf1   : > { %1991 = vmatpush.bf16.msrb.mxu2 %v5245_v0  ;;  %2009 = vmatpush.bf16.msrb.mxu3 %v5246_v25  ;;  %v4700_v0 = vrot.slane %v4544_v59, 1 }
  0xf5   : > { %1992 = vmatpush.bf16.msrb.mxu2 %v4252_v61  ;;  %2010 = vmatpush.bf16.msrb.mxu3 %v4260_v53  ;;  %v1689_v61 = vld [vmem:[%s4530_s9 + $0x8] sm:$0xf] }
  0xf7   : > { %v4608_v36 = vpop.f32.mrf.mxu2  ;;  %v4610_v42 = vpop.f32.mrf.mxu3 }
  0xf8   : > { %v4612_v54 = vpop.f32.mrf.mxu0  ;;  %v4614_v49 = vpop.f32.mrf.mxu1 }
  0xf9   : > { %1993 = vmatpush.bf16.msrb.mxu2 %v4291_v39  ;;  %2011 = vmatpush.bf16.msrb.mxu3 %v4293_v12  ;;  %v1798_v12 = vunpack.c.l.b16 %v1689_v61 }
  0xfb   : > { %v4647_v60 = vpack.c.b16 %v1798_v12, %v1798_v12  ;;  %v4707_v12 = vld [vmem:[%s5085_s3 + $0x10] sm:$0xff] }
  0xfd   : > { %1994 = vmatpush.bf16.msrb.mxu2 %v4331_v31  ;;  %2012 = vmatpush.bf16.msrb.mxu3 %v5247_v3  ;;  %v4656_v31 = vld [vmem:[%s5085_s3 + $0x28] sm:$0xff] }
  0xfe   : > { %1816 = vmatmul.bf16.gmra.mxu2 %v4647_v60  ;;  %1834 = vmatmul.bf16.gmra.mxu3 %v4647_v60 }
  0xff   : > { %v4626_v62 = vpop.f32.mrf.mxu2  ;;  %v4628_v34 = vpop.f32.mrf.mxu3  ;;  %1644 = vmatpush.bf16.msra.mxu0 %v4656_v31 }
 0x100   : > { %v4631_v53 = vpop.f32.mrf.mxu0  ;;  %v4633_v39 = vpop.f32.mrf.mxu1 }
 0x101   : > { %1995 = vmatpush.bf16.msrb.mxu2 %v4367_v21  ;;  %2013 = vmatpush.bf16.msrb.mxu3 %v5248_v28  ;;  %v4679_v21 = vld [vmem:[%s5085_s3 + $0x60] sm:$0xff] }
 0x102   : > { %1663 = vmatpush.bf16.msra.mxu1 %v4679_v21 }
 0x103   : > { %1645 = vmatpush.bf16.msra.mxu0 %v4674_v6 }
 0x105   : > { %1996 = vmatpush.bf16.msrb.mxu2 %v4403_v19  ;;  %2014 = vmatpush.bf16.msrb.mxu3 %v5249_v14  ;;  %v3136_v19 = vld [vmem:[%s4530_s9] sm:$0xf0]  ;;  %v4733_v14 = vld [vmem:[%s5085_s3 + $0x48] sm:$0xff] }
 0x106   : > { %1664 = vmatpush.bf16.msra.mxu1 %v4693_v5 }
 0x107   : > { %v4665_v56 = vpop.f32.mrf.mxu2  ;;  %v4667_v57 = vpop.f32.mrf.mxu3  ;;  %1646 = vmatpush.bf16.msra.mxu0 %v4688_v26 }
 0x108   : > { %v1084_v22 = vpop.f32.mrf.mxu0  ;;  %v1102_v55 = vpop.f32.mrf.mxu1 }
 0x109   : > { %1997 = vmatpush.bf16.msrb.mxu2 %v4443_v15  ;;  %2015 = vmatpush.bf16.msrb.mxu3 %v4445_v50  ;;  %v4712_v50 = vld [vmem:[%s5085_s3 + $0x50] sm:$0xff]  ;;  %v4714_v15 = vor.u32 %v3137_v11, %v3136_v19  ;;  %v4728_v55 = vld [vmem:[%s5085_s3 + $0x8] sm:$0xff]  ;;  %v1142_v19 = vadd.f32 %v4608_v36, %v4558_v20  ;;  %v1143_v11 = vadd.f32 %v4610_v42, %v4560_v1 }
 0x10a   : > { %1665 = vmatpush.bf16.msra.mxu1 %v4712_v50  ;;  %v806_v36 = vadd.f32 %v4562_v58, %v4511_v29  ;;  %v824_v42 = vadd.f32 %v4564_v23, %v4513_v33  ;;  %v5250_v23 = vld [vmem:[#allocation2_spill] sm:$0xff] }
 0x10b   : > { %v1879_v28 = vrot.slane %v4714_v15, 1  ;;  %1647 = vmatpush.bf16.msra.mxu0 %v4707_v12 }
 0x10c   : > { %v1145_v29 = vadd.f32 %v4614_v49, %v824_v42 }
 0x10d   : > { %1998 = vmatpush.bf16.msrb.mxu2 %v4473_v8  ;;  %2016 = vmatpush.bf16.msrb.mxu3 %v4475_v24  ;;  %v4723_v22 = vsel %vm902_vm1, %v1879_v28, %v4700_v0  ;;  %v1140_v24 = vadd.f32 %v4595_v27, %v4547_v10  ;;  %v1141_v8 = vadd.f32 %v4597_v48, %v4549_v47  ;;  %v4750_v10 = vld [vmem:[%s5085_s3] sm:$0xff] }
 0x10e   : > { %1892 = vmatmul.bf16.vlgmr.msra.gmra.mxu2 %v4723_v22  ;;  %1910 = vmatmul.bf16.vlgmr.msra.gmra.mxu3 %v4723_v22  ;;  %v4755_v47 = vld [vmem:[%s5085_s3 + $0x40] sm:$0xff] }
 0x10f   : > { %v1120_v25 = vpop.f32.mrf.mxu2  ;;  %v1138_v61 = vpop.f32.mrf.mxu3  ;;  %1648 = vmatpush.bf16.msra.mxu0 %v4728_v55  ;;  %1666 = vmatpush.bf16.msra.mxu1 %v4733_v14 }
 0x110   : > { %v1377_v59 = vpop.f32.mrf.mxu0  ;;  %v1395_v3 = vpop.f32.mrf.mxu1 }
 0x111   : > { %2169 = vmatpush.bf16.msra.mxu2 %v2986_v2  ;;  %2187 = vmatpush.bf16.msra.mxu3 %v2994_v4  ;;  %v1440_v25 = vadd.f32 %v1377_v59, %v1140_v24  ;;  %v1441_v61 = vadd.f32 %v1395_v3, %v1141_v8  ;;  %v842_v24 = vadd.f32 %v4570_v37, %v4519_v44 }
 0x112   : > { %v1144_v8 = vadd.f32 %v4612_v54, %v806_v36  ;;  %v1149_v36 = vadd.f32 %v4633_v39, %v4579_v9  ;;  %v1151_v9 = vadd.f32 %v4667_v57, %v4589_v52  ;;  %v5256_v39 = vunpack.c.l.b16 %v4535_v51 }
 0x113   : > { %v1452_v2 = vmul.f32 %v1440_v25, %v1440_v25  ;;  %v1453_v4 = vmul.f32 %v1441_v61, %v1441_v61  ;;  %1649 = vmatpush.bf16.msra.mxu0 %v4750_v10  ;;  %1667 = vmatpush.bf16.msra.mxu1 %v4755_v47  ;;  %v1146_v44 = vadd.f32 %v4626_v62, %v842_v24  ;;  %v5252_v62 = vld [vmem:[#allocation4_spill] sm:$0xff] }
 0x115   : > { %2170 = vmatpush.bf16.msra.mxu2 %v4640_v7  ;;  %2188 = vmatpush.bf16.msra.mxu3 %v4645_v35  ;;  %v5251_v7 = vld [vmem:[#allocation3_spill] sm:$0xff] }
 0x116   : > { %v1968_v35 = vld [vmem:[%s4530_s9 + $0xc] sm:$0x3]  ;;  %s2389_s9 = sshll.u32 %s5316_s15, 3 }
 0x117   : > { %v1413_v28 = vpop.f32.mrf.mxu2  ;;  %v1431_v18 = vpop.f32.mrf.mxu3  ;;  %1757 = vmatpush.bf16.msrb.mxu0 %v5250_v23  ;;  %1775 = vmatpush.bf16.msrb.mxu1 %v5251_v7  ;;  %s255_s28 = scalar_lea.vmem %s5086_s4, %s2389_s9 }
 0x118   : > { %v1442_v20 = vadd.f32 %v1413_v28, %v1142_v19  ;;  %v1443_v1 = vadd.f32 %v1431_v18, %v1143_v11  ;;  %v1379_v27 = vpop.f32.mrf.mxu0  ;;  %v1397_v48 = vpop.f32.mrf.mxu1  ;;  %v860_v18 = vadd.f32 %v4572_v30, %v4521_v45 }
 0x119   : > { %2171 = vmatpush.bf16.msra.mxu2 %v4656_v31  ;;  %2189 = vmatpush.bf16.msra.mxu3 %v4661_v17  ;;  %v1444_v37 = vadd.f32 %v1379_v27, %v1144_v8  ;;  %v1445_v30 = vadd.f32 %v1397_v48, %v1145_v29  ;;  %v5253_v31 = vld [vmem:[#allocation5_spill] sm:$0xff]  ;;  %v1148_v27 = vadd.f32 %v4631_v53, %v4577_v16 }
 0x11a   : > { %v1458_v59 = vmul.f32 %v1442_v20, %v1442_v20  ;;  %v1459_v3 = vmul.f32 %v1443_v1, %v1443_v1  ;;  %v1147_v45 = vadd.f32 %v4628_v34, %v860_v18  ;;  %v1970_v1 = vunpack.c.l.b16 %v1968_v35 }
 0x11b   : > { %1758 = vmatpush.bf16.msrb.mxu0 %v5252_v62  ;;  %1776 = vmatpush.bf16.msrb.mxu1 %v5253_v31  ;;  %v1454_v34 = vmul.f32 %v1444_v37, %v1444_v37  ;;  %v1455_v17 = vmul.f32 %v1445_v30, %v1445_v30  ;;  %v1150_v16 = vadd.f32 %v4665_v56, %v4587_v32 }
 0x11c   : > { %v4771_v33 = vadd.f32 %v1458_v59, %v1452_v2  ;;  %v4773_v58 = vadd.f32 %v1459_v3, %v1453_v4  ;;  %v5254_v59 = vld [vmem:[#allocation6_spill] sm:$0xff]  ;;  %v5255_v3 = vld [vmem:[#allocation7_spill] sm:$0xff]  ;;  %v1971_v24 = vpack.c.b16 %v1970_v1, %v5256_v39 }
 0x11d   : > { %2172 = vmatpush.bf16.msra.mxu2 %v4674_v6  ;;  %2190 = vmatpush.bf16.msra.mxu3 %v4679_v21 }
 0x11e   : > { %3164 = vrsqrt.f32 %v4771_v33  ;;  %1897 = vmatmul.bf16.gmra.mxu2 %v4700_v0  ;;  %1915 = vmatmul.bf16.gmra.mxu3 %v4700_v0  ;;  %vm1477_vm3 = vcmp.eq.f32.partialorder %v4771_v33, inf  ;;  %vm1479_vm4 = vcmp.eq.f32.partialorder %v4771_v33, 0.0  ;;  %vm1489_vm5 = vcmp.eq.f32.partialorder %v4773_v58, inf }
 0x11f   : > { %3166 = vrsqrt.f32 %v4773_v58  ;;  %v1415_v54 = vpop.f32.mrf.mxu2  ;;  %v1433_v49 = vpop.f32.mrf.mxu3  ;;  %1759 = vmatpush.bf16.msrb.mxu0 %v5254_v59  ;;  %1777 = vmatpush.bf16.msrb.mxu1 %v5255_v3  ;;  %vm1491_vm6 = vcmp.eq.f32.partialorder %v4773_v58, 0.0 }
 0x120   : > { %v1446_v19 = vadd.f32 %v1415_v54, %v1146_v44  ;;  %v1447_v11 = vadd.f32 %v1433_v49, %v1147_v45  ;;  %v1382_v25 = vpop.f32.mrf.mxu0  ;;  %v1400_v61 = vpop.f32.mrf.mxu1  ;;  %v1981_v54 = vshrl.u32 %v1971_v24, 16 }
 0x121   : > { %v1448_v21 = vadd.f32 %v1382_v25, %v1148_v27  ;;  %v1449_v53 = vadd.f32 %v1400_v61, %v1149_v36  ;;  %2173 = vmatpush.bf16.msra.mxu2 %v4688_v26  ;;  %2191 = vmatpush.bf16.msra.mxu3 %v4693_v5  ;;  %v5257_v26 = vld [vmem:[#allocation8_spill] sm:$0xff]  ;;  %v5258_v5 = vld [vmem:[#allocation9_spill] sm:$0xff] }
 0x122   : > { %v1460_v28 = vmul.f32 %v1446_v19, %v1446_v19  ;;  %v1461_v20 = vmul.f32 %v1447_v11, %v1447_v11  ;;  %v1984_v11 = vshll.u32 %v1971_v24, 16 }
 0x123   : > { %v1456_v7 = vmul.f32 %v1448_v21, %v1448_v21  ;;  %1760 = vmatpush.bf16.msrb.mxu0 %v5257_v26  ;;  %1778 = vmatpush.bf16.msrb.mxu1 %v5258_v5  ;;  %v1457_v51 = vmul.f32 %v1449_v53, %v1449_v53  ;;  %v1976_v53 = vshll.u32 %v4714_v15, 16 }
 0x124   : > { %v3165_v48 = vpop.eup %3164  ;;  %v4792_v42 = vadd.f32 %v1460_v28, %v1454_v34  ;;  %v4794_v2 = vadd.f32 %v1461_v20, %v1455_v17  ;;  %v5259_v17 = vld [vmem:[#allocation10_spill] sm:$0xff]  ;;  %v5260_v28 = vld [vmem:[#allocation11_spill] sm:$0xff]  ;;  %v1983_v20 = vrot.slane %v1981_v54, 1 }
 0x125   : > { %v3167_v6 = vpop.eup %3166  ;;  %v1471_v4 = vmul.f32 %v3165_v48, %v4771_v33  ;;  %2174 = vmatpush.bf16.msra.mxu2 %v4707_v12  ;;  %2192 = vmatpush.bf16.msra.mxu3 %v4712_v50 }
 0x126   : > { %3168 = vrsqrt.f32 %v4792_v42  ;;  %v1483_v32 = vmul.f32 %v3167_v6, %v4773_v58  ;;  %vm1501_vm7 = vcmp.eq.f32.partialorder %v4792_v42, inf  ;;  %vm1503_vm8 = vcmp.eq.f32.partialorder %v4792_v42, 0.0 }
 0x127   : > { %3170 = vrsqrt.f32 %v4794_v2  ;;  %v1418_v18 = vpop.f32.mrf.mxu2  ;;  %v1436_v8 = vpop.f32.mrf.mxu3  ;;  %v1472_v29 = vmul.f32 %v3165_v48, %v1471_v4  ;;  %1761 = vmatpush.bf16.msrb.mxu0 %v5259_v17  ;;  %1779 = vmatpush.bf16.msrb.mxu1 %v5260_v28  ;;  %v1986_v4 = vrot.slane %v1984_v11, 2  ;;  %vm1513_vm9 = vcmp.eq.f32.partialorder %v4794_v2, inf }
 0x128   : > { %v1450_v56 = vadd.f32 %v1418_v18, %v1150_v16  ;;  %v1451_v23 = vadd.f32 %v1436_v8, %v1151_v9  ;;  %v1384_v52 = vpop.f32.mrf.mxu0  ;;  %v1402_v57 = vpop.f32.mrf.mxu1  ;;  %v1484_v45 = vmul.f32 %v3167_v6, %v1483_v32  ;;  %v1973_v9 = vshrl.u32 %v4714_v15, 16 }
 0x129   : > { %v1473_v44 = vmul.f32 0.5, %v1472_v29  ;;  %2175 = vmatpush.bf16.msra.mxu2 %v4728_v55  ;;  %2193 = vmatpush.bf16.msra.mxu3 %v4733_v14  ;;  %v5261_v55 = vld [vmem:[#allocation12_spill] sm:$0xff]  ;;  %v5262_v14 = vld [vmem:[#allocation13_spill] sm:$0xff]  ;;  %v1492_v18 = vand.u32 2147483648, %v4773_v58  ;;  %vm1515_vm10 = vcmp.eq.f32.partialorder %v4794_v2, 0.0 }
 0x12a   : > { %v1462_v37 = vmul.f32 %v1450_v56, %v1450_v56  ;;  %v1463_v30 = vmul.f32 %v1451_v23, %v1451_v23  ;;  %v1485_v35 = vmul.f32 0.5, %v1484_v45  ;;  %v1975_v32 = vrot.slane %v1973_v9, 1  ;;  %v5271_v9 = vld [vmem:[#allocation22_spill] sm:$0xff] }
 0x12b   : > { %v1474_v49 = vsub.f32 1.5, %v1473_v44  ;;  %1762 = vmatpush.bf16.msrb.mxu0 %v5261_v55  ;;  %1780 = vmatpush.bf16.msrb.mxu1 %v5262_v14  ;;  %v1978_v56 = vrot.slane %v1976_v53, 2  ;;  %v4842_v23 = vor.u32 %v1986_v4, %v1983_v20  ;;  %v1504_v44 = vand.u32 2147483648, %v4792_v42  ;;  %v5267_v4 = vld [vmem:[#allocation18_spill] sm:$0xff]  ;;  %v5270_v55 = vld [vmem:[#allocation21_spill] sm:$0xff] }
 0x12c   : > { %v3169_v19 = vpop.eup %3168  ;;  %v4816_v25 = vadd.f32 %v1462_v37, %v1456_v7  ;;  %v4818_v61 = vadd.f32 %v1463_v30, %v1457_v51  ;;  %v1486_v34 = vsub.f32 1.5, %v1485_v35 }
 0x12d   : > { %v3171_v62 = vpop.eup %3170  ;;  %v1495_v31 = vmul.f32 %v3169_v19, %v4792_v42  ;;  %v1475_v12 = vmul.f32 %v3165_v48, %v1474_v49  ;;  %v1480_v48 = vand.u32 2147483648, %v4771_v33  ;;  %2176 = vmatpush.bf16.msra.mxu2 %v4750_v10  ;;  %2194 = vmatpush.bf16.msra.mxu3 %v4755_v47  ;;  %v5263_v10 = vld [vmem:[#allocation14_spill] sm:$0xff]  ;;  %v5264_v47 = vld [vmem:[#allocation15_spill] sm:$0xff]  ;;  %v1979_v26 = vor.u32 %v1978_v56, %v1975_v32  ;;  %v5274_v32 = vld [vmem:[#allocation25_spill] sm:$0xff] }
 0x12e   : > { %v1507_v50 = vmul.f32 %v3171_v62, %v4794_v2  ;;  %3172 = vrsqrt.f32 %v4816_v25  ;;  %v1487_v21 = vmul.f32 %v3167_v6, %v1486_v34  ;;  %v1516_v49 = vand.u32 2147483648, %v4794_v2 }
 0x12f   : > { %v1420_v1 = vpop.f32.mrf.mxu2  ;;  %v1438_v27 = vpop.f32.mrf.mxu3  ;;  %v1496_v36 = vmul.f32 %v3169_v19, %v1495_v31  ;;  %3174 = vrsqrt.f32 %v4818_v61  ;;  %v1476_v16 = vmul.f32 %v1475_v12, %v4771_v33  ;;  %1763 = vmatpush.bf16.msrb.mxu0 %v5263_v10  ;;  %1781 = vmatpush.bf16.msrb.mxu1 %v5264_v47  ;;  %v4863_v35 = vsel %vm1188_vm2, %v1979_v26, %v4842_v23  ;;  %v5266_v12 = vld [vmem:[#allocation17_spill] sm:$0xff]  ;;  %v5279_v10 = vld [vmem:[#allocation30_spill] sm:$0xff] }
 0x130   : > { %v1508_v59 = vmul.f32 %v3171_v62, %v1507_v50  ;;  %v1488_v24 = vmul.f32 %v1487_v21, %v4773_v58  ;;  %1999 = vmatmul.bf16.vlgmr.msrb.gmra.mxu2 %v4863_v35  ;;  %2017 = vmatmul.bf16.vlgmr.msrb.gmra.mxu3 %v4863_v35  ;;  %vm1525_vm11 = vcmp.eq.f32.partialorder %v4816_v25, inf  ;;  %vm1537_vm12 = vcmp.eq.f32.partialorder %v4818_v61, inf  ;;  %v5283_v26 = vld [vmem:[#allocation34_spill] sm:$0xff] }
 0x131   : > { %v1497_v3 = vmul.f32 0.5, %v1496_v36  ;;  %v1478_v7 = vsel %vm1477_vm3, %v4771_v33, %v1476_v16  ;;  %v5265_v33 = vld [vmem:[#allocation16_spill] sm:$0xff]  ;;  %v1528_v16 = vand.u32 2147483648, %v4816_v25  ;;  %vm1527_vm13 = vcmp.eq.f32.partialorder %v4816_v25, 0.0 }
 0x132   : > { %v1509_v6 = vmul.f32 0.5, %v1508_v59  ;;  %v1490_v51 = vsel %vm1489_vm5, %v4773_v58, %v1488_v24  ;;  %v5268_v59 = vld [vmem:[#allocation19_spill] sm:$0xff]  ;;  %v1540_v53 = vand.u32 2147483648, %v4818_v61  ;;  %vm1539_vm14 = vcmp.eq.f32.partialorder %v4818_v61, 0.0 }
 0x133   : > { %v1498_v39 = vsub.f32 1.5, %v1497_v3  ;;  %v1493_v17 = vsel %vm1491_vm6, %v1492_v18, %v1490_v51  ;;  %1764 = vmatpush.bf16.msrb.mxu0 %v5265_v33  ;;  %1782 = vmatpush.bf16.msrb.mxu1 %v5266_v12  ;;  %v5269_v3 = vld [vmem:[#allocation20_spill] sm:$0xff]  ;;  %v5292_v33 = vld [vmem:[#allocation45_spill] sm:$0xff] }
 0x134   : > { %v3173_v8 = vpop.eup %3172  ;;  %v1510_v29 = vsub.f32 1.5, %v1509_v6  ;;  %v5293_v12 = vld [vmem:[#allocation48_spill] sm:$0xff] }
 0x135   : > { %v1499_v52 = vmul.f32 %v3169_v19, %v1498_v39  ;;  %v1519_v15 = vmul.f32 %v3173_v8, %v4816_v25  ;;  %v3175_v57 = vpop.eup %3174  ;;  %v1481_v19 = vsel %vm1479_vm4, %v1480_v48, %v1478_v7  ;;  %v5272_v39 = vld [vmem:[#allocation23_spill] sm:$0xff] }
 0x136   : > { %v1511_v45 = vmul.f32 %v3171_v62, %v1510_v29  ;;  %v1531_v30 = vmul.f32 %v3175_v57, %v4818_v61  ;;  %v5280_v7 = vld [vmem:[#allocation31_spill] sm:$0xff] }
 0x137   : > { %v1500_v5 = vmul.f32 %v1499_v52, %v4792_v42  ;;  %v1520_v37 = vmul.f32 %v3173_v8, %v1519_v15  ;;  %v5276_v52 = vld [vmem:[#allocation27_spill] sm:$0xff]  ;;  %v5277_v15 = vld [vmem:[#allocation28_spill] sm:$0xff] }
 0x138   : > { %v1512_v54 = vmul.f32 %v1511_v45, %v4794_v2  ;;  %v1532_v31 = vmul.f32 %v3175_v57, %v1531_v30  ;;  %v5282_v45 = vld [vmem:[#allocation33_spill] sm:$0xff]  ;;  %v5285_v30 = vld [vmem:[#allocation36_spill] sm:$0xff] }
 0x139   : > { %v1502_v11 = vsel %vm1501_vm7, %v4792_v42, %v1500_v5  ;;  %v1521_v62 = vmul.f32 0.5, %v1520_v37  ;;  %v5284_v37 = vld [vmem:[#allocation35_spill] sm:$0xff] }
 0x13a   : > { %v1505_v34 = vsel %vm1503_vm8, %v1504_v44, %v1502_v11  ;;  %v1514_v28 = vsel %vm1513_vm9, %v4794_v2, %v1512_v54  ;;  %v1533_v27 = vmul.f32 0.5, %v1532_v31  ;;  %v5281_v44 = vld [vmem:[#allocation32_spill] sm:$0xff]  ;;  %v5286_v54 = vld [vmem:[#allocation37_spill] sm:$0xff] }
 0x13b   : > { %v1542_v50 = vpack.c.bf16 %v1505_v34, %v1481_v19  ;;  %v1517_v20 = vsel %vm1515_vm10, %v1516_v49, %v1514_v28  ;;  %v1522_v1 = vsub.f32 1.5, %v1521_v62  ;;  %v5287_v49 = vld [vmem:[#allocation38_spill] sm:$0xff]  ;;  %v5288_v62 = vld [vmem:[#allocation39_spill] sm:$0xff]  ;;  %v5289_v31 = vld [vmem:[#allocation40_spill] sm:$0xff] }
 0x13c   : > { %v1543_v36 = vpack.c.bf16 %v1517_v20, %v1493_v17  ;;  %v1534_v42 = vsub.f32 1.5, %v1533_v27  ;;  %v5290_v34 = vld [vmem:[#allocation41_spill] sm:$0xff]  ;;  %v5295_v20 = vld [vmem:[#allocation52_spill] sm:$0xff] }
 0x13d   : > { %1650 = vmatmul.bf16.vlgmr.msra.gmra.mxu0 %v1542_v50  ;;  %v1523_v21 = vmul.f32 %v3173_v8, %v1522_v1  ;;  %v5273_v8 = vld [vmem:[#allocation24_spill] sm:$0xff]  ;;  %v5294_v50 = vld [vmem:[#allocation49_spill] sm:$0xff] }
 0x13e   : > { %1668 = vmatmul.bf16.vlgmr.msra.gmra.mxu1 %v1543_v36  ;;  %1839 = vmatpush.bf16.msra.mxu0 %v5267_v4  ;;  %v1535_v58 = vmul.f32 %v3175_v57, %v1534_v42  ;;  %v5296_v36 = vld [vmem:[#allocation53_spill] sm:$0xff]  ;;  %v5297_v4 = vld [vmem:[#allocation55_spill] sm:$0xff] }
 0x13f   : > { %1857 = vmatpush.bf16.msra.mxu1 %v5268_v59  ;;  %v1524_v2 = vmul.f32 %v1523_v21, %v4816_v25 }
 0x140   : > { %v1536_v48 = vmul.f32 %v1535_v58, %v4818_v61  ;;  %2004 = vmatmul.bf16.gmra.mxu2 %v4842_v23  ;;  %2022 = vmatmul.bf16.gmra.mxu3 %v4842_v23  ;;  %v5299_v58 = vld [vmem:[#allocation59_spill] sm:$0xff] }
 0x141   : > { %v1526_v14 = vsel %vm1525_vm11, %v4816_v25, %v1524_v2  ;;  %v5275_v25 = vld [vmem:[#allocation26_spill] sm:$0xff] }
 0x142   : > { %1840 = vmatpush.bf16.msra.mxu0 %v5269_v3  ;;  %v1538_v6 = vsel %vm1537_vm12, %v4818_v61, %v1536_v48  ;;  %v1529_v24 = vsel %vm1527_vm13, %v1528_v16, %v1526_v14  ;;  %v5278_v61 = vld [vmem:[#allocation29_spill] sm:$0xff]  ;;  %v5300_v48 = vld [vmem:[#allocation60_spill] sm:$0xff]  ;;  %v5301_v14 = vld [vmem:[#allocation63_spill] sm:$0xff]  ;;  %vm2280_vm12 = vcmask 1040384   ;;  %vm2282_vm13 = vcmask 1041408  }
 0x143   : > { %1858 = vmatpush.bf16.msra.mxu1 %v5270_v55  ;;  %v1541_v18 = vsel %vm1539_vm14, %v1540_v53, %v1538_v6  ;;  %v1544_v29 = vpack.c.bf16 %v1529_v24, %v1529_v24  ;;  %v5302_v16 = vld [vmem:[#allocation64_spill] sm:$0xff]  ;;  %v5303_v6 = vld [vmem:[#allocation65_spill] sm:$0xff]  ;;  %vm2284_vm14 = vcmask 1042432  }
 0x144   : > { %v1545_v56 = vpack.c.bf16 %v1541_v18, %v1541_v18  ;;  %v5305_v18 = vld [vmem:[#allocation67_spill] sm:$0xff] }
 0x146   : > { %1841 = vmatpush.bf16.msra.mxu0 %v5271_v9  ;;  %v5304_v9 = vld [vmem:[#allocation66_spill] sm:$0xff] }
 0x147   : > { %1859 = vmatpush.bf16.msra.mxu1 %v5272_v39 }
 0x14a   : > { %1842 = vmatpush.bf16.msra.mxu0 %v5273_v8  ;;  %v5306_v8 = vld [vmem:[#allocation68_spill] sm:$0xff] }
 0x14b   : > { %1860 = vmatpush.bf16.msra.mxu1 %v5274_v32  ;;  %v5308_v32 = vld [vmem:[#allocation71_spill] sm:$0xff] }
 0x14d   : > { %1655 = vmatmul.bf16.gmra.mxu0 %v1544_v29  ;;  %v5307_v29 = vld [vmem:[#allocation70_spill] sm:$0xff] }
 0x14e   : > { %1673 = vmatmul.bf16.gmra.mxu1 %v1545_v56  ;;  %1843 = vmatpush.bf16.msra.mxu0 %v5275_v25 }
 0x14f   : > { %1861 = vmatpush.bf16.msra.mxu1 %v5276_v52  ;;  %v5309_v52 = vld [vmem:[#allocation73_spill] sm:$0xff] }
 0x151   : > { %v1730_v47 = vpop.f32.mrf.mxu2  ;;  %v1748_v57 = vpop.f32.mrf.mxu3 }
 0x152   : > { %1844 = vmatpush.bf16.msra.mxu0 %v5277_v15  ;;  %v5310_v15 = vld [vmem:[#allocation74_spill] sm:$0xff] }
 0x153   : > { %1862 = vmatpush.bf16.msra.mxu1 %v5278_v61 }
 0x156   : > { %1845 = vmatpush.bf16.msra.mxu0 %v5279_v10 }
 0x157   : > { %1863 = vmatpush.bf16.msra.mxu1 %v5280_v7 }
 0x159   : > { %v1732_v5 = vpop.f32.mrf.mxu2  ;;  %v1750_v51 = vpop.f32.mrf.mxu3 }
 0x15a   : > { %1846 = vmatpush.bf16.msra.mxu0 %v5281_v44 }
 0x15b   : > { %1864 = vmatpush.bf16.msra.mxu1 %v5282_v45 }
 0x15d   : > { %1765 = vmatmul.bf16.vlgmr.msrb.gmra.mxu0 %v4552_v43 }
 0x15e   : > { %1783 = vmatmul.bf16.vlgmr.msrb.gmra.mxu1 %v4552_v43  ;;  %1920 = vmatpush.bf16.msrb.mxu0 %v5283_v26  ;;  %v5291_v43 = vld [vmem:[#allocation44_spill] sm:$0xff] }
 0x15f   : > { %1938 = vmatpush.bf16.msrb.mxu1 %v5284_v37 }
 0x161   : > { %v1735_v19 = vpop.f32.mrf.mxu2  ;;  %v1753_v11 = vpop.f32.mrf.mxu3 }
 0x162   : > { %1921 = vmatpush.bf16.msrb.mxu0 %v5285_v30 }
 0x163   : > { %1939 = vmatpush.bf16.msrb.mxu1 %v5286_v54 }
 0x166   : > { %1922 = vmatpush.bf16.msrb.mxu0 %v5287_v49 }
 0x167   : > { %1940 = vmatpush.bf16.msrb.mxu1 %v5288_v62 }
 0x169   : > { %v1737_v17 = vpop.f32.mrf.mxu2  ;;  %v1755_v28 = vpop.f32.mrf.mxu3 }
 0x16a   : > { %1923 = vmatpush.bf16.msrb.mxu0 %v5289_v31 }
 0x16b   : > { %1941 = vmatpush.bf16.msrb.mxu1 %v5290_v34 }
 0x16d   : > { %1770 = vmatmul.bf16.gmra.mxu0 %v4581_v13 }
 0x16e   : > { %1788 = vmatmul.bf16.gmra.mxu1 %v4581_v13  ;;  %1924 = vmatpush.bf16.msrb.mxu0 %v5291_v43  ;;  %v5298_v13 = vld [vmem:[#allocation56_spill] sm:$0xff] }
 0x16f   : > { %1942 = vmatpush.bf16.msrb.mxu1 %v5292_v33 }
 0x171   : > { %v1812_v1 = vpop.f32.mrf.mxu2  ;;  %v1830_v27 = vpop.f32.mrf.mxu3 }
 0x172   : > { %1925 = vmatpush.bf16.msrb.mxu0 %v5293_v12  ;;  %v1813_v21 = vadd.f32 %v1812_v1, %v1730_v47  ;;  %v1831_v42 = vadd.f32 %v1830_v27, %v1748_v57 }
 0x173   : > { %1943 = vmatpush.bf16.msrb.mxu1 %v5294_v50 }
 0x176   : > { %1926 = vmatpush.bf16.msrb.mxu0 %v5295_v20 }
 0x177   : > { %1944 = vmatpush.bf16.msrb.mxu1 %v5296_v36 }
 0x179   : > { %v1814_v59 = vpop.f32.mrf.mxu2  ;;  %v1832_v2 = vpop.f32.mrf.mxu3 }
 0x17a   : > { %1927 = vmatpush.bf16.msrb.mxu0 %v5297_v4  ;;  %v1815_v3 = vadd.f32 %v1814_v59, %v1732_v5  ;;  %v1833_v55 = vadd.f32 %v1832_v2, %v1750_v51 }
 0x17b   : > { %1945 = vmatpush.bf16.msrb.mxu1 %v5298_v13 }
 0x17d   : > { %1847 = vmatmul.bf16.vlgmr.msra.gmra.mxu0 %v4602_v63 }
 0x17e   : > { %1865 = vmatmul.bf16.vlgmr.msra.gmra.mxu1 %v4602_v63  ;;  %2027 = vmatpush.bf16.msra.mxu0 %v5299_v58 }
 0x17f   : > { %2045 = vmatpush.bf16.msra.mxu1 %v5300_v48  ;;  %v3224_v48 = vmov 0.0  }
 0x181   : > { %v1817_v53 = vpop.f32.mrf.mxu2  ;;  %v1835_v39 = vpop.f32.mrf.mxu3 }
 0x182   : > { %2028 = vmatpush.bf16.msra.mxu0 %v5301_v14  ;;  %v1818_v24 = vadd.f32 %v1817_v53, %v1735_v19  ;;  %v1836_v63 = vadd.f32 %v1835_v39, %v1753_v11 }
 0x183   : > { %2046 = vmatpush.bf16.msra.mxu1 %v5302_v16 }
 0x186   : > { %2029 = vmatpush.bf16.msra.mxu0 %v5303_v6 }
 0x187   : > { %2047 = vmatpush.bf16.msra.mxu1 %v5304_v9 }
 0x189   : > { %v1819_v56 = vpop.f32.mrf.mxu2  ;;  %v1837_v25 = vpop.f32.mrf.mxu3 }
 0x18a   : > { %2030 = vmatpush.bf16.msra.mxu0 %v5305_v18 }
 0x18b   : > { %2048 = vmatpush.bf16.msra.mxu1 %v5306_v8 }
 0x18d   : > { %1852 = vmatmul.bf16.gmra.mxu0 %v4647_v60 }
 0x18e   : > { %1870 = vmatmul.bf16.gmra.mxu1 %v4647_v60  ;;  %2031 = vmatpush.bf16.msra.mxu0 %v5307_v29 }
 0x18f   : > { %2049 = vmatpush.bf16.msra.mxu1 %v5308_v32 }
 0x191   : > { %v1893_v61 = vpop.f32.mrf.mxu2  ;;  %v1911_v10 = vpop.f32.mrf.mxu3 }
 0x192   : > { %2032 = vmatpush.bf16.msra.mxu0 %v5309_v52  ;;  %v1956_v47 = vadd.f32 %v1893_v61, %v1813_v21  ;;  %v1957_v57 = vadd.f32 %v1911_v10, %v1831_v42 }
 0x193   : > { %2050 = vmatpush.bf16.msra.mxu1 %v5310_v15 }
 0x196   : > { %2033 = vmatpush.bf16.msra.mxu0 %v4431_v40 }
 0x197   : > { %2051 = vmatpush.bf16.msra.mxu1 %v4433_v46 }
 0x199   : > { %v1895_v60 = vpop.f32.mrf.mxu2  ;;  %v1913_v7 = vpop.f32.mrf.mxu3 }
 0x19a   : > { %2034 = vmatpush.bf16.msra.mxu0 %v4467_v38  ;;  %v1960_v44 = vadd.f32 %v1895_v60, %v1815_v3  ;;  %v1961_v45 = vadd.f32 %v1913_v7, %v1833_v55 }
 0x19b   : > { %2052 = vmatpush.bf16.msra.mxu1 %v4469_v41 }
 0x19d   : > { %1928 = vmatmul.bf16.vlgmr.msrb.gmra.mxu0 %v4723_v22 }
 0x19e   : > { %1946 = vmatmul.bf16.vlgmr.msrb.gmra.mxu1 %v4723_v22  ;;  %v2214_v22 = vlaneseq }
 0x1a0   : > { %v2215_v43 = vshrl.u32 %v2214_v22, 7 }
 0x1a1   : > { %v1898_v26 = vpop.f32.mrf.mxu2  ;;  %v1916_v40 = vpop.f32.mrf.mxu3 }
 0x1a2   : > { %v1964_v46 = vadd.f32 %v1898_v26, %v1818_v24  ;;  %v1965_v5 = vadd.f32 %v1916_v40, %v1836_v63  ;;  %v2217_v1 = vadd.s32 16, %v2215_v43 }
 0x1a4   : > { %vm2225_vm15 = vcmp.lt.s32.totalorder %v2217_v1, 17 }
 0x1a5   : > { %v4978_v3 = vsel %vm2225_vm15, 1.0, %v3224_v48 }
 0x1a9   : > { %v1900_v51 = vpop.f32.mrf.mxu2  ;;  %v1918_v38 = vpop.f32.mrf.mxu3 }
 0x1ad   : > { %1933 = vmatmul.bf16.gmra.mxu0 %v4700_v0 }
 0x1ae   : > { %1951 = vmatmul.bf16.gmra.mxu1 %v4700_v0 }
 0x1b3   : > { %v2000_v54 = vpop.f32.mrf.mxu2  ;;  %v2018_v49 = vpop.f32.mrf.mxu3 }
 0x1b4   : > { %v4954_v19 = vadd.f32 %v2000_v54, %v1956_v47  ;;  %v4956_v11 = vadd.f32 %v2018_v49, %v1957_v57 }
 0x1b6   : > { %v2075_v43 = vmul.f32 %v4954_v19, %v4954_v19 }
 0x1ba   : > { %v1651_v37 = vpop.f32.mrf.mxu0 }
 0x1bb   : > { %v1669_v41 = vpop.f32.mrf.mxu1  ;;  %v2002_v17 = vpop.f32.mrf.mxu2 }
 0x1bc   : > { %v1670_v30 = vadd.f32 %v1669_v41, %v1651_v37  ;;  %v2020_v28 = vpop.f32.mrf.mxu3  ;;  %v4960_v33 = vadd.f32 %v2002_v17, %v1960_v44 }
 0x1bd   : > { %2035 = vmatmul.bf16.vlgmr.msra.gmra.mxu0 %v4863_v35  ;;  %v4962_v12 = vadd.f32 %v2020_v28, %v1961_v45  ;;  %v2076_v28 = vmul.f32 %v4956_v11, %v4956_v11 }
 0x1be   : > { %2053 = vmatmul.bf16.vlgmr.msra.gmra.mxu1 %v4863_v35  ;;  %v4958_v31 = vmax.f32 %v1670_v30, 1e-07  ;;  %v2077_v11 = vmul.f32 %v4960_v33, %v4960_v33 }
 0x1c0   : > { %v2249_v35 = vmul.f32 %v4958_v31, %v4958_v31 }
 0x1c2   : > { %v1653_v62 = vpop.f32.mrf.mxu0 }
 0x1c3   : > { %v1671_v0 = vpop.f32.mrf.mxu1  ;;  %v2005_v4 = vpop.f32.mrf.mxu2 }
 0x1c4   : > { %v1672_v34 = vadd.f32 %v1671_v0, %v1653_v62  ;;  %v2023_v13 = vpop.f32.mrf.mxu3  ;;  %v4971_v58 = vadd.f32 %v2005_v4, %v1964_v46 }
 0x1c5   : > { %v4973_v59 = vadd.f32 %v2023_v13, %v1965_v5 }
 0x1c6   : > { %v4964_v50 = vmax.f32 %v1672_v34, 1e-07 }
 0x1c8   : > { %v2250_v20 = vmul.f32 %v4964_v50, %v4964_v50 }
 0x1ca   : > { %v2255_v27 = vadd.f32 %v2250_v20, %v2249_v35  ;;  %v1656_v36 = vpop.f32.mrf.mxu0 }
 0x1cb   : > { %v1674_v21 = vpop.f32.mrf.mxu1  ;;  %v2007_v53 = vpop.f32.mrf.mxu2 }
 0x1cc   : > { %v1675_v42 = vadd.f32 %v1674_v21, %v1656_v36  ;;  %v2025_v39 = vpop.f32.mrf.mxu3 }
 0x1cd   : > { %2040 = vmatmul.bf16.gmra.mxu0 %v4842_v23 }
 0x1ce   : > { %v4975_v2 = vmax.f32 %v1675_v42, 1e-07  ;;  %2058 = vmatmul.bf16.gmra.mxu1 %v4842_v23 }
 0x1d0   : > { %v2251_v55 = vmul.f32 %v4975_v2, %v4975_v2 }
 0x1d2   : > { %v2254_v14 = vmul.f32 %v4978_v3, %v2251_v55  ;;  %v1658_v16 = vpop.f32.mrf.mxu0 }
 0x1d3   : > { %v1676_v6 = vpop.f32.mrf.mxu1 }
 0x1d4   : > { %v4983_v9 = vadd.f32 %v2255_v27, %v2254_v14  ;;  %v2078_v14 = vmul.f32 %v4962_v12, %v4962_v12 }
 0x1da   : > { %v1766_v24 = vpop.f32.mrf.mxu0 }
 0x1db   : > { %v1784_v63 = vpop.f32.mrf.mxu1 }
 0x1e2   : > { %v1768_v18 = vpop.f32.mrf.mxu0 }
 0x1e3   : > { %v1786_v8 = vpop.f32.mrf.mxu1 }
 0x1ea   : > { %v1771_v29 = vpop.f32.mrf.mxu0 }
 0x1eb   : > { %v1789_v23 = vpop.f32.mrf.mxu1 }
 0x1f2   : > { %v1773_v32 = vpop.f32.mrf.mxu0 }
 0x1f3   : > { %v1791_v56 = vpop.f32.mrf.mxu1 }
 0x1fa   : > { %v1848_v25 = vpop.f32.mrf.mxu0 }
 0x1fb   : > { %v1849_v52 = vadd.f32 %v1848_v25, %v1766_v24  ;;  %v1866_v15 = vpop.f32.mrf.mxu1 }
 0x1fc   : > { %v1867_v61 = vadd.f32 %v1866_v15, %v1784_v63  ;;  %v2079_v15 = vmul.f32 %v4971_v58, %v4971_v58 }
 0x202   : > { %v1850_v10 = vpop.f32.mrf.mxu0 }
 0x203   : > { %v1868_v47 = vpop.f32.mrf.mxu1  ;;  %v1851_v20 = vadd.f32 %v1850_v10, %v1768_v18  ;;  %v2080_v10 = vmul.f32 %v4973_v59, %v4973_v59 }
 0x204   : > { %v1869_v27 = vadd.f32 %v1868_v47, %v1786_v8 }
 0x20a   : > { %v1853_v57 = vpop.f32.mrf.mxu0 }
 0x20b   : > { %v1854_v60 = vadd.f32 %v1853_v57, %v1771_v29  ;;  %v1871_v7 = vpop.f32.mrf.mxu1 }
 0x20c   : > { %v1872_v44 = vadd.f32 %v1871_v7, %v1789_v23 }
 0x212   : > { %v1855_v45 = vpop.f32.mrf.mxu0 }
 0x213   : > { %v1873_v26 = vpop.f32.mrf.mxu1 }
 0x21a   : > { %v1929_v40 = vpop.f32.mrf.mxu0 }
 0x21b   : > { %v1947_v46 = vpop.f32.mrf.mxu1  ;;  %v1958_v54 = vadd.f32 %v1929_v40, %v1849_v52 }
 0x21c   : > { %v1959_v49 = vadd.f32 %v1947_v46, %v1867_v61 }
 0x222   : > { %v1931_v5 = vpop.f32.mrf.mxu0 }
 0x223   : > { %v1949_v51 = vpop.f32.mrf.mxu1  ;;  %v1962_v21 = vadd.f32 %v1931_v5, %v1851_v20 }
 0x224   : > { %v1963_v42 = vadd.f32 %v1949_v51, %v1869_v27 }
 0x22a   : > { %v1934_v38 = vpop.f32.mrf.mxu0 }
 0x22b   : > { %v1952_v37 = vpop.f32.mrf.mxu1  ;;  %v1966_v18 = vadd.f32 %v1934_v38, %v1854_v60 }
 0x22c   : > { %v1967_v8 = vadd.f32 %v1952_v37, %v1872_v44 }
 0x232   : > { %v1936_v41 = vpop.f32.mrf.mxu0 }
 0x233   : > { %v1954_v30 = vpop.f32.mrf.mxu1 }
 0x23a   : > { %v2036_v22 = vpop.f32.mrf.mxu0 }
 0x23b   : > { %v2065_v62 = vadd.f32 %v2036_v22, %v1958_v54  ;;  %v2054_v0 = vpop.f32.mrf.mxu1 }
 0x23c   : > { %v2066_v34 = vadd.f32 %v2054_v0, %v1959_v49 }
 0x23d   : > { %v2081_v17 = vmul.f32 %v2065_v62, %v2065_v62 }
 0x23e   : > { %v2082_v35 = vmul.f32 %v2066_v34, %v2066_v34 }
 0x23f   : > { %v4989_v1 = vadd.f32 %v2081_v17, %v2075_v43 }
 0x240   : > { %v4991_v36 = vadd.f32 %v2082_v35, %v2076_v28 }
 0x241   : > { %3176 = vrsqrt.f32 %v4989_v1  ;;  %vm2100_vm0 = vcmp.eq.f32.partialorder %v4989_v1, inf  ;;  %vm2102_vm1 = vcmp.eq.f32.partialorder %v4989_v1, 0.0  ;;  %v2103_v0 = vand.u32 2147483648, %v4989_v1 }
 0x242   : > { %3178 = vrsqrt.f32 %v4991_v36  ;;  %v2038_v4 = vpop.f32.mrf.mxu0  ;;  %vm2112_vm2 = vcmp.eq.f32.partialorder %v4991_v36, inf  ;;  %vm2114_vm3 = vcmp.eq.f32.partialorder %v4991_v36, 0.0  ;;  %v2115_v35 = vand.u32 2147483648, %v4991_v36 }
 0x243   : > { %v2069_v13 = vadd.f32 %v2038_v4, %v1962_v21  ;;  %v2056_v19 = vpop.f32.mrf.mxu1 }
 0x244   : > { %v2070_v48 = vadd.f32 %v2056_v19, %v1963_v42 }
 0x245   : > { %v2083_v55 = vmul.f32 %v2069_v13, %v2069_v13 }
 0x246   : > { %v2084_v16 = vmul.f32 %v2070_v48, %v2070_v48 }
 0x247   : > { %v3177_v6 = vpop.eup %3176  ;;  %v4999_v53 = vadd.f32 %v2083_v55, %v2077_v11 }
 0x248   : > { %v3179_v39 = vpop.eup %3178  ;;  %v5001_v24 = vadd.f32 %v2084_v16, %v2078_v14  ;;  %v2094_v63 = vmul.f32 %v3177_v6, %v4989_v1 }
 0x249   : > { %3180 = vrsqrt.f32 %v4999_v53  ;;  %v2106_v23 = vmul.f32 %v3179_v39, %v4991_v36  ;;  %vm2124_vm4 = vcmp.eq.f32.partialorder %v4999_v53, inf  ;;  %vm2126_vm5 = vcmp.eq.f32.partialorder %v4999_v53, 0.0 }
 0x24a   : > { %3182 = vrsqrt.f32 %v5001_v24  ;;  %v2041_v33 = vpop.f32.mrf.mxu0  ;;  %v2095_v29 = vmul.f32 %v3177_v6, %v2094_v63  ;;  %v2127_v13 = vand.u32 2147483648, %v4999_v53  ;;  %vm2136_vm6 = vcmp.eq.f32.partialorder %v5001_v24, inf }
 0x24b   : > { %v2073_v12 = vadd.f32 %v2041_v33, %v1966_v18  ;;  %v2059_v32 = vpop.f32.mrf.mxu1  ;;  %v2107_v52 = vmul.f32 %v3179_v39, %v2106_v23  ;;  %vm2138_vm7 = vcmp.eq.f32.partialorder %v5001_v24, 0.0  ;;  %v2139_v16 = vand.u32 2147483648, %v5001_v24 }
 0x24c   : > { %v2074_v56 = vadd.f32 %v2059_v32, %v1967_v8  ;;  %v2096_v25 = vmul.f32 0.5, %v2095_v29 }
 0x24d   : > { %v2085_v61 = vmul.f32 %v2073_v12, %v2073_v12  ;;  %v2108_v60 = vmul.f32 0.5, %v2107_v52 }
 0x24e   : > { %v2086_v47 = vmul.f32 %v2074_v56, %v2074_v56  ;;  %v2097_v57 = vsub.f32 1.5, %v2096_v25 }
 0x24f   : > { %v3181_v7 = vpop.eup %3180  ;;  %v5011_v44 = vadd.f32 %v2085_v61, %v2079_v15  ;;  %v2109_v46 = vsub.f32 1.5, %v2108_v60 }
 0x250   : > { %v3183_v45 = vpop.eup %3182  ;;  %v5013_v26 = vadd.f32 %v2086_v47, %v2080_v10  ;;  %v2118_v40 = vmul.f32 %v3181_v7, %v4999_v53  ;;  %v2098_v59 = vmul.f32 %v3177_v6, %v2097_v57 }
 0x251   : > { %3184 = vrsqrt.f32 %v5011_v44  ;;  %v2130_v58 = vmul.f32 %v3183_v45, %v5001_v24  ;;  %v2110_v37 = vmul.f32 %v3179_v39, %v2109_v46  ;;  %vm2148_vm8 = vcmp.eq.f32.partialorder %v5011_v44, inf }
 0x252   : > { %3186 = vrsqrt.f32 %v5013_v26  ;;  %v2043_v5 = vpop.f32.mrf.mxu0  ;;  %v2119_v51 = vmul.f32 %v3181_v7, %v2118_v40  ;;  %v2099_v49 = vmul.f32 %v2098_v59, %v4989_v1  ;;  %vm2160_vm9 = vcmp.eq.f32.partialorder %v5013_v26, inf }
 0x253   : > { %v2061_v38 = vpop.f32.mrf.mxu1  ;;  %v2131_v41 = vmul.f32 %v3183_v45, %v2130_v58  ;;  %v2111_v34 = vmul.f32 %v2110_v37, %v4991_v36  ;;  %vm2150_vm10 = vcmp.eq.f32.partialorder %v5011_v44, 0.0  ;;  %v2163_v61 = vand.u32 2147483648, %v5013_v26 }
 0x254   : > { %v2120_v30 = vmul.f32 0.5, %v2119_v51  ;;  %v2101_v42 = vsel %vm2100_vm0, %v4989_v1, %v2099_v49  ;;  %vm2162_vm11 = vcmp.eq.f32.partialorder %v5013_v26, 0.0 }
 0x255   : > { %v2132_v54 = vmul.f32 0.5, %v2131_v41  ;;  %v2113_v48 = vsel %vm2112_vm2, %v4991_v36, %v2111_v34  ;;  %v2104_v39 = vsel %vm2102_vm1, %v2103_v0, %v2101_v42  ;;  %v2151_v36 = vand.u32 2147483648, %v5011_v44 }
 0x256   : > { %v2121_v22 = vsub.f32 1.5, %v2120_v30  ;;  %v2116_v29 = vsel %vm2114_vm3, %v2115_v35, %v2113_v48 }
 0x257   : > { %v3185_v62 = vpop.eup %3184  ;;  %v2133_v43 = vsub.f32 1.5, %v2132_v54 }
 0x258   : > { %v3187_v17 = vpop.eup %3186  ;;  %v2122_v28 = vmul.f32 %v3181_v7, %v2121_v22  ;;  %v2142_v20 = vmul.f32 %v3185_v62, %v5011_v44 }
 0x259   : > { %v2134_v27 = vmul.f32 %v3183_v45, %v2133_v43  ;;  %v2154_v21 = vmul.f32 %v3187_v17, %v5013_v26 }
 0x25a   : > { %v2123_v4 = vmul.f32 %v2122_v28, %v4999_v53  ;;  %v2143_v19 = vmul.f32 %v3185_v62, %v2142_v20 }
 0x25b   : > { %v2135_v11 = vmul.f32 %v2134_v27, %v5001_v24  ;;  %v2155_v55 = vmul.f32 %v3187_v17, %v2154_v21 }
 0x25c   : > { %v2125_v14 = vsel %vm2124_vm4, %v4999_v53, %v2123_v4  ;;  %v2144_v6 = vmul.f32 0.5, %v2143_v19 }
 0x25d   : > { %v2128_v63 = vsel %vm2126_vm5, %v2127_v13, %v2125_v14  ;;  %v2137_v18 = vsel %vm2136_vm6, %v5001_v24, %v2135_v11  ;;  %v2156_v8 = vmul.f32 0.5, %v2155_v55 }
 0x25e   : > { %v2165_v33 = vpack.c.bf16 %v2128_v63, %v2104_v39  ;;  %v2140_v23 = vsel %vm2138_vm7, %v2139_v16, %v2137_v18  ;;  %v2145_v12 = vsub.f32 1.5, %v2144_v6 }
 0x25f   : > { %v2166_v32 = vpack.c.bf16 %v2140_v23, %v2116_v29  ;;  %v2157_v56 = vsub.f32 1.5, %v2156_v8 }
 0x260   : > { %2177 = vmatmul.bf16.vlgmr.msra.gmra.mxu2 %v2165_v33  ;;  %v2146_v25 = vmul.f32 %v3185_v62, %v2145_v12 }
 0x261   : > { %2195 = vmatmul.bf16.vlgmr.msra.gmra.mxu3 %v2166_v32  ;;  %v2158_v52 = vmul.f32 %v3187_v17, %v2157_v56 }
 0x262   : > { %v2147_v1 = vmul.f32 %v2146_v25, %v5011_v44 }
 0x263   : > { %v2159_v53 = vmul.f32 %v2158_v52, %v5013_v26 }
 0x264   : > { %v2149_v24 = vsel %vm2148_vm8, %v5011_v44, %v2147_v1 }
 0x265   : > { %v2161_v15 = vsel %vm2160_vm9, %v5013_v26, %v2159_v53  ;;  %v2152_v10 = vsel %vm2150_vm10, %v2151_v36, %v2149_v24 }
 0x266   : > { %v2164_v47 = vsel %vm2162_vm11, %v2163_v61, %v2161_v15  ;;  %v2167_v57 = vpack.c.bf16 %v2152_v10, %v2152_v10 }
 0x267   : > { %v2168_v60 = vpack.c.bf16 %v2164_v47, %v2164_v47 }
 0x270   : > { %2182 = vmatmul.bf16.gmra.mxu2 %v2167_v57 }
 0x271   : > { %2200 = vmatmul.bf16.gmra.mxu3 %v2168_v60 }
 0x2e3   : > { %v2178_v7 = vpop.f32.mrf.mxu2 }
 0x2e4   : > { %v2196_v45 = vpop.f32.mrf.mxu3 }
 0x2e5   : > { %v2197_v40 = vadd.f32 %v2196_v45, %v2178_v7 }
 0x2e7   : > { %v2205_v46 = vmax.f32 %v2197_v40, 1e-07 }
 0x2e9   : > { %3188 = vlog2.f32 %v2205_v46  ;;  %v2232_v59 = vsub.f32 %v4958_v31, %v2205_v46 }
 0x2ea   : > { %3190 = vlog2.f32 %v4958_v31  ;;  %v2257_v31 = vrot.slane %v4983_v9, 4 }
 0x2eb   : > { %v2180_v58 = vpop.f32.mrf.mxu2  ;;  %3192 = vlog2.f32 %v4964_v50  ;;  %v2235_v41 = vmul.f32 %v2232_v59, %v2232_v59 }
 0x2ec   : > { %v2198_v5 = vpop.f32.mrf.mxu3  ;;  %v2258_v42 = vadd.f32 %v2257_v31, %v4983_v9 }
 0x2ed   : > { %v2199_v44 = vadd.f32 %v2198_v5, %v2180_v58 }
 0x2ee   : > { %v2259_v39 = vrot.slane %v2258_v42, 2 }
 0x2ef   : > { %v2206_v26 = vmax.f32 %v2199_v44, 1e-07  ;;  %v3189_v51 = vpop.eup %3188 }
 0x2f0   : > { %v3191_v37 = vpop.eup %3190  ;;  %v2209_v49 = vmul.f32 0.6931472, %v3189_v51 }
 0x2f1   : > { %3194 = vlog2.f32 %v2206_v26  ;;  %v2233_v38 = vsub.f32 %v4964_v50, %v2206_v26  ;;  %v3193_v62 = vpop.eup %3192  ;;  %v1682_v43 = vmul.f32 0.6931472, %v3191_v37 }
 0x2f2   : > { %3196 = vlog2.f32 %v4975_v2  ;;  %v1684_v35 = vmul.f32 0.6931472, %v3193_v62 }
 0x2f3   : > { %v2236_v30 = vmul.f32 %v2233_v38, %v2233_v38  ;;  %v2183_v54 = vpop.f32.mrf.mxu2  ;;  %v2263_v20 = vsub.f32 %v1682_v43, %v2209_v49 }
 0x2f4   : > { %v2201_v22 = vpop.f32.mrf.mxu3 }
 0x2f5   : > { %v2241_v0 = vadd.f32 %v2236_v30, %v2235_v41  ;;  %v2202_v34 = vadd.f32 %v2201_v22, %v2183_v54  ;;  %v2266_v19 = vand.u32 2147483647, %v2263_v20 }
 0x2f7   : > { %v3195_v17 = vpop.eup %3194  ;;  %v2207_v28 = vmax.f32 %v2202_v34, 1e-07 }
 0x2f8   : > { %v2211_v27 = vmul.f32 0.6931472, %v3195_v17  ;;  %v3197_v55 = vpop.eup %3196 }
 0x2f9   : > { %3198 = vlog2.f32 %v2207_v28  ;;  %v2234_v50 = vsub.f32 %v4975_v2, %v2207_v28  ;;  %v1686_v18 = vmul.f32 0.6931472, %v3197_v55  ;;  %v2260_v2 = vadd.f32 %v2259_v39, %v2258_v42 }
 0x2fa   : > { %v2264_v21 = vsub.f32 %v1684_v35, %v2211_v27 }
 0x2fb   : > { %v2237_v4 = vmul.f32 %v2234_v50, %v2234_v50  ;;  %v2185_v13 = vpop.f32.mrf.mxu2  ;;  %v2261_v56 = vrot.slane %v2260_v2, 1 }
 0x2fc   : > { %v2267_v48 = vand.u32 2147483647, %v2264_v21  ;;  %v2203_v11 = vpop.f32.mrf.mxu3 }
 0x2fd   : > { %v2240_v14 = vmul.f32 %v4978_v3, %v2237_v4  ;;  %v2262_v24 = vadd.f32 %v2261_v56, %v2260_v2 }
 0x2fe   : > { %v2272_v16 = vadd.f32 %v2267_v48, %v2266_v19 }
 0x2ff   : > { %v3199_v6 = vpop.eup %3198  ;;  %v2242_v63 = vadd.f32 %v2241_v0, %v2240_v14 }
 0x300   : > { %v2213_v8 = vmul.f32 0.6931472, %v3199_v6 }
 0x301   : > { %v2243_v33 = vrot.slane %v2242_v63, 4 }
 0x302   : > { %v2265_v29 = vsub.f32 %v1686_v18, %v2213_v8 }
 0x303   : > { %v2244_v23 = vadd.f32 %v2243_v33, %v2242_v63 }
 0x304   : > { %v2268_v12 = vand.u32 2147483647, %v2265_v29 }
 0x305   : > { %v2245_v9 = vrot.slane %v2244_v23, 2 }
 0x306   : > { %v2271_v32 = vmul.f32 %v4978_v3, %v2268_v12 }
 0x307   : > { %v2246_v25 = vadd.f32 %v2245_v9, %v2244_v23 }
 0x308   : > { %v2273_v52 = vadd.f32 %v2272_v16, %v2271_v32 }
 0x309   : > { %v2247_v1 = vrot.slane %v2246_v25, 1 }
 0x30a   : > { %v2274_v53 = vrot.slane %v2273_v52, 4 }
 0x30b   : > { %v2248_v36 = vadd.f32 %v2247_v1, %v2246_v25 }
 0x30c   : > { %v2275_v15 = vadd.f32 %v2274_v53, %v2273_v52 }
 0x30d   : > { %v2281_v61 = vsel %vm2280_vm12, %v2248_v36, %v2262_v24 }
 0x30e   : > { %v2276_v10 = vrot.slane %v2275_v15, 2 }
 0x310   : > { %v2277_v47 = vadd.f32 %v2276_v10, %v2275_v15 }
 0x312   : > { %v2278_v57 = vrot.slane %v2277_v47, 1 }
 0x314   : > { %v2279_v60 = vadd.f32 %v2278_v57, %v2277_v47 }
 0x316   : > { %v2283_v7 = vsel %vm2282_vm13, %v2281_v61, %v2279_v60 }
 0x317   : > { %v2285_v3 = vsel %vm2284_vm14, %v2283_v7, 0.0 }
 0x318   : > { %2288 = vst [vmem:[%s255_s28] sm:$0xff] %v2285_v3 }
 0x319 PF: > { %s14_s17 = sadd.s32 1, %s3222_s17   ;;  %s5311_s15 = smov %s3218_s16 }
 0x31a   : > { %p11_p5 = scmp.ge.s32.totalorder %s14_s17, 4   ;;  %s5312_s16 = smov %s5314_s18 }
 0x31c   :  { %13 = sbr.rel (!%p11_p5) target bundleno = 2 (0x2), region = 73 }

</bundles_post_ra>
